<compile_context>
chip_gen: v7x
topology: tpu7x:2x2x1
jax: 0.10.0
libtpu: 0.0.40
codegen_flags: <defaults>
</compile_context>

<pallas_src>
import functools

import jax
import jax.numpy as jnp
import numpy as np
from jax import lax
from jax.experimental import pallas as pl
from jax.experimental.pallas import tpu as pltpu

BN_EPS = 1e-5


def _round_up(x, m):
    return ((x + m - 1) // m) * m


def _vmem_limit_bytes():
    # Per-generation VMEM budget (v5e/v6e: 128 MiB physical, v7x: 64 MiB).
    # Blocks in this kernel are tiny, so the fallback is always safe.
    try:
        cap = pltpu.get_tpu_info().vmem_capacity_bytes
        return int(min(cap * 3 // 4, 100 * 1024 * 1024))
    except Exception:
        return 48 * 1024 * 1024


# ---------------------------------------------------------------------------
# In-kernel helpers
# ---------------------------------------------------------------------------
def _set_halo_zero(b_ref, F, HW):
    """Zero the front/back halos of the flat image buffer (data lives at [F, F+HW))."""
    C, LB = b_ref.shape
    b_ref[:, :F] = jnp.zeros((C, F), jnp.float32)
    b_ref[:, F + HW:] = jnp.zeros((C, LB - F - HW), jnp.float32)


def _conv3x3_vpu(b_ref, w_ref, m_ref, *, W, HW, F):
    """3x3 SAME conv on a flat row-major image held in a zero-haloed VMEM buffer.

    b_ref : (Cin, LB) f32 VMEM scratch; the flattened H*W image starts at lane F
            (F is 128-aligned, >= W+1 zeros sit on either side).
    w_ref : (9*Cin, Cout, 1) f32; row (dh*3+dw)*Cin + ci holds the per-output-
            channel weight column for that tap / input channel.
    m_ref : (2, HW) f32; row 0 masks left-column wrap (dw=0), row 1 right (dw=2).
    Returns (Cout, HW) f32, accumulated in registers (no VMEM round trips).
    """
    cin = b_ref.shape[0]
    base = F - (W + 1)                      # slice start for tap (dh=0, dw=0)
    acc_dw = [None, None, None]
    for dh in range(3):
        for dw in range(3):
            s = base + dh * W + dw
            sh = b_ref[:, s:s + HW]         # (Cin, HW) shifted view of the image
            for ci in range(cin):
                col = w_ref[(dh * 3 + dw) * cin + ci]          # (Cout, 1)
                term = col * sh[ci:ci + 1, :]                  # (Cout, HW)
                acc_dw[dw] = term if acc_dw[dw] is None else acc_dw[dw] + term
    # kill contributions that wrapped across row boundaries
    return acc_dw[0] * m_ref[0:1, :] + acc_dw[1] + acc_dw[2] * m_ref[1:2, :]


def _store_stats(st_ref, y, inv_hw):
    """Per-image, per-channel partial BN stats: [mean, sum of squared deviations]."""
    mu = jnp.sum(y, axis=1, keepdims=True) * inv_hw            # (C, 1)
    d = y - mu
    st_ref[0, :, 0:1] = mu
    st_ref[0, :, 1:2] = jnp.sum(d * d, axis=1, keepdims=True)


# ---------------------------------------------------------------------------
# Pallas kernels (grid = (N,), one image per program, "parallel")
# ---------------------------------------------------------------------------
def _conv1_kernel(x_ref, w_ref, m_ref, y1_ref, st1_ref, b_ref, *, W, HW, F):
    _set_halo_zero(b_ref, F, HW)
    b_ref[:, F:F + HW] = x_ref[0]                              # 128-aligned store
    y = _conv3x3_vpu(b_ref, w_ref, m_ref, W=W, HW=HW, F=F)     # (C, HW) f32
    y1_ref[0] = y.astype(jnp.bfloat16)                         # bf16 intermediate
    _store_stats(st1_ref, y, 1.0 / HW)                         # stats from f32


def _bn1_prelu_conv2_kernel(y1_ref, p1_ref, w_ref, m_ref, y2_ref, st2_ref, b_ref,
                            *, W, HW, F):
    _set_halo_zero(b_ref, F, HW)
    scale = p1_ref[:, 0:1]
    shift = p1_ref[:, 1:2]
    alpha = p1_ref[:, 2:3]
    r = y1_ref[0].astype(jnp.float32) * scale + shift          # BN1 (folded on host)
    r = jnp.where(r >= 0.0, r, alpha * r)                      # PReLU
    b_ref[:, F:F + HW] = r                                     # conv2 input, zero halo
    y = _conv3x3_vpu(b_ref, w_ref, m_ref, W=W, HW=HW, F=F)
    y2_ref[0] = y.astype(jnp.bfloat16)
    _store_stats(st2_ref, y, 1.0 / HW)


def _bn2_residual_kernel(x_ref, y2_ref, p2_ref, o_ref):
    scale = p2_ref[:, 0:1]
    shift = p2_ref[:, 1:2]
    o_ref[0] = x_ref[0] + y2_ref[0].astype(jnp.float32) * scale + shift


# ---------------------------------------------------------------------------
# Host-side BN statistics fold (tiny (N, C, 2) arrays, plain JAX)
# ---------------------------------------------------------------------------
def _fold_bn(st, gamma, beta, hw):
    mu_i = st[:, :, 0]                                         # (N, C) per-image means
    ssq_i = st[:, :, 1]                                        # (N, C) per-image SS
    n = st.shape[0]
    mean = jnp.mean(mu_i, axis=0)                              # (C,)
    var = (jnp.sum(ssq_i, axis=0) + hw * jnp.sum((mu_i - mean) ** 2, axis=0)) / (n * hw)
    scale = gamma * lax.rsqrt(var + BN_EPS)
    shift = beta - mean * scale
    return scale, shift


# ---------------------------------------------------------------------------
# Wrapper: NCHW in / NCHW out, no transposes, no padded HBM copies
# ---------------------------------------------------------------------------
def residual_block(x_nchw, params):
    (w1, b1, g1, bt1, a, w2, b2, g2, bt2) = params
    # b1/b2 intentionally unused: conv bias is exactly cancelled by the
    # training-mode BN mean subtraction (dead compute + DMA otherwise).
    del b1, b2
    N, C, H, W = x_nchw.shape
    HW = H * W
    F = _round_up(W + 1, 128)          # 128-aligned start of the image in the buffer
    LB = F + HW + (W + 1)              # buffer length (>= W+1 zeros each side)

    xf = x_nchw.reshape(N, C, HW).astype(jnp.float32)          # free reshape
    # weights as per-tap (Cout, 1) columns: row (dh*3+dw)*C + ci
    w1col = w1.reshape(9 * C, C)[:, :, None].astype(jnp.float32)
    w2col = w2.reshape(9 * C, C)[:, :, None].astype(jnp.float32)
    # lane-dense column-validity masks (kill row-boundary wrap for dw=0 / dw=2 taps)
    col = jnp.arange(HW, dtype=jnp.int32) % W
    masks = jnp.stack([(col != 0), (col != W - 1)], axis=0).astype(jnp.float32)

    cparams = pltpu.CompilerParams(
        dimension_semantics=("parallel",),                     # megacore sharding
        vmem_limit_bytes=_vmem_limit_bytes(),
    )

    img_spec = lambda: pl.BlockSpec((1, C, HW), lambda n: (n, 0, 0))
    st_spec = lambda: pl.BlockSpec((1, C, 2), lambda n: (n, 0, 0))

    def whole(shape):
        return pl.BlockSpec(shape, lambda n: (0,) * len(shape))

    # ---- pass 1: conv1 + per-image partial BN1 stats -----------------------
    y1, st1 = pl.pallas_call(
        functools.partial(_conv1_kernel, W=W, HW=HW, F=F),
        grid=(N,),
        in_specs=[img_spec(), whole((9 * C, C, 1)), whole((2, HW))],
        out_specs=[img_spec(), st_spec()],
        out_shape=(jax.ShapeDtypeStruct((N, C, HW), jnp.bfloat16),
                   jax.ShapeDtypeStruct((N, C, 2), jnp.float32)),
        scratch_shapes=[pltpu.VMEM((C, LB), jnp.float32)],
        compiler_params=cparams,
    )(xf, w1col, masks)

    # fold BN1 batch statistics once on the host (tiny arrays)
    scale1, shift1 = _fold_bn(st1, g1, bt1, HW)
    p1 = jnp.stack([scale1, shift1, jnp.broadcast_to(a, (C,))], axis=1)    # (C, 3)

    # ---- pass 2: BN1 + PReLU + conv2 + per-image partial BN2 stats (fused) --
    y2, st2 = pl.pallas_call(
        functools.partial(_bn1_prelu_conv2_kernel, W=W, HW=HW, F=F),
        grid=(N,),
        in_specs=[img_spec(), whole((C, 3)), whole((9 * C, C, 1)), whole((2, HW))],
        out_specs=[img_spec(), st_spec()],
        out_shape=(jax.ShapeDtypeStruct((N, C, HW), jnp.bfloat16),
                   jax.ShapeDtypeStruct((N, C, 2), jnp.float32)),
        scratch_shapes=[pltpu.VMEM((C, LB), jnp.float32)],
        compiler_params=cparams,
    )(y1, p1, w2col, masks)

    scale2, shift2 = _fold_bn(st2, g2, bt2, HW)
    p2 = jnp.stack([scale2, shift2], axis=1)                               # (C, 2)

    # ---- pass 3: BN2 + residual add (aliased, pure streaming) --------------
    out = pl.pallas_call(
        _bn2_residual_kernel,
        grid=(N,),
        in_specs=[img_spec(), img_spec(), whole((C, 2))],
        out_specs=img_spec(),
        out_shape=jax.ShapeDtypeStruct((N, C, HW), jnp.float32),
        input_output_aliases={0: 0},
        compiler_params=cparams,
    )(xf, y2, p2)

    return out.reshape(N, C, H, W)                             # free reshape, NCHW


# ---------------------------------------------------------------------------
# Deterministic parameter init (shapes follow the nn.Module)
# ---------------------------------------------------------------------------
def init_params(key, C):
    k1, k2, k3, k4, k5, k6, k7, k8 = jax.random.split(key, 8)
    w1 = jax.random.normal(k1, (3, 3, C, C), jnp.float32) * 0.1   # HWIO
    b1 = jax.random.normal(k2, (C,), jnp.float32) * 0.1
    g1 = 1.0 + 0.1 * jax.random.normal(k3, (C,), jnp.float32)     # bn1 weight
    bt1 = 0.1 * jax.random.normal(k4, (C,), jnp.float32)          # bn1 bias
    a = jnp.array([0.25], jnp.float32)                            # PReLU default
    w2 = jax.random.normal(k5, (3, 3, C, C), jnp.float32) * 0.1
    b2 = jax.random.normal(k6, (C,), jnp.float32) * 0.1
    g2 = 1.0 + 0.1 * jax.random.normal(k7, (C,), jnp.float32)
    bt2 = 0.1 * jax.random.normal(k8, (C,), jnp.float32)
    return (w1, b1, g1, bt1, a, w2, b2, g2, bt2)


# ---------------------------------------------------------------------------
# Pure-JAX reference (keeps the conv biases; they cancel under training BN)
# ---------------------------------------------------------------------------
def reference_forward(x_nchw, params):
    (w1, b1, g1, bt1, a, w2, b2, g2, bt2) = params
    x = jnp.transpose(x_nchw, (0, 2, 3, 1)).astype(jnp.float32)

    def conv(x, w, b):
        y = jax.lax.conv_general_dilated(
            x, w, window_strides=(1, 1), padding="SAME",
            dimension_numbers=("NHWC", "HWIO", "NHWC"))
        return y + b

    def bn(y, g, bt):
        m = jnp.mean(y, axis=(0, 1, 2), keepdims=True)
        v = jnp.mean((y - m) ** 2, axis=(0, 1, 2), keepdims=True)
        return (y - m) * jax.lax.rsqrt(v + BN_EPS) * g + bt

    r = bn(conv(x, w1, b1), g1, bt1)
    r = jnp.where(r >= 0.0, r, a[0] * r)
    r = bn(conv(r, w2, b2), g2, bt2)
    out = x + r
    return jnp.transpose(out, (0, 3, 1, 2))


if __name__ == "__main__":
    key = jax.random.PRNGKey(0)
    kx, kp = jax.random.split(key)

    N, C, H, W = 2, 4, 16, 16                    # small NCHW input, like PyTorch
    x = jax.random.normal(kx, (N, C, H, W), jnp.float32)
    params = init_params(kp, C)

    fwd = jax.jit(residual_block)
    out = jax.block_until_ready(fwd(x, params))

    ref = jax.block_until_ready(reference_forward(x, params))
    # bf16 inter-pass intermediates (f32 compute & statistics) -> loose tolerance
    np.testing.assert_allclose(np.asarray(out), np.asarray(ref),
                               rtol=2e-2, atol=2e-2)
    assert out.shape == (N, C, H, W)

    print("KERNEL_OK")
</pallas_src>

<mosaic_0001>
module attributes {stable_mosaic.version = 11 : i64} {
  func.func @_conv1_kernel(%arg0: i32, %arg1: memref<1x4x256xf32, #tpu.memory_space<vmem>>, %arg2: memref<36x4x1xf32, #tpu.memory_space<vmem>>, %arg3: memref<2x256xf32, #tpu.memory_space<vmem>>, %arg4: memref<1x4x256xbf16, #tpu.memory_space<vmem>>, %arg5: memref<1x4x2xf32, #tpu.memory_space<vmem>>, %arg6: memref<4x401xf32, #tpu.memory_space<vmem>>) attributes {dimension_semantics = [#tpu.dimension_semantics<parallel>], iteration_bounds = array<i64: 2>, scalar_prefetch = 0 : i64, scratch_operands = 1 : i64, tpu.core_type = #tpu.core_type<tc>, window_params = [{transform_indices = @transform_0, window_bounds = array<i64: 1, 4, 256>}, {pipeline_mode = #tpu.pipeline_mode<synchronous>, transform_indices = @transform_1, window_bounds = array<i64: 36, 4, 1>}, {pipeline_mode = #tpu.pipeline_mode<synchronous>, transform_indices = @transform_2, window_bounds = array<i64: 2, 256>}, {transform_indices = @transform_3, window_bounds = array<i64: 1, 4, 256>}, {transform_indices = @transform_4, window_bounds = array<i64: 1, 4, 2>}]} {
    %cst = arith.constant 0.000000e+00 : f32
    %0 = vector.broadcast %cst : f32 to vector<4x128xf32>
    %c0 = arith.constant 0 : index
    %c0_0 = arith.constant 0 : index
    %1 = vector.load %arg6[%c0, %c0_0] : memref<4x401xf32, #tpu.memory_space<vmem>>, vector<4x128xf32>
    tpu.vector_store %arg6[%c0, %c0_0], %0 {strides = array<i32>} : memref<4x401xf32, #tpu.memory_space<vmem>>, vector<4x128xf32>,
    %cst_1 = arith.constant 0.000000e+00 : f32
    %2 = vector.broadcast %cst_1 : f32 to vector<4x17xf32>
    %c0_2 = arith.constant 0 : index
    %c384 = arith.constant 384 : index
    %3 = vector.load %arg6[%c0_2, %c384] : memref<4x401xf32, #tpu.memory_space<vmem>>, vector<4x17xf32>
    tpu.vector_store %arg6[%c0_2, %c384], %2 {strides = array<i32>} : memref<4x401xf32, #tpu.memory_space<vmem>>, vector<4x17xf32>,
    %c0_3 = arith.constant 0 : index
    %c0_4 = arith.constant 0 : index
    %c0_5 = arith.constant 0 : index
    %4 = vector.load %arg1[%c0_3, %c0_4, %c0_5] : memref<1x4x256xf32, #tpu.memory_space<vmem>>, vector<1x4x256xf32>
    %5 = vector.shape_cast %4 : vector<1x4x256xf32> to vector<4x256xf32>
    %c0_6 = arith.constant 0 : index
    %c128 = arith.constant 128 : index
    %6 = vector.load %arg6[%c0_6, %c128] : memref<4x401xf32, #tpu.memory_space<vmem>>, vector<4x256xf32>
    tpu.vector_store %arg6[%c0_6, %c128], %5 {strides = array<i32>} : memref<4x401xf32, #tpu.memory_space<vmem>>, vector<4x256xf32>,
    %c0_7 = arith.constant 0 : index
    %c111 = arith.constant 111 : index
    %7 = vector.load %arg6[%c0_7, %c111] : memref<4x401xf32, #tpu.memory_space<vmem>>, vector<4x256xf32>
    %c0_8 = arith.constant 0 : index
    %c0_9 = arith.constant 0 : index
    %c0_10 = arith.constant 0 : index
    %8 = vector.load %arg2[%c0_8, %c0_9, %c0_10] : memref<36x4x1xf32, #tpu.memory_space<vmem>>, vector<1x4x1xf32>
    %9 = vector.shape_cast %8 : vector<1x4x1xf32> to vector<4x1xf32>
    %10 = vector.extract_strided_slice %7 {offsets = [0, 0], sizes = [1, 256], strides = [1, 1]} : vector<4x256xf32> to vector<1x256xf32>
    %11 = vector.broadcast %9 : vector<4x1xf32> to vector<4x256xf32>
    %12 = vector.broadcast %10 : vector<1x256xf32> to vector<4x256xf32>
    %13 = arith.mulf %11, %12 : vector<4x256xf32>
    %c1 = arith.constant 1 : index
    %c0_11 = arith.constant 0 : index
    %c0_12 = arith.constant 0 : index
    %14 = vector.load %arg2[%c1, %c0_11, %c0_12] : memref<36x4x1xf32, #tpu.memory_space<vmem>>, vector<1x4x1xf32>
    %15 = vector.shape_cast %14 : vector<1x4x1xf32> to vector<4x1xf32>
    %16 = vector.extract_strided_slice %7 {offsets = [1, 0], sizes = [1, 256], strides = [1, 1]} : vector<4x256xf32> to vector<1x256xf32>
    %17 = vector.broadcast %15 : vector<4x1xf32> to vector<4x256xf32>
    %18 = vector.broadcast %16 : vector<1x256xf32> to vector<4x256xf32>
    %19 = arith.mulf %17, %18 : vector<4x256xf32>
    %20 = arith.addf %13, %19 : vector<4x256xf32>
    %c2 = arith.constant 2 : index
    %c0_13 = arith.constant 0 : index
    %c0_14 = arith.constant 0 : index
    %21 = vector.load %arg2[%c2, %c0_13, %c0_14] : memref<36x4x1xf32, #tpu.memory_space<vmem>>, vector<1x4x1xf32>
    %22 = vector.shape_cast %21 : vector<1x4x1xf32> to vector<4x1xf32>
    %23 = vector.extract_strided_slice %7 {offsets = [2, 0], sizes = [1, 256], strides = [1, 1]} : vector<4x256xf32> to vector<1x256xf32>
    %24 = vector.broadcast %22 : vector<4x1xf32> to vector<4x256xf32>
    %25 = vector.broadcast %23 : vector<1x256xf32> to vector<4x256xf32>
    %26 = arith.mulf %24, %25 : vector<4x256xf32>
    %27 = arith.addf %20, %26 : vector<4x256xf32>
    %c3 = arith.constant 3 : index
    %c0_15 = arith.constant 0 : index
    %c0_16 = arith.constant 0 : index
    %28 = vector.load %arg2[%c3, %c0_15, %c0_16] : memref<36x4x1xf32, #tpu.memory_space<vmem>>, vector<1x4x1xf32>
    %29 = vector.shape_cast %28 : vector<1x4x1xf32> to vector<4x1xf32>
    %30 = vector.extract_strided_slice %7 {offsets = [3, 0], sizes = [1, 256], strides = [1, 1]} : vector<4x256xf32> to vector<1x256xf32>
    %31 = vector.broadcast %29 : vector<4x1xf32> to vector<4x256xf32>
    %32 = vector.broadcast %30 : vector<1x256xf32> to vector<4x256xf32>
    %33 = arith.mulf %31, %32 : vector<4x256xf32>
    %34 = arith.addf %27, %33 : vector<4x256xf32>
    %c0_17 = arith.constant 0 : index
    %c112 = arith.constant 112 : index
    %35 = vector.load %arg6[%c0_17, %c112] : memref<4x401xf32, #tpu.memory_space<vmem>>, vector<4x256xf32>
    %c4 = arith.constant 4 : index
    %c0_18 = arith.constant 0 : index
    %c0_19 = arith.constant 0 : index
    %36 = vector.load %arg2[%c4, %c0_18, %c0_19] : memref<36x4x1xf32, #tpu.memory_space<vmem>>, vector<1x4x1xf32>
    %37 = vector.shape_cast %36 : vector<1x4x1xf32> to vector<4x1xf32>
    %38 = vector.extract_strided_slice %35 {offsets = [0, 0], sizes = [1, 256], strides = [1, 1]} : vector<4x256xf32> to vector<1x256xf32>
    %39 = vector.broadcast %37 : vector<4x1xf32> to vector<4x256xf32>
    %40 = vector.broadcast %38 : vector<1x256xf32> to vector<4x256xf32>
    %41 = arith.mulf %39, %40 : vector<4x256xf32>
    %c5 = arith.constant 5 : index
    %c0_20 = arith.constant 0 : index
    %c0_21 = arith.constant 0 : index
    %42 = vector.load %arg2[%c5, %c0_20, %c0_21] : memref<36x4x1xf32, #tpu.memory_space<vmem>>, vector<1x4x1xf32>
    %43 = vector.shape_cast %42 : vector<1x4x1xf32> to vector<4x1xf32>
    %44 = vector.extract_strided_slice %35 {offsets = [1, 0], sizes = [1, 256], strides = [1, 1]} : vector<4x256xf32> to vector<1x256xf32>
    %45 = vector.broadcast %43 : vector<4x1xf32> to vector<4x256xf32>
    %46 = vector.broadcast %44 : vector<1x256xf32> to vector<4x256xf32>
    %47 = arith.mulf %45, %46 : vector<4x256xf32>
    %48 = arith.addf %41, %47 : vector<4x256xf32>
    %c6 = arith.constant 6 : index
    %c0_22 = arith.constant 0 : index
    %c0_23 = arith.constant 0 : index
    %49 = vector.load %arg2[%c6, %c0_22, %c0_23] : memref<36x4x1xf32, #tpu.memory_space<vmem>>, vector<1x4x1xf32>
    %50 = vector.shape_cast %49 : vector<1x4x1xf32> to vector<4x1xf32>
    %51 = vector.extract_strided_slice %35 {offsets = [2, 0], sizes = [1, 256], strides = [1, 1]} : vector<4x256xf32> to vector<1x256xf32>
    %52 = vector.broadcast %50 : vector<4x1xf32> to vector<4x256xf32>
    %53 = vector.broadcast %51 : vector<1x256xf32> to vector<4x256xf32>
    %54 = arith.mulf %52, %53 : vector<4x256xf32>
    %55 = arith.addf %48, %54 : vector<4x256xf32>
    %c7 = arith.constant 7 : index
    %c0_24 = arith.constant 0 : index
    %c0_25 = arith.constant 0 : index
    %56 = vector.load %arg2[%c7, %c0_24, %c0_25] : memref<36x4x1xf32, #tpu.memory_space<vmem>>, vector<1x4x1xf32>
    %57 = vector.shape_cast %56 : vector<1x4x1xf32> to vector<4x1xf32>
    %58 = vector.extract_strided_slice %35 {offsets = [3, 0], sizes = [1, 256], strides = [1, 1]} : vector<4x256xf32> to vector<1x256xf32>
    %59 = vector.broadcast %57 : vector<4x1xf32> to vector<4x256xf32>
    %60 = vector.broadcast %58 : vector<1x256xf32> to vector<4x256xf32>
    %61 = arith.mulf %59, %60 : vector<4x256xf32>
    %62 = arith.addf %55, %61 : vector<4x256xf32>
    %c0_26 = arith.constant 0 : index
    %c113 = arith.constant 113 : index
    %63 = vector.load %arg6[%c0_26, %c113] : memref<4x401xf32, #tpu.memory_space<vmem>>, vector<4x256xf32>
    %c8 = arith.constant 8 : index
    %c0_27 = arith.constant 0 : index
    %c0_28 = arith.constant 0 : index
    %64 = vector.load %arg2[%c8, %c0_27, %c0_28] : memref<36x4x1xf32, #tpu.memory_space<vmem>>, vector<1x4x1xf32>
    %65 = vector.shape_cast %64 : vector<1x4x1xf32> to vector<4x1xf32>
    %66 = vector.extract_strided_slice %63 {offsets = [0, 0], sizes = [1, 256], strides = [1, 1]} : vector<4x256xf32> to vector<1x256xf32>
    %67 = vector.broadcast %65 : vector<4x1xf32> to vector<4x256xf32>
    %68 = vector.broadcast %66 : vector<1x256xf32> to vector<4x256xf32>
    %69 = arith.mulf %67, %68 : vector<4x256xf32>
    %c9 = arith.constant 9 : index
    %c0_29 = arith.constant 0 : index
    %c0_30 = arith.constant 0 : index
    %70 = vector.load %arg2[%c9, %c0_29, %c0_30] : memref<36x4x1xf32, #tpu.memory_space<vmem>>, vector<1x4x1xf32>
    %71 = vector.shape_cast %70 : vector<1x4x1xf32> to vector<4x1xf32>
    %72 = vector.extract_strided_slice %63 {offsets = [1, 0], sizes = [1, 256], strides = [1, 1]} : vector<4x256xf32> to vector<1x256xf32>
    %73 = vector.broadcast %71 : vector<4x1xf32> to vector<4x256xf32>
    %74 = vector.broadcast %72 : vector<1x256xf32> to vector<4x256xf32>
    %75 = arith.mulf %73, %74 : vector<4x256xf32>
    %76 = arith.addf %69, %75 : vector<4x256xf32>
    %c10 = arith.constant 10 : index
    %c0_31 = arith.constant 0 : index
    %c0_32 = arith.constant 0 : index
    %77 = vector.load %arg2[%c10, %c0_31, %c0_32] : memref<36x4x1xf32, #tpu.memory_space<vmem>>, vector<1x4x1xf32>
    %78 = vector.shape_cast %77 : vector<1x4x1xf32> to vector<4x1xf32>
    %79 = vector.extract_strided_slice %63 {offsets = [2, 0], sizes = [1, 256], strides = [1, 1]} : vector<4x256xf32> to vector<1x256xf32>
    %80 = vector.broadcast %78 : vector<4x1xf32> to vector<4x256xf32>
    %81 = vector.broadcast %79 : vector<1x256xf32> to vector<4x256xf32>
    %82 = arith.mulf %80, %81 : vector<4x256xf32>
    %83 = arith.addf %76, %82 : vector<4x256xf32>
    %c11 = arith.constant 11 : index
    %c0_33 = arith.constant 0 : index
    %c0_34 = arith.constant 0 : index
    %84 = vector.load %arg2[%c11, %c0_33, %c0_34] : memref<36x4x1xf32, #tpu.memory_space<vmem>>, vector<1x4x1xf32>
    %85 = vector.shape_cast %84 : vector<1x4x1xf32> to vector<4x1xf32>
    %86 = vector.extract_strided_slice %63 {offsets = [3, 0], sizes = [1, 256], strides = [1, 1]} : vector<4x256xf32> to vector<1x256xf32>
    %87 = vector.broadcast %85 : vector<4x1xf32> to vector<4x256xf32>
    %88 = vector.broadcast %86 : vector<1x256xf32> to vector<4x256xf32>
    %89 = arith.mulf %87, %88 : vector<4x256xf32>
    %90 = arith.addf %83, %89 : vector<4x256xf32>
    %c0_35 = arith.constant 0 : index
    %c127 = arith.constant 127 : index
    %91 = vector.load %arg6[%c0_35, %c127] : memref<4x401xf32, #tpu.memory_space<vmem>>, vector<4x256xf32>
    %c12 = arith.constant 12 : index
    %c0_36 = arith.constant 0 : index
    %c0_37 = arith.constant 0 : index
    %92 = vector.load %arg2[%c12, %c0_36, %c0_37] : memref<36x4x1xf32, #tpu.memory_space<vmem>>, vector<1x4x1xf32>
    %93 = vector.shape_cast %92 : vector<1x4x1xf32> to vector<4x1xf32>
    %94 = vector.extract_strided_slice %91 {offsets = [0, 0], sizes = [1, 256], strides = [1, 1]} : vector<4x256xf32> to vector<1x256xf32>
    %95 = vector.broadcast %93 : vector<4x1xf32> to vector<4x256xf32>
    %96 = vector.broadcast %94 : vector<1x256xf32> to vector<4x256xf32>
    %97 = arith.mulf %95, %96 : vector<4x256xf32>
    %98 = arith.addf %34, %97 : vector<4x256xf32>
    %c13 = arith.constant 13 : index
    %c0_38 = arith.constant 0 : index
    %c0_39 = arith.constant 0 : index
    %99 = vector.load %arg2[%c13, %c0_38, %c0_39] : memref<36x4x1xf32, #tpu.memory_space<vmem>>, vector<1x4x1xf32>
    %100 = vector.shape_cast %99 : vector<1x4x1xf32> to vector<4x1xf32>
    %101 = vector.extract_strided_slice %91 {offsets = [1, 0], sizes = [1, 256], strides = [1, 1]} : vector<4x256xf32> to vector<1x256xf32>
    %102 = vector.broadcast %100 : vector<4x1xf32> to vector<4x256xf32>
    %103 = vector.broadcast %101 : vector<1x256xf32> to vector<4x256xf32>
    %104 = arith.mulf %102, %103 : vector<4x256xf32>
    %105 = arith.addf %98, %104 : vector<4x256xf32>
    %c14 = arith.constant 14 : index
    %c0_40 = arith.constant 0 : index
    %c0_41 = arith.constant 0 : index
    %106 = vector.load %arg2[%c14, %c0_40, %c0_41] : memref<36x4x1xf32, #tpu.memory_space<vmem>>, vector<1x4x1xf32>
    %107 = vector.shape_cast %106 : vector<1x4x1xf32> to vector<4x1xf32>
    %108 = vector.extract_strided_slice %91 {offsets = [2, 0], sizes = [1, 256], strides = [1, 1]} : vector<4x256xf32> to vector<1x256xf32>
    %109 = vector.broadcast %107 : vector<4x1xf32> to vector<4x256xf32>
    %110 = vector.broadcast %108 : vector<1x256xf32> to vector<4x256xf32>
    %111 = arith.mulf %109, %110 : vector<4x256xf32>
    %112 = arith.addf %105, %111 : vector<4x256xf32>
    %c15 = arith.constant 15 : index
    %c0_42 = arith.constant 0 : index
    %c0_43 = arith.constant 0 : index
    %113 = vector.load %arg2[%c15, %c0_42, %c0_43] : memref<36x4x1xf32, #tpu.memory_space<vmem>>, vector<1x4x1xf32>
    %114 = vector.shape_cast %113 : vector<1x4x1xf32> to vector<4x1xf32>
    %115 = vector.extract_strided_slice %91 {offsets = [3, 0], sizes = [1, 256], strides = [1, 1]} : vector<4x256xf32> to vector<1x256xf32>
    %116 = vector.broadcast %114 : vector<4x1xf32> to vector<4x256xf32>
    %117 = vector.broadcast %115 : vector<1x256xf32> to vector<4x256xf32>
    %118 = arith.mulf %116, %117 : vector<4x256xf32>
    %119 = arith.addf %112, %118 : vector<4x256xf32>
    %c0_44 = arith.constant 0 : index
    %c128_45 = arith.constant 128 : index
    %120 = vector.load %arg6[%c0_44, %c128_45] : memref<4x401xf32, #tpu.memory_space<vmem>>, vector<4x256xf32>
    %c16 = arith.constant 16 : index
    %c0_46 = arith.constant 0 : index
    %c0_47 = arith.constant 0 : index
    %121 = vector.load %arg2[%c16, %c0_46, %c0_47] : memref<36x4x1xf32, #tpu.memory_space<vmem>>, vector<1x4x1xf32>
    %122 = vector.shape_cast %121 : vector<1x4x1xf32> to vector<4x1xf32>
    %123 = vector.extract_strided_slice %120 {offsets = [0, 0], sizes = [1, 256], strides = [1, 1]} : vector<4x256xf32> to vector<1x256xf32>
    %124 = vector.broadcast %122 : vector<4x1xf32> to vector<4x256xf32>
    %125 = vector.broadcast %123 : vector<1x256xf32> to vector<4x256xf32>
    %126 = arith.mulf %124, %125 : vector<4x256xf32>
    %127 = arith.addf %62, %126 : vector<4x256xf32>
    %c17 = arith.constant 17 : index
    %c0_48 = arith.constant 0 : index
    %c0_49 = arith.constant 0 : index
    %128 = vector.load %arg2[%c17, %c0_48, %c0_49] : memref<36x4x1xf32, #tpu.memory_space<vmem>>, vector<1x4x1xf32>
    %129 = vector.shape_cast %128 : vector<1x4x1xf32> to vector<4x1xf32>
    %130 = vector.extract_strided_slice %120 {offsets = [1, 0], sizes = [1, 256], strides = [1, 1]} : vector<4x256xf32> to vector<1x256xf32>
    %131 = vector.broadcast %129 : vector<4x1xf32> to vector<4x256xf32>
    %132 = vector.broadcast %130 : vector<1x256xf32> to vector<4x256xf32>
    %133 = arith.mulf %131, %132 : vector<4x256xf32>
    %134 = arith.addf %127, %133 : vector<4x256xf32>
    %c18 = arith.constant 18 : index
    %c0_50 = arith.constant 0 : index
    %c0_51 = arith.constant 0 : index
    %135 = vector.load %arg2[%c18, %c0_50, %c0_51] : memref<36x4x1xf32, #tpu.memory_space<vmem>>, vector<1x4x1xf32>
    %136 = vector.shape_cast %135 : vector<1x4x1xf32> to vector<4x1xf32>
    %137 = vector.extract_strided_slice %120 {offsets = [2, 0], sizes = [1, 256], strides = [1, 1]} : vector<4x256xf32> to vector<1x256xf32>
    %138 = vector.broadcast %136 : vector<4x1xf32> to vector<4x256xf32>
    %139 = vector.broadcast %137 : vector<1x256xf32> to vector<4x256xf32>
    %140 = arith.mulf %138, %139 : vector<4x256xf32>
    %141 = arith.addf %134, %140 : vector<4x256xf32>
    %c19 = arith.constant 19 : index
    %c0_52 = arith.constant 0 : index
    %c0_53 = arith.constant 0 : index
    %142 = vector.load %arg2[%c19, %c0_52, %c0_53] : memref<36x4x1xf32, #tpu.memory_space<vmem>>, vector<1x4x1xf32>
    %143 = vector.shape_cast %142 : vector<1x4x1xf32> to vector<4x1xf32>
    %144 = vector.extract_strided_slice %120 {offsets = [3, 0], sizes = [1, 256], strides = [1, 1]} : vector<4x256xf32> to vector<1x256xf32>
    %145 = vector.broadcast %143 : vector<4x1xf32> to vector<4x256xf32>
    %146 = vector.broadcast %144 : vector<1x256xf32> to vector<4x256xf32>
    %147 = arith.mulf %145, %146 : vector<4x256xf32>
    %148 = arith.addf %141, %147 : vector<4x256xf32>
    %c0_54 = arith.constant 0 : index
    %c129 = arith.constant 129 : index
    %149 = vector.load %arg6[%c0_54, %c129] : memref<4x401xf32, #tpu.memory_space<vmem>>, vector<4x256xf32>
    %c20 = arith.constant 20 : index
    %c0_55 = arith.constant 0 : index
    %c0_56 = arith.constant 0 : index
    %150 = vector.load %arg2[%c20, %c0_55, %c0_56] : memref<36x4x1xf32, #tpu.memory_space<vmem>>, vector<1x4x1xf32>
    %151 = vector.shape_cast %150 : vector<1x4x1xf32> to vector<4x1xf32>
    %152 = vector.extract_strided_slice %149 {offsets = [0, 0], sizes = [1, 256], strides = [1, 1]} : vector<4x256xf32> to vector<1x256xf32>
    %153 = vector.broadcast %151 : vector<4x1xf32> to vector<4x256xf32>
    %154 = vector.broadcast %152 : vector<1x256xf32> to vector<4x256xf32>
    %155 = arith.mulf %153, %154 : vector<4x256xf32>
    %156 = arith.addf %90, %155 : vector<4x256xf32>
    %c21 = arith.constant 21 : index
    %c0_57 = arith.constant 0 : index
    %c0_58 = arith.constant 0 : index
    %157 = vector.load %arg2[%c21, %c0_57, %c0_58] : memref<36x4x1xf32, #tpu.memory_space<vmem>>, vector<1x4x1xf32>
    %158 = vector.shape_cast %157 : vector<1x4x1xf32> to vector<4x1xf32>
    %159 = vector.extract_strided_slice %149 {offsets = [1, 0], sizes = [1, 256], strides = [1, 1]} : vector<4x256xf32> to vector<1x256xf32>
    %160 = vector.broadcast %158 : vector<4x1xf32> to vector<4x256xf32>
    %161 = vector.broadcast %159 : vector<1x256xf32> to vector<4x256xf32>
    %162 = arith.mulf %160, %161 : vector<4x256xf32>
    %163 = arith.addf %156, %162 : vector<4x256xf32>
    %c22 = arith.constant 22 : index
    %c0_59 = arith.constant 0 : index
    %c0_60 = arith.constant 0 : index
    %164 = vector.load %arg2[%c22, %c0_59, %c0_60] : memref<36x4x1xf32, #tpu.memory_space<vmem>>, vector<1x4x1xf32>
    %165 = vector.shape_cast %164 : vector<1x4x1xf32> to vector<4x1xf32>
    %166 = vector.extract_strided_slice %149 {offsets = [2, 0], sizes = [1, 256], strides = [1, 1]} : vector<4x256xf32> to vector<1x256xf32>
    %167 = vector.broadcast %165 : vector<4x1xf32> to vector<4x256xf32>
    %168 = vector.broadcast %166 : vector<1x256xf32> to vector<4x256xf32>
    %169 = arith.mulf %167, %168 : vector<4x256xf32>
    %170 = arith.addf %163, %169 : vector<4x256xf32>
    %c23 = arith.constant 23 : index
    %c0_61 = arith.constant 0 : index
    %c0_62 = arith.constant 0 : index
    %171 = vector.load %arg2[%c23, %c0_61, %c0_62] : memref<36x4x1xf32, #tpu.memory_space<vmem>>, vector<1x4x1xf32>
    %172 = vector.shape_cast %171 : vector<1x4x1xf32> to vector<4x1xf32>
    %173 = vector.extract_strided_slice %149 {offsets = [3, 0], sizes = [1, 256], strides = [1, 1]} : vector<4x256xf32> to vector<1x256xf32>
    %174 = vector.broadcast %172 : vector<4x1xf32> to vector<4x256xf32>
    %175 = vector.broadcast %173 : vector<1x256xf32> to vector<4x256xf32>
    %176 = arith.mulf %174, %175 : vector<4x256xf32>
    %177 = arith.addf %170, %176 : vector<4x256xf32>
    %c0_63 = arith.constant 0 : index
    %c143 = arith.constant 143 : index
    %178 = vector.load %arg6[%c0_63, %c143] : memref<4x401xf32, #tpu.memory_space<vmem>>, vector<4x256xf32>
    %c24 = arith.constant 24 : index
    %c0_64 = arith.constant 0 : index
    %c0_65 = arith.constant 0 : index
    %179 = vector.load %arg2[%c24, %c0_64, %c0_65] : memref<36x4x1xf32, #tpu.memory_space<vmem>>, vector<1x4x1xf32>
    %180 = vector.shape_cast %179 : vector<1x4x1xf32> to vector<4x1xf32>
    %181 = vector.extract_strided_slice %178 {offsets = [0, 0], sizes = [1, 256], strides = [1, 1]} : vector<4x256xf32> to vector<1x256xf32>
    %182 = vector.broadcast %180 : vector<4x1xf32> to vector<4x256xf32>
    %183 = vector.broadcast %181 : vector<1x256xf32> to vector<4x256xf32>
    %184 = arith.mulf %182, %183 : vector<4x256xf32>
    %185 = arith.addf %119, %184 : vector<4x256xf32>
    %c25 = arith.constant 25 : index
    %c0_66 = arith.constant 0 : index
    %c0_67 = arith.constant 0 : index
    %186 = vector.load %arg2[%c25, %c0_66, %c0_67] : memref<36x4x1xf32, #tpu.memory_space<vmem>>, vector<1x4x1xf32>
    %187 = vector.shape_cast %186 : vector<1x4x1xf32> to vector<4x1xf32>
    %188 = vector.extract_strided_slice %178 {offsets = [1, 0], sizes = [1, 256], strides = [1, 1]} : vector<4x256xf32> to vector<1x256xf32>
    %189 = vector.broadcast %187 : vector<4x1xf32> to vector<4x256xf32>
    %190 = vector.broadcast %188 : vector<1x256xf32> to vector<4x256xf32>
    %191 = arith.mulf %189, %190 : vector<4x256xf32>
    %192 = arith.addf %185, %191 : vector<4x256xf32>
    %c26 = arith.constant 26 : index
    %c0_68 = arith.constant 0 : index
    %c0_69 = arith.constant 0 : index
    %193 = vector.load %arg2[%c26, %c0_68, %c0_69] : memref<36x4x1xf32, #tpu.memory_space<vmem>>, vector<1x4x1xf32>
    %194 = vector.shape_cast %193 : vector<1x4x1xf32> to vector<4x1xf32>
    %195 = vector.extract_strided_slice %178 {offsets = [2, 0], sizes = [1, 256], strides = [1, 1]} : vector<4x256xf32> to vector<1x256xf32>
    %196 = vector.broadcast %194 : vector<4x1xf32> to vector<4x256xf32>
    %197 = vector.broadcast %195 : vector<1x256xf32> to vector<4x256xf32>
    %198 = arith.mulf %196, %197 : vector<4x256xf32>
    %199 = arith.addf %192, %198 : vector<4x256xf32>
    %c27 = arith.constant 27 : index
    %c0_70 = arith.constant 0 : index
    %c0_71 = arith.constant 0 : index
    %200 = vector.load %arg2[%c27, %c0_70, %c0_71] : memref<36x4x1xf32, #tpu.memory_space<vmem>>, vector<1x4x1xf32>
    %201 = vector.shape_cast %200 : vector<1x4x1xf32> to vector<4x1xf32>
    %202 = vector.extract_strided_slice %178 {offsets = [3, 0], sizes = [1, 256], strides = [1, 1]} : vector<4x256xf32> to vector<1x256xf32>
    %203 = vector.broadcast %201 : vector<4x1xf32> to vector<4x256xf32>
    %204 = vector.broadcast %202 : vector<1x256xf32> to vector<4x256xf32>
    %205 = arith.mulf %203, %204 : vector<4x256xf32>
    %206 = arith.addf %199, %205 : vector<4x256xf32>
    %c0_72 = arith.constant 0 : index
    %c144 = arith.constant 144 : index
    %207 = vector.load %arg6[%c0_72, %c144] : memref<4x401xf32, #tpu.memory_space<vmem>>, vector<4x256xf32>
    %c28 = arith.constant 28 : index
    %c0_73 = arith.constant 0 : index
    %c0_74 = arith.constant 0 : index
    %208 = vector.load %arg2[%c28, %c0_73, %c0_74] : memref<36x4x1xf32, #tpu.memory_space<vmem>>, vector<1x4x1xf32>
    %209 = vector.shape_cast %208 : vector<1x4x1xf32> to vector<4x1xf32>
    %210 = vector.extract_strided_slice %207 {offsets = [0, 0], sizes = [1, 256], strides = [1, 1]} : vector<4x256xf32> to vector<1x256xf32>
    %211 = vector.broadcast %209 : vector<4x1xf32> to vector<4x256xf32>
    %212 = vector.broadcast %210 : vector<1x256xf32> to vector<4x256xf32>
    %213 = arith.mulf %211, %212 : vector<4x256xf32>
    %214 = arith.addf %148, %213 : vector<4x256xf32>
    %c29 = arith.constant 29 : index
    %c0_75 = arith.constant 0 : index
    %c0_76 = arith.constant 0 : index
    %215 = vector.load %arg2[%c29, %c0_75, %c0_76] : memref<36x4x1xf32, #tpu.memory_space<vmem>>, vector<1x4x1xf32>
    %216 = vector.shape_cast %215 : vector<1x4x1xf32> to vector<4x1xf32>
    %217 = vector.extract_strided_slice %207 {offsets = [1, 0], sizes = [1, 256], strides = [1, 1]} : vector<4x256xf32> to vector<1x256xf32>
    %218 = vector.broadcast %216 : vector<4x1xf32> to vector<4x256xf32>
    %219 = vector.broadcast %217 : vector<1x256xf32> to vector<4x256xf32>
    %220 = arith.mulf %218, %219 : vector<4x256xf32>
    %221 = arith.addf %214, %220 : vector<4x256xf32>
    %c30 = arith.constant 30 : index
    %c0_77 = arith.constant 0 : index
    %c0_78 = arith.constant 0 : index
    %222 = vector.load %arg2[%c30, %c0_77, %c0_78] : memref<36x4x1xf32, #tpu.memory_space<vmem>>, vector<1x4x1xf32>
    %223 = vector.shape_cast %222 : vector<1x4x1xf32> to vector<4x1xf32>
    %224 = vector.extract_strided_slice %207 {offsets = [2, 0], sizes = [1, 256], strides = [1, 1]} : vector<4x256xf32> to vector<1x256xf32>
    %225 = vector.broadcast %223 : vector<4x1xf32> to vector<4x256xf32>
    %226 = vector.broadcast %224 : vector<1x256xf32> to vector<4x256xf32>
    %227 = arith.mulf %225, %226 : vector<4x256xf32>
    %228 = arith.addf %221, %227 : vector<4x256xf32>
    %c31 = arith.constant 31 : index
    %c0_79 = arith.constant 0 : index
    %c0_80 = arith.constant 0 : index
    %229 = vector.load %arg2[%c31, %c0_79, %c0_80] : memref<36x4x1xf32, #tpu.memory_space<vmem>>, vector<1x4x1xf32>
    %230 = vector.shape_cast %229 : vector<1x4x1xf32> to vector<4x1xf32>
    %231 = vector.extract_strided_slice %207 {offsets = [3, 0], sizes = [1, 256], strides = [1, 1]} : vector<4x256xf32> to vector<1x256xf32>
    %232 = vector.broadcast %230 : vector<4x1xf32> to vector<4x256xf32>
    %233 = vector.broadcast %231 : vector<1x256xf32> to vector<4x256xf32>
    %234 = arith.mulf %232, %233 : vector<4x256xf32>
    %235 = arith.addf %228, %234 : vector<4x256xf32>
    %c0_81 = arith.constant 0 : index
    %c145 = arith.constant 145 : index
    %236 = vector.load %arg6[%c0_81, %c145] : memref<4x401xf32, #tpu.memory_space<vmem>>, vector<4x256xf32>
    %c32 = arith.constant 32 : index
    %c0_82 = arith.constant 0 : index
    %c0_83 = arith.constant 0 : index
    %237 = vector.load %arg2[%c32, %c0_82, %c0_83] : memref<36x4x1xf32, #tpu.memory_space<vmem>>, vector<1x4x1xf32>
    %238 = vector.shape_cast %237 : vector<1x4x1xf32> to vector<4x1xf32>
    %239 = vector.extract_strided_slice %236 {offsets = [0, 0], sizes = [1, 256], strides = [1, 1]} : vector<4x256xf32> to vector<1x256xf32>
    %240 = vector.broadcast %238 : vector<4x1xf32> to vector<4x256xf32>
    %241 = vector.broadcast %239 : vector<1x256xf32> to vector<4x256xf32>
    %242 = arith.mulf %240, %241 : vector<4x256xf32>
    %243 = arith.addf %177, %242 : vector<4x256xf32>
    %c33 = arith.constant 33 : index
    %c0_84 = arith.constant 0 : index
    %c0_85 = arith.constant 0 : index
    %244 = vector.load %arg2[%c33, %c0_84, %c0_85] : memref<36x4x1xf32, #tpu.memory_space<vmem>>, vector<1x4x1xf32>
    %245 = vector.shape_cast %244 : vector<1x4x1xf32> to vector<4x1xf32>
    %246 = vector.extract_strided_slice %236 {offsets = [1, 0], sizes = [1, 256], strides = [1, 1]} : vector<4x256xf32> to vector<1x256xf32>
    %247 = vector.broadcast %245 : vector<4x1xf32> to vector<4x256xf32>
    %248 = vector.broadcast %246 : vector<1x256xf32> to vector<4x256xf32>
    %249 = arith.mulf %247, %248 : vector<4x256xf32>
    %250 = arith.addf %243, %249 : vector<4x256xf32>
    %c34 = arith.constant 34 : index
    %c0_86 = arith.constant 0 : index
    %c0_87 = arith.constant 0 : index
    %251 = vector.load %arg2[%c34, %c0_86, %c0_87] : memref<36x4x1xf32, #tpu.memory_space<vmem>>, vector<1x4x1xf32>
    %252 = vector.shape_cast %251 : vector<1x4x1xf32> to vector<4x1xf32>
    %253 = vector.extract_strided_slice %236 {offsets = [2, 0], sizes = [1, 256], strides = [1, 1]} : vector<4x256xf32> to vector<1x256xf32>
    %254 = vector.broadcast %252 : vector<4x1xf32> to vector<4x256xf32>
    %255 = vector.broadcast %253 : vector<1x256xf32> to vector<4x256xf32>
    %256 = arith.mulf %254, %255 : vector<4x256xf32>
    %257 = arith.addf %250, %256 : vector<4x256xf32>
    %c35 = arith.constant 35 : index
    %c0_88 = arith.constant 0 : index
    %c0_89 = arith.constant 0 : index
    %258 = vector.load %arg2[%c35, %c0_88, %c0_89] : memref<36x4x1xf32, #tpu.memory_space<vmem>>, vector<1x4x1xf32>
    %259 = vector.shape_cast %258 : vector<1x4x1xf32> to vector<4x1xf32>
    %260 = vector.extract_strided_slice %236 {offsets = [3, 0], sizes = [1, 256], strides = [1, 1]} : vector<4x256xf32> to vector<1x256xf32>
    %261 = vector.broadcast %259 : vector<4x1xf32> to vector<4x256xf32>
    %262 = vector.broadcast %260 : vector<1x256xf32> to vector<4x256xf32>
    %263 = arith.mulf %261, %262 : vector<4x256xf32>
    %264 = arith.addf %257, %263 : vector<4x256xf32>
    %c0_90 = arith.constant 0 : index
    %c0_91 = arith.constant 0 : index
    %265 = vector.load %arg3[%c0_90, %c0_91] : memref<2x256xf32, #tpu.memory_space<vmem>>, vector<1x256xf32>
    %266 = vector.broadcast %265 : vector<1x256xf32> to vector<4x256xf32>
    %267 = arith.mulf %206, %266 : vector<4x256xf32>
    %268 = arith.addf %267, %235 : vector<4x256xf32>
    %c1_92 = arith.constant 1 : index
    %c0_93 = arith.constant 0 : index
    %269 = vector.load %arg3[%c1_92, %c0_93] : memref<2x256xf32, #tpu.memory_space<vmem>>, vector<1x256xf32>
    %270 = vector.broadcast %269 : vector<1x256xf32> to vector<4x256xf32>
    %271 = arith.mulf %264, %270 : vector<4x256xf32>
    %272 = arith.addf %268, %271 : vector<4x256xf32>
    %273 = arith.truncf %272 : vector<4x256xf32> to vector<4x256xbf16>
    %c0_94 = arith.constant 0 : index
    %c0_95 = arith.constant 0 : index
    %c0_96 = arith.constant 0 : index
    %274 = vector.load %arg4[%c0_94, %c0_95, %c0_96] : memref<1x4x256xbf16, #tpu.memory_space<vmem>>, vector<1x4x256xbf16>
    %275 = vector.shape_cast %274 : vector<1x4x256xbf16> to vector<4x256xbf16>
    %276 = vector.shape_cast %273 : vector<4x256xbf16> to vector<1x4x256xbf16>
    tpu.vector_store %arg4[%c0_94, %c0_95, %c0_96], %276 {strides = array<i32>} : memref<1x4x256xbf16, #tpu.memory_space<vmem>>, vector<1x4x256xbf16>,
    %cst_97 = arith.constant dense<0.000000e+00> : vector<4xf32>
    %277 = vector.multi_reduction <add>, %272, %cst_97 [1] : vector<4x256xf32> to vector<4xf32>
    %278 = vector.shape_cast %277 : vector<4xf32> to vector<4x1xf32>
    %cst_98 = arith.constant 3.906250e-03 : f32
    %279 = vector.broadcast %cst_98 : f32 to vector<4x1xf32>
    %280 = arith.mulf %278, %279 : vector<4x1xf32>
    %281 = vector.broadcast %280 : vector<4x1xf32> to vector<4x256xf32>
    %282 = arith.subf %272, %281 : vector<4x256xf32>
    %c0_99 = arith.constant 0 : index
    %c0_100 = arith.constant 0 : index
    %c0_101 = arith.constant 0 : index
    %283 = vector.load %arg5[%c0_99, %c0_100, %c0_101] : memref<1x4x2xf32, #tpu.memory_space<vmem>>, vector<1x4x1xf32>
    %284 = vector.shape_cast %283 : vector<1x4x1xf32> to vector<4x1xf32>
    %285 = vector.shape_cast %280 : vector<4x1xf32> to vector<1x4x1xf32>
    tpu.vector_store %arg5[%c0_99, %c0_100, %c0_101], %285 {strides = array<i32>} : memref<1x4x2xf32, #tpu.memory_space<vmem>>, vector<1x4x1xf32>,
    %286 = arith.mulf %282, %282 : vector<4x256xf32>
    %cst_102 = arith.constant dense<0.000000e+00> : vector<4xf32>
    %287 = vector.multi_reduction <add>, %286, %cst_102 [1] : vector<4x256xf32> to vector<4xf32>
    %288 = vector.shape_cast %287 : vector<4xf32> to vector<4x1xf32>
    %c0_103 = arith.constant 0 : index
    %c0_104 = arith.constant 0 : index
    %c1_105 = arith.constant 1 : index
    %289 = vector.load %arg5[%c0_103, %c0_104, %c1_105] : memref<1x4x2xf32, #tpu.memory_space<vmem>>, vector<1x4x1xf32>
    %290 = vector.shape_cast %289 : vector<1x4x1xf32> to vector<4x1xf32>
    %291 = vector.shape_cast %288 : vector<4x1xf32> to vector<1x4x1xf32>
    tpu.vector_store %arg5[%c0_103, %c0_104, %c1_105], %291 {strides = array<i32>} : memref<1x4x2xf32, #tpu.memory_space<vmem>>, vector<1x4x1xf32>,
    return
  }
  func.func @transform_0(%arg0: i32) -> (i32, i32, i32) {
    %c0_i32 = arith.constant 0 : i32
    %c0_i32_0 = arith.constant 0 : i32
    %c0_i32_1 = arith.constant 0 : i32
    return %arg0, %c0_i32, %c0_i32_0 : i32, i32, i32
  }
  func.func @transform_1(%arg0: i32) -> (i32, i32, i32) {
    %c0_i32 = arith.constant 0 : i32
    %c0_i32_0 = arith.constant 0 : i32
    %c0_i32_1 = arith.constant 0 : i32
    %c0_i32_2 = arith.constant 0 : i32
    return %c0_i32, %c0_i32_0, %c0_i32_1 : i32, i32, i32
  }
  func.func @transform_2(%arg0: i32) -> (i32, i32) {
    %c0_i32 = arith.constant 0 : i32
    %c0_i32_0 = arith.constant 0 : i32
    %c0_i32_1 = arith.constant 0 : i32
    return %c0_i32, %c0_i32_0 : i32, i32
  }
  func.func @transform_3(%arg0: i32) -> (i32, i32, i32) {
    %c0_i32 = arith.constant 0 : i32
    %c0_i32_0 = arith.constant 0 : i32
    %c0_i32_1 = arith.constant 0 : i32
    return %arg0, %c0_i32, %c0_i32_0 : i32, i32, i32
  }
  func.func @transform_4(%arg0: i32) -> (i32, i32, i32) {
    %c0_i32 = arith.constant 0 : i32
    %c0_i32_0 = arith.constant 0 : i32
    %c0_i32_1 = arith.constant 0 : i32
    return %arg0, %c0_i32, %c0_i32_0 : i32, i32, i32
  }
}

module attributes {stable_mosaic.version = 11 : i64} {
  func.func @_bn2_residual_kernel(%arg0: i32, %arg1: memref<1x4x256xf32, #tpu.memory_space<vmem>>, %arg2: memref<1x4x256xbf16, #tpu.memory_space<vmem>>, %arg3: memref<4x2xf32, #tpu.memory_space<vmem>>, %arg4: memref<1x4x256xf32, #tpu.memory_space<vmem>>) attributes {dimension_semantics = [#tpu.dimension_semantics<parallel>], iteration_bounds = array<i64: 2>, scalar_prefetch = 0 : i64, scratch_operands = 0 : i64, tpu.core_type = #tpu.core_type<tc>, window_params = [{transform_indices = @transform_0, window_bounds = array<i64: 1, 4, 256>}, {transform_indices = @transform_1, window_bounds = array<i64: 1, 4, 256>}, {pipeline_mode = #tpu.pipeline_mode<synchronous>, transform_indices = @transform_2, window_bounds = array<i64: 4, 2>}, {transform_indices = @transform_3, window_bounds = array<i64: 1, 4, 256>}]} {
    %c0 = arith.constant 0 : index
    %c0_0 = arith.constant 0 : index
    %0 = vector.load %arg3[%c0, %c0_0] : memref<4x2xf32, #tpu.memory_space<vmem>>, vector<4x1xf32>
    %c0_1 = arith.constant 0 : index
    %c1 = arith.constant 1 : index
    %1 = vector.load %arg3[%c0_1, %c1] : memref<4x2xf32, #tpu.memory_space<vmem>>, vector<4x1xf32>
    %c0_2 = arith.constant 0 : index
    %c0_3 = arith.constant 0 : index
    %c0_4 = arith.constant 0 : index
    %2 = vector.load %arg1[%c0_2, %c0_3, %c0_4] : memref<1x4x256xf32, #tpu.memory_space<vmem>>, vector<1x4x256xf32>
    %3 = vector.shape_cast %2 : vector<1x4x256xf32> to vector<4x256xf32>
    %c0_5 = arith.constant 0 : index
    %c0_6 = arith.constant 0 : index
    %c0_7 = arith.constant 0 : index
    %4 = vector.load %arg2[%c0_5, %c0_6, %c0_7] : memref<1x4x256xbf16, #tpu.memory_space<vmem>>, vector<1x4x256xbf16>
    %5 = vector.shape_cast %4 : vector<1x4x256xbf16> to vector<4x256xbf16>
    %6 = arith.extf %5 : vector<4x256xbf16> to vector<4x256xf32>
    %7 = vector.broadcast %0 : vector<4x1xf32> to vector<4x256xf32>
    %8 = arith.mulf %6, %7 : vector<4x256xf32>
    %9 = arith.addf %3, %8 : vector<4x256xf32>
    %10 = vector.broadcast %1 : vector<4x1xf32> to vector<4x256xf32>
    %11 = arith.addf %9, %10 : vector<4x256xf32>
    %c0_8 = arith.constant 0 : index
    %c0_9 = arith.constant 0 : index
    %c0_10 = arith.constant 0 : index
    %12 = vector.load %arg4[%c0_8, %c0_9, %c0_10] : memref<1x4x256xf32, #tpu.memory_space<vmem>>, vector<1x4x256xf32>
    %13 = vector.shape_cast %12 : vector<1x4x256xf32> to vector<4x256xf32>
    %14 = vector.shape_cast %11 : vector<4x256xf32> to vector<1x4x256xf32>
    tpu.vector_store %arg4[%c0_8, %c0_9, %c0_10], %14 {strides = array<i32>} : memref<1x4x256xf32, #tpu.memory_space<vmem>>, vector<1x4x256xf32>,
    return
  }
  func.func @transform_0(%arg0: i32) -> (i32, i32, i32) {
    %c0_i32 = arith.constant 0 : i32
    %c0_i32_0 = arith.constant 0 : i32
    %c0_i32_1 = arith.constant 0 : i32
    return %arg0, %c0_i32, %c0_i32_0 : i32, i32, i32
  }
  func.func @transform_1(%arg0: i32) -> (i32, i32, i32) {
    %c0_i32 = arith.constant 0 : i32
    %c0_i32_0 = arith.constant 0 : i32
    %c0_i32_1 = arith.constant 0 : i32
    return %arg0, %c0_i32, %c0_i32_0 : i32, i32, i32
  }
  func.func @transform_2(%arg0: i32) -> (i32, i32) {
    %c0_i32 = arith.constant 0 : i32
    %c0_i32_0 = arith.constant 0 : i32
    %c0_i32_1 = arith.constant 0 : i32
    return %c0_i32, %c0_i32_0 : i32, i32
  }
  func.func @transform_3(%arg0: i32) -> (i32, i32, i32) {
    %c0_i32 = arith.constant 0 : i32
    %c0_i32_0 = arith.constant 0 : i32
    %c0_i32_1 = arith.constant 0 : i32
    return %arg0, %c0_i32, %c0_i32_0 : i32, i32, i32
  }
}

module attributes {stable_mosaic.version = 11 : i64} {
  func.func @_bn1_prelu_conv2_kernel(%arg0: i32, %arg1: memref<1x4x256xbf16, #tpu.memory_space<vmem>>, %arg2: memref<4x3xf32, #tpu.memory_space<vmem>>, %arg3: memref<36x4x1xf32, #tpu.memory_space<vmem>>, %arg4: memref<2x256xf32, #tpu.memory_space<vmem>>, %arg5: memref<1x4x256xbf16, #tpu.memory_space<vmem>>, %arg6: memref<1x4x2xf32, #tpu.memory_space<vmem>>, %arg7: memref<4x401xf32, #tpu.memory_space<vmem>>) attributes {dimension_semantics = [#tpu.dimension_semantics<parallel>], iteration_bounds = array<i64: 2>, scalar_prefetch = 0 : i64, scratch_operands = 1 : i64, tpu.core_type = #tpu.core_type<tc>, window_params = [{transform_indices = @transform_0, window_bounds = array<i64: 1, 4, 256>}, {pipeline_mode = #tpu.pipeline_mode<synchronous>, transform_indices = @transform_1, window_bounds = array<i64: 4, 3>}, {pipeline_mode = #tpu.pipeline_mode<synchronous>, transform_indices = @transform_2, window_bounds = array<i64: 36, 4, 1>}, {pipeline_mode = #tpu.pipeline_mode<synchronous>, transform_indices = @transform_3, window_bounds = array<i64: 2, 256>}, {transform_indices = @transform_4, window_bounds = array<i64: 1, 4, 256>}, {transform_indices = @transform_5, window_bounds = array<i64: 1, 4, 2>}]} {
    %cst = arith.constant 0.000000e+00 : f32
    %0 = vector.broadcast %cst : f32 to vector<4x128xf32>
    %c0 = arith.constant 0 : index
    %c0_0 = arith.constant 0 : index
    %1 = vector.load %arg7[%c0, %c0_0] : memref<4x401xf32, #tpu.memory_space<vmem>>, vector<4x128xf32>
    tpu.vector_store %arg7[%c0, %c0_0], %0 {strides = array<i32>} : memref<4x401xf32, #tpu.memory_space<vmem>>, vector<4x128xf32>,
    %cst_1 = arith.constant 0.000000e+00 : f32
    %2 = vector.broadcast %cst_1 : f32 to vector<4x17xf32>
    %c0_2 = arith.constant 0 : index
    %c384 = arith.constant 384 : index
    %3 = vector.load %arg7[%c0_2, %c384] : memref<4x401xf32, #tpu.memory_space<vmem>>, vector<4x17xf32>
    tpu.vector_store %arg7[%c0_2, %c384], %2 {strides = array<i32>} : memref<4x401xf32, #tpu.memory_space<vmem>>, vector<4x17xf32>,
    %c0_3 = arith.constant 0 : index
    %c0_4 = arith.constant 0 : index
    %4 = vector.load %arg2[%c0_3, %c0_4] : memref<4x3xf32, #tpu.memory_space<vmem>>, vector<4x1xf32>
    %c0_5 = arith.constant 0 : index
    %c1 = arith.constant 1 : index
    %5 = vector.load %arg2[%c0_5, %c1] : memref<4x3xf32, #tpu.memory_space<vmem>>, vector<4x1xf32>
    %c0_6 = arith.constant 0 : index
    %c2 = arith.constant 2 : index
    %6 = vector.load %arg2[%c0_6, %c2] : memref<4x3xf32, #tpu.memory_space<vmem>>, vector<4x1xf32>
    %c0_7 = arith.constant 0 : index
    %c0_8 = arith.constant 0 : index
    %c0_9 = arith.constant 0 : index
    %7 = vector.load %arg1[%c0_7, %c0_8, %c0_9] : memref<1x4x256xbf16, #tpu.memory_space<vmem>>, vector<1x4x256xbf16>
    %8 = vector.shape_cast %7 : vector<1x4x256xbf16> to vector<4x256xbf16>
    %9 = arith.extf %8 : vector<4x256xbf16> to vector<4x256xf32>
    %10 = vector.broadcast %4 : vector<4x1xf32> to vector<4x256xf32>
    %11 = arith.mulf %9, %10 : vector<4x256xf32>
    %12 = vector.broadcast %5 : vector<4x1xf32> to vector<4x256xf32>
    %13 = arith.addf %11, %12 : vector<4x256xf32>
    %cst_10 = arith.constant 0.000000e+00 : f32
    %14 = vector.broadcast %cst_10 : f32 to vector<4x256xf32>
    %15 = arith.cmpf oge, %13, %14 : vector<4x256xf32>
    %16 = vector.broadcast %6 : vector<4x1xf32> to vector<4x256xf32>
    %17 = arith.mulf %16, %13 : vector<4x256xf32>
    %18 = arith.select %15, %13, %17 : vector<4x256xi1>, vector<4x256xf32>
    %c0_11 = arith.constant 0 : index
    %c128 = arith.constant 128 : index
    %19 = vector.load %arg7[%c0_11, %c128] : memref<4x401xf32, #tpu.memory_space<vmem>>, vector<4x256xf32>
    tpu.vector_store %arg7[%c0_11, %c128], %18 {strides = array<i32>} : memref<4x401xf32, #tpu.memory_space<vmem>>, vector<4x256xf32>,
    %c0_12 = arith.constant 0 : index
    %c111 = arith.constant 111 : index
    %20 = vector.load %arg7[%c0_12, %c111] : memref<4x401xf32, #tpu.memory_space<vmem>>, vector<4x256xf32>
    %c0_13 = arith.constant 0 : index
    %c0_14 = arith.constant 0 : index
    %c0_15 = arith.constant 0 : index
    %21 = vector.load %arg3[%c0_13, %c0_14, %c0_15] : memref<36x4x1xf32, #tpu.memory_space<vmem>>, vector<1x4x1xf32>
    %22 = vector.shape_cast %21 : vector<1x4x1xf32> to vector<4x1xf32>
    %23 = vector.extract_strided_slice %20 {offsets = [0, 0], sizes = [1, 256], strides = [1, 1]} : vector<4x256xf32> to vector<1x256xf32>
    %24 = vector.broadcast %22 : vector<4x1xf32> to vector<4x256xf32>
    %25 = vector.broadcast %23 : vector<1x256xf32> to vector<4x256xf32>
    %26 = arith.mulf %24, %25 : vector<4x256xf32>
    %c1_16 = arith.constant 1 : index
    %c0_17 = arith.constant 0 : index
    %c0_18 = arith.constant 0 : index
    %27 = vector.load %arg3[%c1_16, %c0_17, %c0_18] : memref<36x4x1xf32, #tpu.memory_space<vmem>>, vector<1x4x1xf32>
    %28 = vector.shape_cast %27 : vector<1x4x1xf32> to vector<4x1xf32>
    %29 = vector.extract_strided_slice %20 {offsets = [1, 0], sizes = [1, 256], strides = [1, 1]} : vector<4x256xf32> to vector<1x256xf32>
    %30 = vector.broadcast %28 : vector<4x1xf32> to vector<4x256xf32>
    %31 = vector.broadcast %29 : vector<1x256xf32> to vector<4x256xf32>
    %32 = arith.mulf %30, %31 : vector<4x256xf32>
    %33 = arith.addf %26, %32 : vector<4x256xf32>
    %c2_19 = arith.constant 2 : index
    %c0_20 = arith.constant 0 : index
    %c0_21 = arith.constant 0 : index
    %34 = vector.load %arg3[%c2_19, %c0_20, %c0_21] : memref<36x4x1xf32, #tpu.memory_space<vmem>>, vector<1x4x1xf32>
    %35 = vector.shape_cast %34 : vector<1x4x1xf32> to vector<4x1xf32>
    %36 = vector.extract_strided_slice %20 {offsets = [2, 0], sizes = [1, 256], strides = [1, 1]} : vector<4x256xf32> to vector<1x256xf32>
    %37 = vector.broadcast %35 : vector<4x1xf32> to vector<4x256xf32>
    %38 = vector.broadcast %36 : vector<1x256xf32> to vector<4x256xf32>
    %39 = arith.mulf %37, %38 : vector<4x256xf32>
    %40 = arith.addf %33, %39 : vector<4x256xf32>
    %c3 = arith.constant 3 : index
    %c0_22 = arith.constant 0 : index
    %c0_23 = arith.constant 0 : index
    %41 = vector.load %arg3[%c3, %c0_22, %c0_23] : memref<36x4x1xf32, #tpu.memory_space<vmem>>, vector<1x4x1xf32>
    %42 = vector.shape_cast %41 : vector<1x4x1xf32> to vector<4x1xf32>
    %43 = vector.extract_strided_slice %20 {offsets = [3, 0], sizes = [1, 256], strides = [1, 1]} : vector<4x256xf32> to vector<1x256xf32>
    %44 = vector.broadcast %42 : vector<4x1xf32> to vector<4x256xf32>
    %45 = vector.broadcast %43 : vector<1x256xf32> to vector<4x256xf32>
    %46 = arith.mulf %44, %45 : vector<4x256xf32>
    %47 = arith.addf %40, %46 : vector<4x256xf32>
    %c0_24 = arith.constant 0 : index
    %c112 = arith.constant 112 : index
    %48 = vector.load %arg7[%c0_24, %c112] : memref<4x401xf32, #tpu.memory_space<vmem>>, vector<4x256xf32>
    %c4 = arith.constant 4 : index
    %c0_25 = arith.constant 0 : index
    %c0_26 = arith.constant 0 : index
    %49 = vector.load %arg3[%c4, %c0_25, %c0_26] : memref<36x4x1xf32, #tpu.memory_space<vmem>>, vector<1x4x1xf32>
    %50 = vector.shape_cast %49 : vector<1x4x1xf32> to vector<4x1xf32>
    %51 = vector.extract_strided_slice %48 {offsets = [0, 0], sizes = [1, 256], strides = [1, 1]} : vector<4x256xf32> to vector<1x256xf32>
    %52 = vector.broadcast %50 : vector<4x1xf32> to vector<4x256xf32>
    %53 = vector.broadcast %51 : vector<1x256xf32> to vector<4x256xf32>
    %54 = arith.mulf %52, %53 : vector<4x256xf32>
    %c5 = arith.constant 5 : index
    %c0_27 = arith.constant 0 : index
    %c0_28 = arith.constant 0 : index
    %55 = vector.load %arg3[%c5, %c0_27, %c0_28] : memref<36x4x1xf32, #tpu.memory_space<vmem>>, vector<1x4x1xf32>
    %56 = vector.shape_cast %55 : vector<1x4x1xf32> to vector<4x1xf32>
    %57 = vector.extract_strided_slice %48 {offsets = [1, 0], sizes = [1, 256], strides = [1, 1]} : vector<4x256xf32> to vector<1x256xf32>
    %58 = vector.broadcast %56 : vector<4x1xf32> to vector<4x256xf32>
    %59 = vector.broadcast %57 : vector<1x256xf32> to vector<4x256xf32>
    %60 = arith.mulf %58, %59 : vector<4x256xf32>
    %61 = arith.addf %54, %60 : vector<4x256xf32>
    %c6 = arith.constant 6 : index
    %c0_29 = arith.constant 0 : index
    %c0_30 = arith.constant 0 : index
    %62 = vector.load %arg3[%c6, %c0_29, %c0_30] : memref<36x4x1xf32, #tpu.memory_space<vmem>>, vector<1x4x1xf32>
    %63 = vector.shape_cast %62 : vector<1x4x1xf32> to vector<4x1xf32>
    %64 = vector.extract_strided_slice %48 {offsets = [2, 0], sizes = [1, 256], strides = [1, 1]} : vector<4x256xf32> to vector<1x256xf32>
    %65 = vector.broadcast %63 : vector<4x1xf32> to vector<4x256xf32>
    %66 = vector.broadcast %64 : vector<1x256xf32> to vector<4x256xf32>
    %67 = arith.mulf %65, %66 : vector<4x256xf32>
    %68 = arith.addf %61, %67 : vector<4x256xf32>
    %c7 = arith.constant 7 : index
    %c0_31 = arith.constant 0 : index
    %c0_32 = arith.constant 0 : index
    %69 = vector.load %arg3[%c7, %c0_31, %c0_32] : memref<36x4x1xf32, #tpu.memory_space<vmem>>, vector<1x4x1xf32>
    %70 = vector.shape_cast %69 : vector<1x4x1xf32> to vector<4x1xf32>
    %71 = vector.extract_strided_slice %48 {offsets = [3, 0], sizes = [1, 256], strides = [1, 1]} : vector<4x256xf32> to vector<1x256xf32>
    %72 = vector.broadcast %70 : vector<4x1xf32> to vector<4x256xf32>
    %73 = vector.broadcast %71 : vector<1x256xf32> to vector<4x256xf32>
    %74 = arith.mulf %72, %73 : vector<4x256xf32>
    %75 = arith.addf %68, %74 : vector<4x256xf32>
    %c0_33 = arith.constant 0 : index
    %c113 = arith.constant 113 : index
    %76 = vector.load %arg7[%c0_33, %c113] : memref<4x401xf32, #tpu.memory_space<vmem>>, vector<4x256xf32>
    %c8 = arith.constant 8 : index
    %c0_34 = arith.constant 0 : index
    %c0_35 = arith.constant 0 : index
    %77 = vector.load %arg3[%c8, %c0_34, %c0_35] : memref<36x4x1xf32, #tpu.memory_space<vmem>>, vector<1x4x1xf32>
    %78 = vector.shape_cast %77 : vector<1x4x1xf32> to vector<4x1xf32>
    %79 = vector.extract_strided_slice %76 {offsets = [0, 0], sizes = [1, 256], strides = [1, 1]} : vector<4x256xf32> to vector<1x256xf32>
    %80 = vector.broadcast %78 : vector<4x1xf32> to vector<4x256xf32>
    %81 = vector.broadcast %79 : vector<1x256xf32> to vector<4x256xf32>
    %82 = arith.mulf %80, %81 : vector<4x256xf32>
    %c9 = arith.constant 9 : index
    %c0_36 = arith.constant 0 : index
    %c0_37 = arith.constant 0 : index
    %83 = vector.load %arg3[%c9, %c0_36, %c0_37] : memref<36x4x1xf32, #tpu.memory_space<vmem>>, vector<1x4x1xf32>
    %84 = vector.shape_cast %83 : vector<1x4x1xf32> to vector<4x1xf32>
    %85 = vector.extract_strided_slice %76 {offsets = [1, 0], sizes = [1, 256], strides = [1, 1]} : vector<4x256xf32> to vector<1x256xf32>
    %86 = vector.broadcast %84 : vector<4x1xf32> to vector<4x256xf32>
    %87 = vector.broadcast %85 : vector<1x256xf32> to vector<4x256xf32>
    %88 = arith.mulf %86, %87 : vector<4x256xf32>
    %89 = arith.addf %82, %88 : vector<4x256xf32>
    %c10 = arith.constant 10 : index
    %c0_38 = arith.constant 0 : index
    %c0_39 = arith.constant 0 : index
    %90 = vector.load %arg3[%c10, %c0_38, %c0_39] : memref<36x4x1xf32, #tpu.memory_space<vmem>>, vector<1x4x1xf32>
    %91 = vector.shape_cast %90 : vector<1x4x1xf32> to vector<4x1xf32>
    %92 = vector.extract_strided_slice %76 {offsets = [2, 0], sizes = [1, 256], strides = [1, 1]} : vector<4x256xf32> to vector<1x256xf32>
    %93 = vector.broadcast %91 : vector<4x1xf32> to vector<4x256xf32>
    %94 = vector.broadcast %92 : vector<1x256xf32> to vector<4x256xf32>
    %95 = arith.mulf %93, %94 : vector<4x256xf32>
    %96 = arith.addf %89, %95 : vector<4x256xf32>
    %c11 = arith.constant 11 : index
    %c0_40 = arith.constant 0 : index
    %c0_41 = arith.constant 0 : index
    %97 = vector.load %arg3[%c11, %c0_40, %c0_41] : memref<36x4x1xf32, #tpu.memory_space<vmem>>, vector<1x4x1xf32>
    %98 = vector.shape_cast %97 : vector<1x4x1xf32> to vector<4x1xf32>
    %99 = vector.extract_strided_slice %76 {offsets = [3, 0], sizes = [1, 256], strides = [1, 1]} : vector<4x256xf32> to vector<1x256xf32>
    %100 = vector.broadcast %98 : vector<4x1xf32> to vector<4x256xf32>
    %101 = vector.broadcast %99 : vector<1x256xf32> to vector<4x256xf32>
    %102 = arith.mulf %100, %101 : vector<4x256xf32>
    %103 = arith.addf %96, %102 : vector<4x256xf32>
    %c0_42 = arith.constant 0 : index
    %c127 = arith.constant 127 : index
    %104 = vector.load %arg7[%c0_42, %c127] : memref<4x401xf32, #tpu.memory_space<vmem>>, vector<4x256xf32>
    %c12 = arith.constant 12 : index
    %c0_43 = arith.constant 0 : index
    %c0_44 = arith.constant 0 : index
    %105 = vector.load %arg3[%c12, %c0_43, %c0_44] : memref<36x4x1xf32, #tpu.memory_space<vmem>>, vector<1x4x1xf32>
    %106 = vector.shape_cast %105 : vector<1x4x1xf32> to vector<4x1xf32>
    %107 = vector.extract_strided_slice %104 {offsets = [0, 0], sizes = [1, 256], strides = [1, 1]} : vector<4x256xf32> to vector<1x256xf32>
    %108 = vector.broadcast %106 : vector<4x1xf32> to vector<4x256xf32>
    %109 = vector.broadcast %107 : vector<1x256xf32> to vector<4x256xf32>
    %110 = arith.mulf %108, %109 : vector<4x256xf32>
    %111 = arith.addf %47, %110 : vector<4x256xf32>
    %c13 = arith.constant 13 : index
    %c0_45 = arith.constant 0 : index
    %c0_46 = arith.constant 0 : index
    %112 = vector.load %arg3[%c13, %c0_45, %c0_46] : memref<36x4x1xf32, #tpu.memory_space<vmem>>, vector<1x4x1xf32>
    %113 = vector.shape_cast %112 : vector<1x4x1xf32> to vector<4x1xf32>
    %114 = vector.extract_strided_slice %104 {offsets = [1, 0], sizes = [1, 256], strides = [1, 1]} : vector<4x256xf32> to vector<1x256xf32>
    %115 = vector.broadcast %113 : vector<4x1xf32> to vector<4x256xf32>
    %116 = vector.broadcast %114 : vector<1x256xf32> to vector<4x256xf32>
    %117 = arith.mulf %115, %116 : vector<4x256xf32>
    %118 = arith.addf %111, %117 : vector<4x256xf32>
    %c14 = arith.constant 14 : index
    %c0_47 = arith.constant 0 : index
    %c0_48 = arith.constant 0 : index
    %119 = vector.load %arg3[%c14, %c0_47, %c0_48] : memref<36x4x1xf32, #tpu.memory_space<vmem>>, vector<1x4x1xf32>
    %120 = vector.shape_cast %119 : vector<1x4x1xf32> to vector<4x1xf32>
    %121 = vector.extract_strided_slice %104 {offsets = [2, 0], sizes = [1, 256], strides = [1, 1]} : vector<4x256xf32> to vector<1x256xf32>
    %122 = vector.broadcast %120 : vector<4x1xf32> to vector<4x256xf32>
    %123 = vector.broadcast %121 : vector<1x256xf32> to vector<4x256xf32>
    %124 = arith.mulf %122, %123 : vector<4x256xf32>
    %125 = arith.addf %118, %124 : vector<4x256xf32>
    %c15 = arith.constant 15 : index
    %c0_49 = arith.constant 0 : index
    %c0_50 = arith.constant 0 : index
    %126 = vector.load %arg3[%c15, %c0_49, %c0_50] : memref<36x4x1xf32, #tpu.memory_space<vmem>>, vector<1x4x1xf32>
    %127 = vector.shape_cast %126 : vector<1x4x1xf32> to vector<4x1xf32>
    %128 = vector.extract_strided_slice %104 {offsets = [3, 0], sizes = [1, 256], strides = [1, 1]} : vector<4x256xf32> to vector<1x256xf32>
    %129 = vector.broadcast %127 : vector<4x1xf32> to vector<4x256xf32>
    %130 = vector.broadcast %128 : vector<1x256xf32> to vector<4x256xf32>
    %131 = arith.mulf %129, %130 : vector<4x256xf32>
    %132 = arith.addf %125, %131 : vector<4x256xf32>
    %c0_51 = arith.constant 0 : index
    %c128_52 = arith.constant 128 : index
    %133 = vector.load %arg7[%c0_51, %c128_52] : memref<4x401xf32, #tpu.memory_space<vmem>>, vector<4x256xf32>
    %c16 = arith.constant 16 : index
    %c0_53 = arith.constant 0 : index
    %c0_54 = arith.constant 0 : index
    %134 = vector.load %arg3[%c16, %c0_53, %c0_54] : memref<36x4x1xf32, #tpu.memory_space<vmem>>, vector<1x4x1xf32>
    %135 = vector.shape_cast %134 : vector<1x4x1xf32> to vector<4x1xf32>
    %136 = vector.extract_strided_slice %133 {offsets = [0, 0], sizes = [1, 256], strides = [1, 1]} : vector<4x256xf32> to vector<1x256xf32>
    %137 = vector.broadcast %135 : vector<4x1xf32> to vector<4x256xf32>
    %138 = vector.broadcast %136 : vector<1x256xf32> to vector<4x256xf32>
    %139 = arith.mulf %137, %138 : vector<4x256xf32>
    %140 = arith.addf %75, %139 : vector<4x256xf32>
    %c17 = arith.constant 17 : index
    %c0_55 = arith.constant 0 : index
    %c0_56 = arith.constant 0 : index
    %141 = vector.load %arg3[%c17, %c0_55, %c0_56] : memref<36x4x1xf32, #tpu.memory_space<vmem>>, vector<1x4x1xf32>
    %142 = vector.shape_cast %141 : vector<1x4x1xf32> to vector<4x1xf32>
    %143 = vector.extract_strided_slice %133 {offsets = [1, 0], sizes = [1, 256], strides = [1, 1]} : vector<4x256xf32> to vector<1x256xf32>
    %144 = vector.broadcast %142 : vector<4x1xf32> to vector<4x256xf32>
    %145 = vector.broadcast %143 : vector<1x256xf32> to vector<4x256xf32>
    %146 = arith.mulf %144, %145 : vector<4x256xf32>
    %147 = arith.addf %140, %146 : vector<4x256xf32>
    %c18 = arith.constant 18 : index
    %c0_57 = arith.constant 0 : index
    %c0_58 = arith.constant 0 : index
    %148 = vector.load %arg3[%c18, %c0_57, %c0_58] : memref<36x4x1xf32, #tpu.memory_space<vmem>>, vector<1x4x1xf32>
    %149 = vector.shape_cast %148 : vector<1x4x1xf32> to vector<4x1xf32>
    %150 = vector.extract_strided_slice %133 {offsets = [2, 0], sizes = [1, 256], strides = [1, 1]} : vector<4x256xf32> to vector<1x256xf32>
    %151 = vector.broadcast %149 : vector<4x1xf32> to vector<4x256xf32>
    %152 = vector.broadcast %150 : vector<1x256xf32> to vector<4x256xf32>
    %153 = arith.mulf %151, %152 : vector<4x256xf32>
    %154 = arith.addf %147, %153 : vector<4x256xf32>
    %c19 = arith.constant 19 : index
    %c0_59 = arith.constant 0 : index
    %c0_60 = arith.constant 0 : index
    %155 = vector.load %arg3[%c19, %c0_59, %c0_60] : memref<36x4x1xf32, #tpu.memory_space<vmem>>, vector<1x4x1xf32>
    %156 = vector.shape_cast %155 : vector<1x4x1xf32> to vector<4x1xf32>
    %157 = vector.extract_strided_slice %133 {offsets = [3, 0], sizes = [1, 256], strides = [1, 1]} : vector<4x256xf32> to vector<1x256xf32>
    %158 = vector.broadcast %156 : vector<4x1xf32> to vector<4x256xf32>
    %159 = vector.broadcast %157 : vector<1x256xf32> to vector<4x256xf32>
    %160 = arith.mulf %158, %159 : vector<4x256xf32>
    %161 = arith.addf %154, %160 : vector<4x256xf32>
    %c0_61 = arith.constant 0 : index
    %c129 = arith.constant 129 : index
    %162 = vector.load %arg7[%c0_61, %c129] : memref<4x401xf32, #tpu.memory_space<vmem>>, vector<4x256xf32>
    %c20 = arith.constant 20 : index
    %c0_62 = arith.constant 0 : index
    %c0_63 = arith.constant 0 : index
    %163 = vector.load %arg3[%c20, %c0_62, %c0_63] : memref<36x4x1xf32, #tpu.memory_space<vmem>>, vector<1x4x1xf32>
    %164 = vector.shape_cast %163 : vector<1x4x1xf32> to vector<4x1xf32>
    %165 = vector.extract_strided_slice %162 {offsets = [0, 0], sizes = [1, 256], strides = [1, 1]} : vector<4x256xf32> to vector<1x256xf32>
    %166 = vector.broadcast %164 : vector<4x1xf32> to vector<4x256xf32>
    %167 = vector.broadcast %165 : vector<1x256xf32> to vector<4x256xf32>
    %168 = arith.mulf %166, %167 : vector<4x256xf32>
    %169 = arith.addf %103, %168 : vector<4x256xf32>
    %c21 = arith.constant 21 : index
    %c0_64 = arith.constant 0 : index
    %c0_65 = arith.constant 0 : index
    %170 = vector.load %arg3[%c21, %c0_64, %c0_65] : memref<36x4x1xf32, #tpu.memory_space<vmem>>, vector<1x4x1xf32>
    %171 = vector.shape_cast %170 : vector<1x4x1xf32> to vector<4x1xf32>
    %172 = vector.extract_strided_slice %162 {offsets = [1, 0], sizes = [1, 256], strides = [1, 1]} : vector<4x256xf32> to vector<1x256xf32>
    %173 = vector.broadcast %171 : vector<4x1xf32> to vector<4x256xf32>
    %174 = vector.broadcast %172 : vector<1x256xf32> to vector<4x256xf32>
    %175 = arith.mulf %173, %174 : vector<4x256xf32>
    %176 = arith.addf %169, %175 : vector<4x256xf32>
    %c22 = arith.constant 22 : index
    %c0_66 = arith.constant 0 : index
    %c0_67 = arith.constant 0 : index
    %177 = vector.load %arg3[%c22, %c0_66, %c0_67] : memref<36x4x1xf32, #tpu.memory_space<vmem>>, vector<1x4x1xf32>
    %178 = vector.shape_cast %177 : vector<1x4x1xf32> to vector<4x1xf32>
    %179 = vector.extract_strided_slice %162 {offsets = [2, 0], sizes = [1, 256], strides = [1, 1]} : vector<4x256xf32> to vector<1x256xf32>
    %180 = vector.broadcast %178 : vector<4x1xf32> to vector<4x256xf32>
    %181 = vector.broadcast %179 : vector<1x256xf32> to vector<4x256xf32>
    %182 = arith.mulf %180, %181 : vector<4x256xf32>
    %183 = arith.addf %176, %182 : vector<4x256xf32>
    %c23 = arith.constant 23 : index
    %c0_68 = arith.constant 0 : index
    %c0_69 = arith.constant 0 : index
    %184 = vector.load %arg3[%c23, %c0_68, %c0_69] : memref<36x4x1xf32, #tpu.memory_space<vmem>>, vector<1x4x1xf32>
    %185 = vector.shape_cast %184 : vector<1x4x1xf32> to vector<4x1xf32>
    %186 = vector.extract_strided_slice %162 {offsets = [3, 0], sizes = [1, 256], strides = [1, 1]} : vector<4x256xf32> to vector<1x256xf32>
    %187 = vector.broadcast %185 : vector<4x1xf32> to vector<4x256xf32>
    %188 = vector.broadcast %186 : vector<1x256xf32> to vector<4x256xf32>
    %189 = arith.mulf %187, %188 : vector<4x256xf32>
    %190 = arith.addf %183, %189 : vector<4x256xf32>
    %c0_70 = arith.constant 0 : index
    %c143 = arith.constant 143 : index
    %191 = vector.load %arg7[%c0_70, %c143] : memref<4x401xf32, #tpu.memory_space<vmem>>, vector<4x256xf32>
    %c24 = arith.constant 24 : index
    %c0_71 = arith.constant 0 : index
    %c0_72 = arith.constant 0 : index
    %192 = vector.load %arg3[%c24, %c0_71, %c0_72] : memref<36x4x1xf32, #tpu.memory_space<vmem>>, vector<1x4x1xf32>
    %193 = vector.shape_cast %192 : vector<1x4x1xf32> to vector<4x1xf32>
    %194 = vector.extract_strided_slice %191 {offsets = [0, 0], sizes = [1, 256], strides = [1, 1]} : vector<4x256xf32> to vector<1x256xf32>
    %195 = vector.broadcast %193 : vector<4x1xf32> to vector<4x256xf32>
    %196 = vector.broadcast %194 : vector<1x256xf32> to vector<4x256xf32>
    %197 = arith.mulf %195, %196 : vector<4x256xf32>
    %198 = arith.addf %132, %197 : vector<4x256xf32>
    %c25 = arith.constant 25 : index
    %c0_73 = arith.constant 0 : index
    %c0_74 = arith.constant 0 : index
    %199 = vector.load %arg3[%c25, %c0_73, %c0_74] : memref<36x4x1xf32, #tpu.memory_space<vmem>>, vector<1x4x1xf32>
    %200 = vector.shape_cast %199 : vector<1x4x1xf32> to vector<4x1xf32>
    %201 = vector.extract_strided_slice %191 {offsets = [1, 0], sizes = [1, 256], strides = [1, 1]} : vector<4x256xf32> to vector<1x256xf32>
    %202 = vector.broadcast %200 : vector<4x1xf32> to vector<4x256xf32>
    %203 = vector.broadcast %201 : vector<1x256xf32> to vector<4x256xf32>
    %204 = arith.mulf %202, %203 : vector<4x256xf32>
    %205 = arith.addf %198, %204 : vector<4x256xf32>
    %c26 = arith.constant 26 : index
    %c0_75 = arith.constant 0 : index
    %c0_76 = arith.constant 0 : index
    %206 = vector.load %arg3[%c26, %c0_75, %c0_76] : memref<36x4x1xf32, #tpu.memory_space<vmem>>, vector<1x4x1xf32>
    %207 = vector.shape_cast %206 : vector<1x4x1xf32> to vector<4x1xf32>
    %208 = vector.extract_strided_slice %191 {offsets = [2, 0], sizes = [1, 256], strides = [1, 1]} : vector<4x256xf32> to vector<1x256xf32>
    %209 = vector.broadcast %207 : vector<4x1xf32> to vector<4x256xf32>
    %210 = vector.broadcast %208 : vector<1x256xf32> to vector<4x256xf32>
    %211 = arith.mulf %209, %210 : vector<4x256xf32>
    %212 = arith.addf %205, %211 : vector<4x256xf32>
    %c27 = arith.constant 27 : index
    %c0_77 = arith.constant 0 : index
    %c0_78 = arith.constant 0 : index
    %213 = vector.load %arg3[%c27, %c0_77, %c0_78] : memref<36x4x1xf32, #tpu.memory_space<vmem>>, vector<1x4x1xf32>
    %214 = vector.shape_cast %213 : vector<1x4x1xf32> to vector<4x1xf32>
    %215 = vector.extract_strided_slice %191 {offsets = [3, 0], sizes = [1, 256], strides = [1, 1]} : vector<4x256xf32> to vector<1x256xf32>
    %216 = vector.broadcast %214 : vector<4x1xf32> to vector<4x256xf32>
    %217 = vector.broadcast %215 : vector<1x256xf32> to vector<4x256xf32>
    %218 = arith.mulf %216, %217 : vector<4x256xf32>
    %219 = arith.addf %212, %218 : vector<4x256xf32>
    %c0_79 = arith.constant 0 : index
    %c144 = arith.constant 144 : index
    %220 = vector.load %arg7[%c0_79, %c144] : memref<4x401xf32, #tpu.memory_space<vmem>>, vector<4x256xf32>
    %c28 = arith.constant 28 : index
    %c0_80 = arith.constant 0 : index
    %c0_81 = arith.constant 0 : index
    %221 = vector.load %arg3[%c28, %c0_80, %c0_81] : memref<36x4x1xf32, #tpu.memory_space<vmem>>, vector<1x4x1xf32>
    %222 = vector.shape_cast %221 : vector<1x4x1xf32> to vector<4x1xf32>
    %223 = vector.extract_strided_slice %220 {offsets = [0, 0], sizes = [1, 256], strides = [1, 1]} : vector<4x256xf32> to vector<1x256xf32>
    %224 = vector.broadcast %222 : vector<4x1xf32> to vector<4x256xf32>
    %225 = vector.broadcast %223 : vector<1x256xf32> to vector<4x256xf32>
    %226 = arith.mulf %224, %225 : vector<4x256xf32>
    %227 = arith.addf %161, %226 : vector<4x256xf32>
    %c29 = arith.constant 29 : index
    %c0_82 = arith.constant 0 : index
    %c0_83 = arith.constant 0 : index
    %228 = vector.load %arg3[%c29, %c0_82, %c0_83] : memref<36x4x1xf32, #tpu.memory_space<vmem>>, vector<1x4x1xf32>
    %229 = vector.shape_cast %228 : vector<1x4x1xf32> to vector<4x1xf32>
    %230 = vector.extract_strided_slice %220 {offsets = [1, 0], sizes = [1, 256], strides = [1, 1]} : vector<4x256xf32> to vector<1x256xf32>
    %231 = vector.broadcast %229 : vector<4x1xf32> to vector<4x256xf32>
    %232 = vector.broadcast %230 : vector<1x256xf32> to vector<4x256xf32>
    %233 = arith.mulf %231, %232 : vector<4x256xf32>
    %234 = arith.addf %227, %233 : vector<4x256xf32>
    %c30 = arith.constant 30 : index
    %c0_84 = arith.constant 0 : index
    %c0_85 = arith.constant 0 : index
    %235 = vector.load %arg3[%c30, %c0_84, %c0_85] : memref<36x4x1xf32, #tpu.memory_space<vmem>>, vector<1x4x1xf32>
    %236 = vector.shape_cast %235 : vector<1x4x1xf32> to vector<4x1xf32>
    %237 = vector.extract_strided_slice %220 {offsets = [2, 0], sizes = [1, 256], strides = [1, 1]} : vector<4x256xf32> to vector<1x256xf32>
    %238 = vector.broadcast %236 : vector<4x1xf32> to vector<4x256xf32>
    %239 = vector.broadcast %237 : vector<1x256xf32> to vector<4x256xf32>
    %240 = arith.mulf %238, %239 : vector<4x256xf32>
    %241 = arith.addf %234, %240 : vector<4x256xf32>
    %c31 = arith.constant 31 : index
    %c0_86 = arith.constant 0 : index
    %c0_87 = arith.constant 0 : index
    %242 = vector.load %arg3[%c31, %c0_86, %c0_87] : memref<36x4x1xf32, #tpu.memory_space<vmem>>, vector<1x4x1xf32>
    %243 = vector.shape_cast %242 : vector<1x4x1xf32> to vector<4x1xf32>
    %244 = vector.extract_strided_slice %220 {offsets = [3, 0], sizes = [1, 256], strides = [1, 1]} : vector<4x256xf32> to vector<1x256xf32>
    %245 = vector.broadcast %243 : vector<4x1xf32> to vector<4x256xf32>
    %246 = vector.broadcast %244 : vector<1x256xf32> to vector<4x256xf32>
    %247 = arith.mulf %245, %246 : vector<4x256xf32>
    %248 = arith.addf %241, %247 : vector<4x256xf32>
    %c0_88 = arith.constant 0 : index
    %c145 = arith.constant 145 : index
    %249 = vector.load %arg7[%c0_88, %c145] : memref<4x401xf32, #tpu.memory_space<vmem>>, vector<4x256xf32>
    %c32 = arith.constant 32 : index
    %c0_89 = arith.constant 0 : index
    %c0_90 = arith.constant 0 : index
    %250 = vector.load %arg3[%c32, %c0_89, %c0_90] : memref<36x4x1xf32, #tpu.memory_space<vmem>>, vector<1x4x1xf32>
    %251 = vector.shape_cast %250 : vector<1x4x1xf32> to vector<4x1xf32>
    %252 = vector.extract_strided_slice %249 {offsets = [0, 0], sizes = [1, 256], strides = [1, 1]} : vector<4x256xf32> to vector<1x256xf32>
    %253 = vector.broadcast %251 : vector<4x1xf32> to vector<4x256xf32>
    %254 = vector.broadcast %252 : vector<1x256xf32> to vector<4x256xf32>
    %255 = arith.mulf %253, %254 : vector<4x256xf32>
    %256 = arith.addf %190, %255 : vector<4x256xf32>
    %c33 = arith.constant 33 : index
    %c0_91 = arith.constant 0 : index
    %c0_92 = arith.constant 0 : index
    %257 = vector.load %arg3[%c33, %c0_91, %c0_92] : memref<36x4x1xf32, #tpu.memory_space<vmem>>, vector<1x4x1xf32>
    %258 = vector.shape_cast %257 : vector<1x4x1xf32> to vector<4x1xf32>
    %259 = vector.extract_strided_slice %249 {offsets = [1, 0], sizes = [1, 256], strides = [1, 1]} : vector<4x256xf32> to vector<1x256xf32>
    %260 = vector.broadcast %258 : vector<4x1xf32> to vector<4x256xf32>
    %261 = vector.broadcast %259 : vector<1x256xf32> to vector<4x256xf32>
    %262 = arith.mulf %260, %261 : vector<4x256xf32>
    %263 = arith.addf %256, %262 : vector<4x256xf32>
    %c34 = arith.constant 34 : index
    %c0_93 = arith.constant 0 : index
    %c0_94 = arith.constant 0 : index
    %264 = vector.load %arg3[%c34, %c0_93, %c0_94] : memref<36x4x1xf32, #tpu.memory_space<vmem>>, vector<1x4x1xf32>
    %265 = vector.shape_cast %264 : vector<1x4x1xf32> to vector<4x1xf32>
    %266 = vector.extract_strided_slice %249 {offsets = [2, 0], sizes = [1, 256], strides = [1, 1]} : vector<4x256xf32> to vector<1x256xf32>
    %267 = vector.broadcast %265 : vector<4x1xf32> to vector<4x256xf32>
    %268 = vector.broadcast %266 : vector<1x256xf32> to vector<4x256xf32>
    %269 = arith.mulf %267, %268 : vector<4x256xf32>
    %270 = arith.addf %263, %269 : vector<4x256xf32>
    %c35 = arith.constant 35 : index
    %c0_95 = arith.constant 0 : index
    %c0_96 = arith.constant 0 : index
    %271 = vector.load %arg3[%c35, %c0_95, %c0_96] : memref<36x4x1xf32, #tpu.memory_space<vmem>>, vector<1x4x1xf32>
    %272 = vector.shape_cast %271 : vector<1x4x1xf32> to vector<4x1xf32>
    %273 = vector.extract_strided_slice %249 {offsets = [3, 0], sizes = [1, 256], strides = [1, 1]} : vector<4x256xf32> to vector<1x256xf32>
    %274 = vector.broadcast %272 : vector<4x1xf32> to vector<4x256xf32>
    %275 = vector.broadcast %273 : vector<1x256xf32> to vector<4x256xf32>
    %276 = arith.mulf %274, %275 : vector<4x256xf32>
    %277 = arith.addf %270, %276 : vector<4x256xf32>
    %c0_97 = arith.constant 0 : index
    %c0_98 = arith.constant 0 : index
    %278 = vector.load %arg4[%c0_97, %c0_98] : memref<2x256xf32, #tpu.memory_space<vmem>>, vector<1x256xf32>
    %279 = vector.broadcast %278 : vector<1x256xf32> to vector<4x256xf32>
    %280 = arith.mulf %219, %279 : vector<4x256xf32>
    %281 = arith.addf %280, %248 : vector<4x256xf32>
    %c1_99 = arith.constant 1 : index
    %c0_100 = arith.constant 0 : index
    %282 = vector.load %arg4[%c1_99, %c0_100] : memref<2x256xf32, #tpu.memory_space<vmem>>, vector<1x256xf32>
    %283 = vector.broadcast %282 : vector<1x256xf32> to vector<4x256xf32>
    %284 = arith.mulf %277, %283 : vector<4x256xf32>
    %285 = arith.addf %281, %284 : vector<4x256xf32>
    %286 = arith.truncf %285 : vector<4x256xf32> to vector<4x256xbf16>
    %c0_101 = arith.constant 0 : index
    %c0_102 = arith.constant 0 : index
    %c0_103 = arith.constant 0 : index
    %287 = vector.load %arg5[%c0_101, %c0_102, %c0_103] : memref<1x4x256xbf16, #tpu.memory_space<vmem>>, vector<1x4x256xbf16>
    %288 = vector.shape_cast %287 : vector<1x4x256xbf16> to vector<4x256xbf16>
    %289 = vector.shape_cast %286 : vector<4x256xbf16> to vector<1x4x256xbf16>
    tpu.vector_store %arg5[%c0_101, %c0_102, %c0_103], %289 {strides = array<i32>} : memref<1x4x256xbf16, #tpu.memory_space<vmem>>, vector<1x4x256xbf16>,
    %cst_104 = arith.constant dense<0.000000e+00> : vector<4xf32>
    %290 = vector.multi_reduction <add>, %285, %cst_104 [1] : vector<4x256xf32> to vector<4xf32>
    %291 = vector.shape_cast %290 : vector<4xf32> to vector<4x1xf32>
    %cst_105 = arith.constant 3.906250e-03 : f32
    %292 = vector.broadcast %cst_105 : f32 to vector<4x1xf32>
    %293 = arith.mulf %291, %292 : vector<4x1xf32>
    %294 = vector.broadcast %293 : vector<4x1xf32> to vector<4x256xf32>
    %295 = arith.subf %285, %294 : vector<4x256xf32>
    %c0_106 = arith.constant 0 : index
    %c0_107 = arith.constant 0 : index
    %c0_108 = arith.constant 0 : index
    %296 = vector.load %arg6[%c0_106, %c0_107, %c0_108] : memref<1x4x2xf32, #tpu.memory_space<vmem>>, vector<1x4x1xf32>
    %297 = vector.shape_cast %296 : vector<1x4x1xf32> to vector<4x1xf32>
    %298 = vector.shape_cast %293 : vector<4x1xf32> to vector<1x4x1xf32>
    tpu.vector_store %arg6[%c0_106, %c0_107, %c0_108], %298 {strides = array<i32>} : memref<1x4x2xf32, #tpu.memory_space<vmem>>, vector<1x4x1xf32>,
    %299 = arith.mulf %295, %295 : vector<4x256xf32>
    %cst_109 = arith.constant dense<0.000000e+00> : vector<4xf32>
    %300 = vector.multi_reduction <add>, %299, %cst_109 [1] : vector<4x256xf32> to vector<4xf32>
    %301 = vector.shape_cast %300 : vector<4xf32> to vector<4x1xf32>
    %c0_110 = arith.constant 0 : index
    %c0_111 = arith.constant 0 : index
    %c1_112 = arith.constant 1 : index
    %302 = vector.load %arg6[%c0_110, %c0_111, %c1_112] : memref<1x4x2xf32, #tpu.memory_space<vmem>>, vector<1x4x1xf32>
    %303 = vector.shape_cast %302 : vector<1x4x1xf32> to vector<4x1xf32>
    %304 = vector.shape_cast %301 : vector<4x1xf32> to vector<1x4x1xf32>
    tpu.vector_store %arg6[%c0_110, %c0_111, %c1_112], %304 {strides = array<i32>} : memref<1x4x2xf32, #tpu.memory_space<vmem>>, vector<1x4x1xf32>,
    return
  }
  func.func @transform_0(%arg0: i32) -> (i32, i32, i32) {
    %c0_i32 = arith.constant 0 : i32
    %c0_i32_0 = arith.constant 0 : i32
    %c0_i32_1 = arith.constant 0 : i32
    return %arg0, %c0_i32, %c0_i32_0 : i32, i32, i32
  }
  func.func @transform_1(%arg0: i32) -> (i32, i32) {
    %c0_i32 = arith.constant 0 : i32
    %c0_i32_0 = arith.constant 0 : i32
    %c0_i32_1 = arith.constant 0 : i32
    return %c0_i32, %c0_i32_0 : i32, i32
  }
  func.func @transform_2(%arg0: i32) -> (i32, i32, i32) {
    %c0_i32 = arith.constant 0 : i32
    %c0_i32_0 = arith.constant 0 : i32
    %c0_i32_1 = arith.constant 0 : i32
    %c0_i32_2 = arith.constant 0 : i32
    return %c0_i32, %c0_i32_0, %c0_i32_1 : i32, i32, i32
  }
  func.func @transform_3(%arg0: i32) -> (i32, i32) {
    %c0_i32 = arith.constant 0 : i32
    %c0_i32_0 = arith.constant 0 : i32
    %c0_i32_1 = arith.constant 0 : i32
    return %c0_i32, %c0_i32_0 : i32, i32
  }
  func.func @transform_4(%arg0: i32) -> (i32, i32, i32) {
    %c0_i32 = arith.constant 0 : i32
    %c0_i32_0 = arith.constant 0 : i32
    %c0_i32_1 = arith.constant 0 : i32
    return %arg0, %c0_i32, %c0_i32_0 : i32, i32, i32
  }
  func.func @transform_5(%arg0: i32) -> (i32, i32, i32) {
    %c0_i32 = arith.constant 0 : i32
    %c0_i32_0 = arith.constant 0 : i32
    %c0_i32_1 = arith.constant 0 : i32
    return %arg0, %c0_i32, %c0_i32_0 : i32, i32, i32
  }
}

</mosaic_0001>

<bundles_post_ra>
// kernel: residual_block.5
= control target key start
LH: loop header
LB: loop body
LE: loop exit
PB: predicated region body
PF: predicated region fallthrough
CT: control target
= control target key end

     0   :  { %s349_s12 = smov 0   ;;  %s372_s0 = inlined_call_operand.vmem [shape: f32[2,4,256], index: 0, kind: input, shape index: {}, may-alias: {0,3}]   ;;  %s373_s1 = inlined_call_operand.vmem [shape: bf16[2,4,256], index: 1, kind: input, shape index: {}]   ;;  %s374_s2 = inlined_call_operand.vmem [shape: f32[4,2], index: 2, kind: input, shape index: {}]   ;;  %s375_s3 = inlined_call_operand.vmem [shape: f32[2,4,256], index: 3, kind: output, shape index: {}, may-alias: {0,3}]  }
   0x1 LB: > { %s289_s13 = sadd.s32 4294967295, %s324_s12   ;;  %p293_p0 = scmp.ge.s32.totalorder %s324_s12, 1  ;;  %s324_s12 = sphi %s349_s12, %s13_s12  }
   0x2   : > { %p147_p1 = scmp.lt.s32.totalorder %s324_s12, 3 }
   0x4   : > { %p148_p2 = pnand %p293_p0, %p147_p1 }
   0x5   : > { %v191_v0 = vld [vmem:[%s374_s2] sm:$0xf] (!%p148_p2)  ;;  %v326_v1 = vmov (!%p148_p2), 0   ;;  %v327_v2 = vmov (!%p148_p2), 1   ;;  %p176_p3 = scmp.lt.s32.totalorder (!%p148_p2), %s289_s13, 1  ;;  %v202_v5 = vlaneseq (!%p148_p2) }
   0x6   : > { %151 = sbr.rel (%p148_p2) target bundleno = 145 (0x91), region = 32  ;;  %316 = vset.pattern.permute.xlu0 (!%p148_p2), %v326_v1  ;;  %v328_v3 = vmov (!%p148_p2), 839922192  }
   0x7   : > { %197 = vperm.xlu0 (!%p148_p2), %316, %v191_v0   ;;  %v200_v4 = vunpack.c.l.s4 (!%p148_p2), %v328_v3  ;;  %v203_v7 = vshrl.u32 (!%p148_p2), %v202_v5, 7 }
   0x9   : > { %v201_v6 = vunpack.c.0.s8 (!%p148_p2), %v200_v4 }
   0xb   : > { %317 = vset.pattern.permute.xlu0 (!%p148_p2), %v327_v2  ;;  %v204_v9 = vsub.s32 (!%p148_p2), %v201_v6, %v203_v7 }
   0xc   : > { %210 = vperm.xlu0 (!%p148_p2), %317, %v191_v0  }
   0xd   : > { %s377_s13 = smov (!%p176_p3, %s289_s13), 1 }
   0xe   : > { %s303_s16 = sshll.u32 %s377_s13, 2  ;;  %s302_s20 = sshll.u32 %s377_s13, 3 }
   0xf   : > { %s185_s19 = scalar_lea.vmem %s373_s1, %s303_s16  ;;  %s180_s23 = scalar_lea.vmem %s372_s0, %s302_s20 }
  0x10   : > { %v193_v8 = vld [vmem:[%s185_s19] sm:$0xf]  ;;  %s190_s26 = scalar_lea.vmem %s375_s3, %s302_s20 }
  0x11   : > { %v194_v10 = vunpack.c.l.bf16 %v193_v8  ;;  %v192_v13 = vld [vmem:[%s180_s23] sm:$0xff] }
  0x86   : > { %v198_v11 = vpop.permute.xlu0 %197 }
  0x87   : > { %v205_v12 = vrot.slane %v198_v11, %v204_v9 }
  0x89   : > { %v207_v14 = vmul.f32 %v205_v12, %v194_v10 }
  0x8b   : > { %v211_v15 = vpop.permute.xlu0 %210  ;;  %v208_v16 = vadd.f32 %v207_v14, %v192_v13 }
  0x8c   : > { %v218_v17 = vrot.slane %v211_v15, %v204_v9 }
  0x8e   : > { %v220_v18 = vadd.f32 %v218_v17, %v208_v16 }
  0x90   : > { %221 = vst [vmem:[%s190_s26] sm:$0xff] %v220_v18 }
  0x91 PF: > { %s13_s12 = sadd.s32 1, %s324_s12  }
  0x92   : > { %p10_p4 = scmp.ge.s32.totalorder %s13_s12, 4  }
  0x94   :  { %12 = sbr.rel (!%p10_p4) target bundleno = 1 (0x1), region = 65 }

// kernel: residual_block.4
= control target key start
LH: loop header
LB: loop body
LE: loop exit
PB: predicated region body
PF: predicated region fallthrough
CT: control target
= control target key end

     0   :  { %s1729_s18 = smov 0   ;;  %s2476_s0 = inlined_call_operand.vmem [shape: bf16[2,4,256], index: 0, kind: input, shape index: {}]   ;;  %s2477_s1 = inlined_call_operand.vmem [shape: f32[4,3], index: 1, kind: input, shape index: {}]   ;;  %s2478_s2 = inlined_call_operand.vmem [shape: f32[36,4,1], index: 2, kind: input, shape index: {}]   ;;  %s2479_s3 = inlined_call_operand.vmem [shape: f32[2,256], index: 3, kind: input, shape index: {}]   ;;  %s2480_s4 = inlined_call_operand.vmem [shape: bf16[2,4,256], index: 4, kind: output, shape index: {0}]   ;;  %s2481_s5 = inlined_call_operand.vmem [shape: f32[2,4,2], index: 5, kind: output, shape index: {1}]  }
   0x1 LB: > { %s1602_s19 = sadd.s32 4294967295, %s1684_s18   ;;  %p1606_p0 = scmp.ge.s32.totalorder %s1684_s18, 1  ;;  %s1684_s18 = sphi %s1729_s18, %s16_s18  }
   0x2   : > { %p190_p1 = scmp.lt.s32.totalorder %s1684_s18, 3 }
   0x4   : > { %p191_p2 = pnand %p1606_p0, %p190_p1 }
   0x6   : > { %194 = sbr.rel (%p191_p2) target bundleno = 1027 (0x403), region = 36 }
   0xd   : > { %v239_v0 = vld [vmem:[%s2477_s1] sm:$0xf]  ;;  %v1686_v1 = vmov 2   ;;  %v1687_v2 = vmov 1   ;;  %v1688_v4 = vmov 0   ;;  %vm237_vm0 = vcmask 134144  }
   0xe   : > { %1676 = vset.pattern.permute.xlu1 %v1686_v1  ;;  %1674 = vset.pattern.permute.xlu0 %v1687_v2  ;;  %v1627_v3 = vld [vmem:[%s2478_s2 + $0x40] sm:$0xf]  ;;  %v1631_v5 = vld [vmem:[%s2478_s2 + $0x50] sm:$0xf]  ;;  %v1628_v6 = vld [vmem:[%s2478_s2 + $0x44] sm:$0xf]  ;;  %v249_v37 = vlaneseq }
   0xf   : > { %269 = vperm.xlu1 %1676, %v239_v0   ;;  %256 = vperm.xlu0 %1674, %v239_v0   ;;  %v1632_v7 = vld [vmem:[%s2478_s2 + $0x54] sm:$0xf]  ;;  %v1633_v8 = vld [vmem:[%s2478_s2 + $0x58] sm:$0xf]  ;;  %v1689_v9 = vmov 0.0   ;;  %p222_p3 = scmp.lt.s32.totalorder %s1602_s19, 1 }
  0x10   : > { %238 = vst.msk [vmem:[#allocation2 + $0xc] sm:$0xf] %vm237_vm0, %v1689_v9  ;;  %236 = vst [vmem:[#allocation2] sm:$0xf] %v1689_v9  ;;  %v1629_v10 = vld [vmem:[%s2478_s2 + $0x48] sm:$0xf] }
  0x11   : > { %v1634_v11 = vld [vmem:[%s2478_s2 + $0x5c] sm:$0xf]  ;;  %v1630_v12 = vld [vmem:[%s2478_s2 + $0x4c] sm:$0xf]  ;;  %v1643_v13 = vld [vmem:[%s2478_s2 + $0x80] sm:$0xf] }
  0x12   : > { %v1639_v14 = vld [vmem:[%s2478_s2 + $0x70] sm:$0xf]  ;;  %v1644_v15 = vld [vmem:[%s2478_s2 + $0x84] sm:$0xf]  ;;  %v1640_v16 = vld [vmem:[%s2478_s2 + $0x74] sm:$0xf] }
  0x13   : > { %1677 = vset.pattern.permute.xlu1 %v1688_v4  ;;  %1675 = vset.pattern.permute.xlu0 %v1688_v4  ;;  %v1645_v17 = vld [vmem:[%s2478_s2 + $0x88] sm:$0xf]  ;;  %v1641_v18 = vld [vmem:[%s2478_s2 + $0x78] sm:$0xf]  ;;  %v1646_v19 = vld [vmem:[%s2478_s2 + $0x8c] sm:$0xf] }
  0x14   : > { %655 = vperm.xlu1 %1677, %v1627_v3   ;;  %244 = vperm.xlu0 %1675, %v239_v0   ;;  %v1642_v20 = vld [vmem:[%s2478_s2 + $0x7c] sm:$0xf]  ;;  %v1616_v21 = vld [vmem:[%s2478_s2 + $0x14] sm:$0xf]  ;;  %v1615_v22 = vld [vmem:[%s2478_s2 + $0x10] sm:$0xf] }
  0x15   : > { %v1620_v23 = vld [vmem:[%s2478_s2 + $0x24] sm:$0xf]  ;;  %v1619_v24 = vld [vmem:[%s2478_s2 + $0x20] sm:$0xf]  ;;  %v1621_v25 = vld [vmem:[%s2478_s2 + $0x28] sm:$0xf] }
  0x16   : > { %v1617_v26 = vld [vmem:[%s2478_s2 + $0x18] sm:$0xf]  ;;  %v1622_v27 = vld [vmem:[%s2478_s2 + $0x2c] sm:$0xf]  ;;  %v1618_v28 = vld [vmem:[%s2478_s2 + $0x1c] sm:$0xf] }
  0x17   : > { %v1624_v29 = vld [vmem:[%s2478_s2 + $0x34] sm:$0xf]  ;;  %v1623_v30 = vld [vmem:[%s2478_s2 + $0x30] sm:$0xf]  ;;  %v1626_v31 = vld [vmem:[%s2478_s2 + $0x3c] sm:$0xf] }
  0x18   : > { %818 = vperm.xlu1 %1677, %v1631_v5   ;;  %696 = vperm.xlu0 %1675, %v1628_v6   ;;  %v1625_v32 = vld [vmem:[%s2478_s2 + $0x38] sm:$0xf]  ;;  %v1635_v33 = vld [vmem:[%s2478_s2 + $0x60] sm:$0xf]  ;;  %v1636_v34 = vld [vmem:[%s2478_s2 + $0x64] sm:$0xf] }
  0x19   : > { %v1637_v35 = vld [vmem:[%s2478_s2 + $0x68] sm:$0xf]  ;;  %v1638_v36 = vld [vmem:[%s2478_s2 + $0x6c] sm:$0xf]  ;;  %s2492_s19 = smov (!%p222_p3, %s1602_s19), 1  ;;  %v1840_v40 = vshrl.u32 %v249_v37, 7 }
  0x1a   : > { %v1690_v38 = vmov 839922192   ;;  %s1842_s15 = sshll.u32 %s2492_s19, 2  ;;  %v813_v43 = vld [vmem:[#allocation2 + $0xc] sm:$0xf]  ;;  %s1691_s19 = smov 112  }
  0x1b   : > { %v247_v39 = vunpack.c.l.s4 %v1690_v38  ;;  %2485 = vst [vmem:[#allocation3_spill] sm:$0xff] %v1840_v40  ;;  %v1845_v42 = vsub.s32 0, %v1840_v40  ;;  %s226_s20 = scalar_lea.vmem %s2476_s0, %s1842_s15  ;;  %v1853_v48 = vsub.s32 1, %v1840_v40  ;;  %v1863_v56 = vsub.s32 2, %v1840_v40  ;;  %s1692_s21 = smov 96  }
  0x1c   : > { %874 = vperm.xlu1 %1677, %v1632_v7   ;;  %928 = vperm.xlu0 %1675, %v1633_v8   ;;  %v240_v46 = vld [vmem:[%s226_s20] sm:$0xf]  ;;  %v1870_v61 = vsub.s32 3, %v1840_v40  ;;  %s1693_s24 = smov 113   ;;  %vm560_vm2 = vcmask 916480   ;;  %s1694_s10 = smov 111  }
  0x1d   : > { %v248_v41 = vunpack.c.0.s8 %v247_v39  ;;  %v834_v49 = vrot.slane %v813_v43, %v1845_v42  ;;  %v241_v50 = vunpack.c.l.bf16 %v240_v46  ;;  %v888_v55 = vrot.slane %v813_v43, %v1853_v48  ;;  %s1695_s11 = smov 127   ;;  %s1696_s12 = smov 126  }
  0x1e   : > { %v942_v1 = vrot.slane %v813_v43, %v1863_v56  ;;  %v996_v5 = vrot.slane %v813_v43, %v1870_v61  ;;  %v376_v46 = vsub.s32 6, %v1840_v40  ;;  %vm1051_vm3 = vcmask 785408   ;;  %s1697_s13 = smov 17   ;;  %s235_s17 = scalar_lea.vmem %s2481_s5, %s1842_s15 }
  0x1f   : > { %v251_v47 = vsub.s32 %v248_v41, %v1840_v40  ;;  %v1859_v54 = vrot.slane %v834_v49, %v1845_v42  ;;  %v1875_v0 = vrot.slane %v888_v55, %v1853_v48  ;;  %vm1412_vm4 = vcmask 924672  }
  0x20   : > { %736 = vperm.xlu1 %1677, %v1629_v10   ;;  %982 = vperm.xlu0 %1675, %v1634_v11   ;;  %v1887_v9 = vrot.slane %v942_v1, %v1863_v56  ;;  %vm1388_vm5 = vcmask 1039360   ;;  %vm1371_vm6 = vcmask 908288   ;;  %vm1429_vm7 = vcmask 1031168  }
  0x21   : > { %vm1463_vm8 = vcmask 138240   ;;  %vm1481_vm9 = vcmask 1043456   ;;  %vm1491_vm10 = vcmask 3072   ;;  %vm1514_vm11 = vcmask 11272  }
  0x24   : > { %776 = vperm.xlu1 %1677, %v1630_v12   ;;  %1253 = vperm.xlu0 %1675, %v1643_v13  }
  0x28   : > { %1145 = vperm.xlu1 %1677, %v1639_v14   ;;  %1280 = vperm.xlu0 %1675, %v1644_v15   ;;  %v1899_v15 = vrot.slane %v996_v5, %v1870_v61 }
  0x2c   : > { %1172 = vperm.xlu1 %1677, %v1640_v16   ;;  %1307 = vperm.xlu0 %1675, %v1645_v17  }
  0x30   : > { %1199 = vperm.xlu1 %1677, %v1641_v18   ;;  %1334 = vperm.xlu0 %1675, %v1646_v19  }
  0x34   : > { %1226 = vperm.xlu1 %1677, %v1642_v20   ;;  %457 = vperm.xlu0 %1675, %v1616_v21  }
  0x38   : > { %447 = vperm.xlu1 %1677, %v1615_v22   ;;  %506 = vperm.xlu0 %1675, %v1620_v23  }
  0x3c   : > { %496 = vperm.xlu1 %1677, %v1619_v24   ;;  %519 = vperm.xlu0 %1675, %v1621_v25  }
  0x40   : > { %470 = vperm.xlu1 %1677, %v1617_v26   ;;  %532 = vperm.xlu0 %1675, %v1622_v27   ;;  %v299_v27 = vsub.s32 4, %v1840_v40 }
  0x44   : > { %483 = vperm.xlu1 %1677, %v1618_v28   ;;  %573 = vperm.xlu0 %1675, %v1624_v29  }
  0x48   : > { %545 = vperm.xlu1 %1677, %v1623_v30   ;;  %627 = vperm.xlu0 %1675, %v1626_v31  }
  0x4c   : > { %600 = vperm.xlu1 %1677, %v1625_v32  }
  0x50   : > { %1036 = vperm.xlu1 %1677, %v1635_v33  }
  0x54   : > { %1064 = vperm.xlu1 %1677, %v1636_v34   ;;  %v336_v34 = vsub.s32 5, %v1840_v40 }
  0x58   : > { %1091 = vperm.xlu1 %1677, %v1637_v35  }
  0x5c   : > { %1118 = vperm.xlu1 %1677, %v1638_v36  }
  0x8e   : > { %v270_v44 = vpop.permute.xlu1 %269  ;;  %v257_v45 = vpop.permute.xlu0 %256 }
  0x8f   : > { %v264_v57 = vrot.slane %v257_v45, %v251_v47 }
  0x93   : > { %v1856_v51 = vpop.permute.xlu1 %655  ;;  %v245_v52 = vpop.permute.xlu0 %244 }
  0x94   : > { %v252_v53 = vrot.slane %v245_v52, %v251_v47 }
  0x96   : > { %v254_v58 = vmul.f32 %v252_v53, %v241_v50 }
  0x97   : > { %v1865_v59 = vpop.permute.xlu1 %818  ;;  %v1867_v60 = vpop.permute.xlu0 %696 }
  0x98   : > { %v266_v62 = vadd.f32 %v264_v57, %v254_v58  ;;  %v852_v63 = vmul.f32 %v1859_v54, %v1865_v59  ;;  %v416_v58 = vsub.s32 7, %v1840_v40 }
  0x9a   : > { %v273_v2 = vcombine.high %v266_v62, %v266_v62  ;;  %860 = vrot.lane.b32.xlu0 %v852_v63, %s1691_s19  ;;  %v275_v6 = vmul.f32 %v270_v44, %v266_v62  ;;  %vm267_vm1 = vcmp.ge.f32.partialorder %v266_v62, 0.0 }
  0x9b   : > { %v1879_v3 = vpop.permute.xlu1 %874  ;;  %v1881_v4 = vpop.permute.xlu0 %928 }
  0x9c   : > { %v276_v7 = vmul.f32 %v273_v2, %v270_v44  ;;  %v906_v8 = vmul.f32 %v1875_v0, %v1879_v3  ;;  %v960_v14 = vmul.f32 %v1887_v9, %v1881_v4 }
  0x9e   : > { %v279_v10 = vcombine.low %v275_v6, %v276_v7  ;;  %914 = vrot.lane.b32.xlu0 %v906_v8, %s1691_s19 }
  0x9f   : > { %v1890_v11 = vpop.permute.xlu1 %736  ;;  %v1892_v12 = vpop.permute.xlu0 %982 }
  0xa0   : > { %v1894_v13 = vsel %vm267_vm1, %v266_v62, %v279_v10  ;;  %v1014_v18 = vmul.f32 %v1899_v15, %v1892_v12 }
  0xa1   : > { %282 = vst [vmem:[#allocation2 + $0x4] sm:$0xff] %v1894_v13  ;;  %v662_v26 = vrot.slane %v1894_v13, %v1845_v42  ;;  %v666_v33 = vrot.slane %v1894_v13, %v299_v27  ;;  %v702_v36 = vrot.slane %v1894_v13, %v1853_v48  ;;  %v706_v41 = vrot.slane %v1894_v13, %v336_v34 }
  0xa2   : > { %968 = vrot.lane.b32.xlu0 %v960_v14, %s1691_s19  ;;  %v742_v50 = vrot.slane %v1894_v13, %v1863_v56  ;;  %v746_v53 = vrot.slane %v1894_v13, %v376_v46  ;;  %v782_v62 = vrot.slane %v1894_v13, %v1870_v61  ;;  %v786_v2 = vrot.slane %v1894_v13, %v416_v58 }
  0xa3   : > { %v1903_v16 = vpop.permute.xlu1 %776  ;;  %v1905_v17 = vpop.permute.xlu0 %1253  ;;  %v1940_v32 = vrot.slane %v662_v26, %v1845_v42  ;;  %v1957_v39 = vrot.slane %v666_v33, %v1845_v42  ;;  %v1965_v43 = vrot.slane %v702_v36, %v1853_v48  ;;  %v1975_v47 = vrot.slane %v706_v41, %v1853_v48 }
  0xa4   : > { %v1258_v22 = vmul.f32 %v1905_v17, %v1859_v54  ;;  %v1991_v55 = vrot.slane %v742_v50, %v1863_v56  ;;  %v2015_v5 = vrot.slane %v782_v62, %v1870_v61 }
  0xa5   : > { %v677_v38 = vmul.f32 %v1940_v32, %v1856_v51  ;;  %v678_v44 = vmul.f32 %v1957_v39, %v1856_v51  ;;  %v850_v45 = vmul.f32 %v1865_v59, %v1940_v32  ;;  %v717_v49 = vmul.f32 %v1965_v43, %v1867_v60 }
  0xa6   : > { %1022 = vrot.lane.b32.xlu0 %v1014_v18, %s1691_s19  ;;  %v851_v51 = vmul.f32 %v1865_v59, %v1957_v39  ;;  %v718_v52 = vmul.f32 %v1975_v47, %v1867_v60  ;;  %v904_v57 = vmul.f32 %v1879_v3, %v1965_v43  ;;  %v1999_v59 = vrot.slane %v746_v53, %v1863_v56  ;;  %v285_v53 = vld [vmem:[%s2478_s2] sm:$0xf] }
  0xa7   : > { %v1910_v19 = vpop.permute.xlu1 %1145  ;;  %v1912_v20 = vpop.permute.xlu0 %1280  ;;  %v757_v60 = vmul.f32 %v1991_v55, %v1890_v11  ;;  %v905_v63 = vmul.f32 %v1879_v3, %v1975_v47  ;;  %v958_v6 = vmul.f32 %v1881_v4, %v1991_v55  ;;  %v2022_v3 = vrot.slane %v786_v2, %v1870_v61  ;;  %v1613_v2 = vld [vmem:[%s2478_s2 + $0x8] sm:$0xf] }
  0xa8   : > { %v1150_v21 = vmul.f32 %v1910_v19, %v1859_v54  ;;  %v1285_v25 = vmul.f32 %v1912_v20, %v1875_v0  ;;  %v758_v1 = vmul.f32 %v1999_v59, %v1890_v11  ;;  %v797_v7 = vmul.f32 %v2015_v5, %v1903_v16 }
  0xa9   : > { %v959_v8 = vmul.f32 %v1881_v4, %v1999_v59  ;;  %v798_v10 = vmul.f32 %v2022_v3, %v1903_v16  ;;  %v1012_v11 = vmul.f32 %v1892_v12, %v2015_v5  ;;  %v1013_v13 = vmul.f32 %v1892_v12, %v2022_v3 }
  0xaa   : > { %1158 = vrot.lane.b32.xlu1 %v1150_v21, %s1692_s21  ;;  %1266 = vrot.lane.b32.xlu0 %v1258_v22, %s1692_s21  ;;  %v1149_v4 = vmul.f32 %v1910_v19, %v1957_v39  ;;  %v1148_v14 = vmul.f32 %v1910_v19, %v1940_v32  ;;  %v1256_v16 = vmul.f32 %v1905_v17, %v1940_v32 }
  0xab   : > { %v1920_v23 = vpop.permute.xlu1 %1172  ;;  %v1929_v28 = vpop.permute.xlu0 %1307  ;;  %v1257_v12 = vmul.f32 %v1905_v17, %v1957_v39  ;;  %v1283_v21 = vmul.f32 %v1912_v20, %v1965_v43 }
  0xac   : > { %v1177_v24 = vmul.f32 %v1920_v23, %v1875_v0  ;;  %v1312_v31 = vmul.f32 %v1929_v28, %v1887_v9  ;;  %v1176_v18 = vmul.f32 %v1920_v23, %v1975_v47  ;;  %v1175_v19 = vmul.f32 %v1920_v23, %v1965_v43 }
  0xae   : > { %1185 = vrot.lane.b32.xlu1 %v1177_v24, %s1692_s21  ;;  %1293 = vrot.lane.b32.xlu0 %v1285_v25, %s1692_s21  ;;  %v1284_v24 = vmul.f32 %v1912_v20, %v1975_v47  ;;  %v1311_v20 = vmul.f32 %v1929_v28, %v1999_v59 }
  0xaf   : > { %v1933_v29 = vpop.permute.xlu1 %1199  ;;  %v1335_v17 = vpop.permute.xlu0 %1334 }
  0xb0   : > { %v1204_v30 = vmul.f32 %v1933_v29, %v1887_v9  ;;  %v1203_v25 = vmul.f32 %v1933_v29, %v1999_v59  ;;  %v1202_v26 = vmul.f32 %v1933_v29, %v1991_v55 }
  0xb2   : > { %1212 = vrot.lane.b32.xlu1 %v1204_v30, %s1692_s21  ;;  %1320 = vrot.lane.b32.xlu0 %v1312_v31, %s1692_s21  ;;  %v1310_v30 = vmul.f32 %v1929_v28, %v1991_v55  ;;  %v1647_v28 = vld [vmem:[%s2479_s3 + $0x1] ss:$2 sm:$0x3] }
  0xb3   : > { %v1948_v35 = vpop.permute.xlu1 %1226  ;;  %v2074_v31 = vpop.permute.xlu0 %457  ;;  %v1407_v50 = vrot.slane %v1647_v28, %v1853_v48 }
  0xb4   : > { %v1231_v37 = vmul.f32 %v1948_v35, %v1899_v15  ;;  %v1230_v33 = vmul.f32 %v1948_v35, %v2022_v3 }
  0xb6   : > { %1239 = vrot.lane.b32.xlu1 %v1231_v37, %s1692_s21  ;;  %681 = vrot.lane.b32.xlu0 %v677_v38, %s1691_s19  ;;  %v1229_v37 = vmul.f32 %v1948_v35, %v2015_v5  ;;  %v1337_v38 = vmul.f32 %v1335_v17, %v2015_v5  ;;  %v1403_v35 = vrot.slane %v1647_v28, %v1845_v42 }
  0xb7   : > { %v2058_v22 = vpop.permute.xlu1 %447  ;;  %v2086_v29 = vpop.permute.xlu0 %506 }
  0xba   : > { %683 = vrot.lane.b32.xlu1 %v678_v44, %s1691_s19  ;;  %856 = vrot.lane.b32.xlu0 %v850_v45, %s1691_s19  ;;  %v1338_v44 = vmul.f32 %v1335_v17, %v2022_v3  ;;  %v1339_v45 = vmul.f32 %v1335_v17, %v1899_v15 }
  0xbb   : > { %v2068_v23 = vpop.permute.xlu1 %496 }
  0xbe   : > { %858 = vrot.lane.b32.xlu1 %v851_v51, %s1691_s19  ;;  %721 = vrot.lane.b32.xlu0 %v717_v49, %s1691_s19  ;;  %v2100_v49 = vpop.permute.xlu0 %519 }
  0xbf   : > { %v2082_v36 = vpop.permute.xlu1 %470 }
  0xc2   : > { %723 = vrot.lane.b32.xlu1 %v718_v52, %s1691_s19  ;;  %910 = vrot.lane.b32.xlu0 %v904_v57, %s1691_s19  ;;  %v283_v52 = vld [vmem:[#allocation2] sm:$0xff] }
  0xc3   : > { %v2096_v41 = vpop.permute.xlu1 %483  ;;  %v1612_v57 = vld [vmem:[%s2478_s2 + $0x4] sm:$0xf]  ;;  %v296_v62 = vrot.slane %v283_v52, %v1845_v42 }
  0xc6   : > { %912 = vrot.lane.b32.xlu1 %v905_v63, %s1691_s19  ;;  %761 = vrot.lane.b32.xlu0 %v757_v60, %s1691_s19  ;;  %v2112_v60 = vpop.permute.xlu0 %532  ;;  %v300_v63 = vrot.slane %v283_v52, %v299_v27 }
  0xc7   : > { %v546_v51 = vpop.permute.xlu1 %545 }
  0xc8   : > { %v2129_v27 = vrot.slane %v300_v63, %v1845_v42 }
  0xca   : > { %763 = vrot.lane.b32.xlu1 %v758_v1, %s1691_s19  ;;  %964 = vrot.lane.b32.xlu0 %v958_v6, %s1691_s19  ;;  %v284_v1 = vld [vmem:[#allocation2 + $0x8] sm:$0xf]  ;;  %v1614_v6 = vld [vmem:[%s2478_s2 + $0xc] sm:$0xf] }
  0xcb   : > { %v421_v63 = vrot.slane %v284_v1, %v1870_v61 }
  0xce   : > { %966 = vrot.lane.b32.xlu1 %v959_v8, %s1691_s19  ;;  %801 = vrot.lane.b32.xlu0 %v797_v7, %s1691_s19  ;;  %v601_v7 = vpop.permute.xlu1 %600  ;;  %v333_v8 = vrot.slane %v283_v52, %v1853_v48 }
  0xd2   : > { %803 = vrot.lane.b32.xlu1 %v798_v10, %s1691_s19  ;;  %1018 = vrot.lane.b32.xlu0 %v1012_v11, %s1691_s19  ;;  %v304_v10 = vrot.slane %v284_v1, %v1845_v42  ;;  %v2126_v11 = vrot.slane %v296_v62, %v1845_v42 }
  0xd6   : > { %1020 = vrot.lane.b32.xlu1 %v1013_v13, %s1691_s19  ;;  %1156 = vrot.lane.b32.xlu0 %v1149_v4, %s1692_s21  ;;  %v574_v13 = vpop.permute.xlu0 %573  ;;  %v549_v4 = vmul.f32 %v546_v51, %v2129_v27 }
  0xda   : > { %1154 = vrot.lane.b32.xlu1 %v1148_v14, %s1692_s21  ;;  %1262 = vrot.lane.b32.xlu0 %v1256_v16, %s1692_s21  ;;  %v548_v14 = vmul.f32 %v546_v51, %v2126_v11  ;;  %v337_v16 = vrot.slane %v283_v52, %v336_v34  ;;  %v373_v34 = vrot.slane %v283_v52, %v1863_v56 }
  0xde   : > { %1264 = vrot.lane.b32.xlu1 %v1257_v12, %s1692_s21  ;;  %1183 = vrot.lane.b32.xlu0 %v1176_v18, %s1692_s21  ;;  %v341_v12 = vrot.slane %v284_v1, %v1853_v48  ;;  %v2137_v18 = vrot.slane %v333_v8, %v1853_v48 }
  0xe0   : > { %v576_v17 = vmul.f32 %v574_v13, %v2137_v18 }
  0xe2   : > { %1181 = vrot.lane.b32.xlu1 %v1175_v19, %s1692_s21  ;;  %1289 = vrot.lane.b32.xlu0 %v1283_v21, %s1692_s21  ;;  %v2140_v19 = vrot.slane %v304_v10, %v1845_v42  ;;  %v1037_v21 = vpop.permute.xlu1 %1036 }
  0xe6   : > { %1291 = vrot.lane.b32.xlu1 %v1284_v24, %s1692_s21  ;;  %1210 = vrot.lane.b32.xlu0 %v1203_v25, %s1692_s21  ;;  %v628_v24 = vpop.permute.xlu0 %627  ;;  %v550_v25 = vmul.f32 %v546_v51, %v2140_v19 }
  0xea   : > { %1208 = vrot.lane.b32.xlu1 %v1202_v26, %s1692_s21  ;;  %1316 = vrot.lane.b32.xlu0 %v1310_v30, %s1692_s21  ;;  %v2148_v26 = vrot.slane %v337_v16, %v1853_v48  ;;  %v2151_v30 = vrot.slane %v341_v12, %v1853_v48 }
  0xee   : > { %1318 = vrot.lane.b32.xlu1 %v1311_v20, %s1692_s21  ;;  %1237 = vrot.lane.b32.xlu0 %v1230_v33, %s1692_s21  ;;  %v377_v20 = vrot.slane %v283_v52, %v376_v46  ;;  %v577_v33 = vmul.f32 %v574_v13, %v2148_v26  ;;  %v413_v46 = vrot.slane %v283_v52, %v1870_v61 }
  0xf2   : > { %1235 = vrot.lane.b32.xlu1 %v1229_v37, %s1692_s21  ;;  %1343 = vrot.lane.b32.xlu0 %v1337_v38, %s1692_s21  ;;  %v578_v37 = vmul.f32 %v574_v13, %v2151_v30  ;;  %v1065_v38 = vpop.permute.xlu1 %1064 }
  0xf6   : > { %1345 = vrot.lane.b32.xlu1 %v1338_v44, %s1692_s21  ;;  %1347 = vrot.lane.b32.xlu0 %v1339_v45, %s1692_s21  ;;  %v381_v44 = vrot.slane %v284_v1, %v1863_v56  ;;  %v2163_v45 = vrot.slane %v373_v34, %v1863_v56 }
  0xf8   : > { %v2178_v62 = vrot.slane %v381_v44, %v1863_v56 }
  0xfa   : > { %1408 = vrot.lane.b32.xlu1 %v1403_v35, %s1693_s24  ;;  %1410 = vrot.lane.b32.xlu0 %v1407_v50, %s1693_s24  ;;  %v2166_v35 = vrot.slane %v377_v20, %v1863_v56  ;;  %2486 = vst [vmem:[#allocation4_spill] sm:$0xff] %v2178_v62  ;;  %v605_v13 = vmul.f32 %v601_v7, %v2178_v62 }
  0xfb   : > { %v2194_v56 = vrot.slane %v421_v63, %v1870_v61  ;;  %v1069_v20 = vmul.f32 %v1065_v38, %v1875_v0  ;;  %v524_v0 = vmul.f32 %v2100_v49, %v2178_v62  ;;  %v1357_v63 = vld [vmem:[%s2479_s3] ss:$2 sm:$0x3] }
  0xfc   : > { %v604_v51 = vmul.f32 %v601_v7, %v2166_v35 }
  0xfd   : > { %2487 = vst [vmem:[#allocation5_spill] sm:$0xff] %v2194_v56  ;;  %v632_v1 = vmul.f32 %v628_v24, %v2194_v56 }
  0xfe   : > { %288 = vperm.xlu1 %1677, %v285_v53   ;;  %327 = vperm.xlu0 %1675, %v1612_v57   ;;  %v603_v53 = vmul.f32 %v601_v7, %v2163_v45  ;;  %v417_v57 = vrot.slane %v283_v52, %v416_v58  ;;  %v1039_v7 = vmul.f32 %v1037_v21, %v1940_v32 }
  0xff   : > { %v501_v32 = vmul.f32 %v2068_v23, %v2140_v19 }
 0x100   : > { %v2191_v58 = vrot.slane %v417_v57, %v1870_v61 }
 0x102   : > { %367 = vperm.xlu1 %1677, %v1613_v2   ;;  %407 = vperm.xlu0 %1675, %v1614_v6   ;;  %v2182_v2 = vrot.slane %v413_v46, %v1870_v61  ;;  %v1092_v6 = vpop.permute.xlu1 %1091  ;;  %v631_v52 = vmul.f32 %v628_v24, %v2191_v58  ;;  %v1040_v61 = vmul.f32 %v1037_v21, %v1957_v39 }
 0x103   : > { %v1068_v39 = vmul.f32 %v1065_v38, %v1975_v47  ;;  %v1095_v44 = vmul.f32 %v1092_v6, %v1999_v59 }
 0x104   : > { %v630_v8 = vmul.f32 %v628_v24, %v2182_v2  ;;  %v1067_v24 = vmul.f32 %v1065_v38, %v1965_v43  ;;  %v511_v43 = vmul.f32 %v2086_v29, %v2151_v30  ;;  %v537_v38 = vmul.f32 %v2112_v60, %v2194_v56 }
 0x106   : > { %556 = vrot.lane.b32.xlu0 %v549_v4, %s1691_s19  ;;  %554 = vrot.lane.b32.xlu1 %v548_v14, %s1691_s19  ;;  %v1119_v4 = vpop.permute.xlu1 %1118 }
 0x10a   : > { %582 = vrot.lane.b32.xlu0 %v576_v17, %s1691_s19  ;;  %558 = vrot.lane.b32.xlu1 %v550_v25, %s1691_s19  ;;  %v1041_v17 = vmul.f32 %v1037_v21, %v1859_v54  ;;  %v514_v21 = vadd.f32 %v511_v43, %v501_v32 }
 0x10c   : > { %v2159_v28 = vpop.permute.xlu0 %860  ;;  %v527_v57 = vadd.f32 %v524_v0, %v514_v21 }
 0x10e   : > { %586 = vrot.lane.b32.xlu0 %v578_v37, %s1691_s19  ;;  %584 = vrot.lane.b32.xlu1 %v577_v33, %s1691_s19  ;;  %v1094_v37 = vmul.f32 %v1092_v6, %v1991_v55  ;;  %v1121_v55 = vmul.f32 %v1119_v4, %v2015_v5  ;;  %v540_v5 = vadd.f32 %v537_v38, %v527_v57 }
 0x110   : > { %v2171_v50 = vpop.permute.xlu0 %914 }
 0x112   : > { %611 = vrot.lane.b32.xlu0 %v604_v51, %s1691_s19  ;;  %609 = vrot.lane.b32.xlu1 %v603_v53, %s1691_s19  ;;  %v1096_v51 = vmul.f32 %v1092_v6, %v1887_v9 }
 0x114   : > { %v2187_v10 = vpop.permute.xlu0 %968 }
 0x116   : > { %636 = vrot.lane.b32.xlu0 %v630_v8, %s1691_s19  ;;  %613 = vrot.lane.b32.xlu1 %v605_v13, %s1691_s19  ;;  %v1122_v8 = vmul.f32 %v1119_v4, %v2022_v3  ;;  %v1123_v13 = vmul.f32 %v1119_v4, %v1899_v15  ;;  %v1362_v3 = vrot.slane %v1357_v63, %v1845_v42 }
 0x117   : > { %v452_v42 = vmul.f32 %v2058_v22, %v2140_v19 }
 0x118   : > { %v2200_v14 = vpop.permute.xlu0 %1022 }
 0x11a   : > { %640 = vrot.lane.b32.xlu0 %v632_v1, %s1691_s19  ;;  %638 = vrot.lane.b32.xlu1 %v631_v52, %s1691_s19 }
 0x11c   : > { %v2206_v16 = vpop.permute.xlu1 %1158  ;;  %v2208_v12 = vpop.permute.xlu0 %1266 }
 0x11e   : > { %1047 = vrot.lane.b32.xlu0 %v1040_v61, %s1692_s21  ;;  %1045 = vrot.lane.b32.xlu1 %v1039_v7, %s1692_s21  ;;  %v1366_v7 = vrot.slane %v1357_v63, %v1853_v48 }
 0x120   : > { %v2214_v25 = vpop.permute.xlu1 %1185  ;;  %v2216_v34 = vpop.permute.xlu0 %1293 }
 0x122   : > { %1073 = vrot.lane.b32.xlu0 %v1067_v24, %s1692_s21  ;;  %1049 = vrot.lane.b32.xlu1 %v1041_v17, %s1692_s21 }
 0x124   : > { %v2224_v33 = vpop.permute.xlu1 %1212  ;;  %v2226_v54 = vpop.permute.xlu0 %1320 }
 0x126   : > { %1077 = vrot.lane.b32.xlu0 %v1069_v20, %s1692_s21  ;;  %1075 = vrot.lane.b32.xlu1 %v1068_v39, %s1692_s21  ;;  %v462_v39 = vmul.f32 %v2074_v31, %v2151_v30  ;;  %v475_v20 = vmul.f32 %v2082_v36, %v2178_v62 }
 0x128   : > { %v2234_v46 = vpop.permute.xlu1 %1239  ;;  %v2236_v47 = vpop.permute.xlu0 %681 }
 0x12a   : > { %1102 = vrot.lane.b32.xlu0 %v1095_v44, %s1692_s21  ;;  %1100 = vrot.lane.b32.xlu1 %v1094_v37, %s1692_s21  ;;  %v465_v37 = vadd.f32 %v462_v39, %v452_v42  ;;  %v488_v44 = vmul.f32 %v2096_v41, %v2194_v56  ;;  %v461_v42 = vmul.f32 %v2074_v31, %v2148_v26 }
 0x12b   : > { %v499_v39 = vmul.f32 %v2068_v23, %v2126_v11 }
 0x12c   : > { %v2246_v53 = vpop.permute.xlu1 %683  ;;  %v2248_v59 = vpop.permute.xlu0 %856  ;;  %v478_v38 = vadd.f32 %v475_v20, %v465_v37  ;;  %v509_v37 = vmul.f32 %v2086_v29, %v2137_v18 }
 0x12e   : > { %1127 = vrot.lane.b32.xlu0 %v1121_v55, %s1692_s21  ;;  %1104 = vrot.lane.b32.xlu1 %v1096_v51, %s1692_s21  ;;  %v491_v57 = vadd.f32 %v488_v44, %v478_v38  ;;  %v474_v38 = vmul.f32 %v2082_v36, %v2166_v35 }
 0x130   : > { %v2257_v9 = vpop.permute.xlu1 %858  ;;  %v2259_v6 = vpop.permute.xlu0 %721  ;;  %v691_v63 = vadd.f32 %v2246_v53, %v491_v57 }
 0x131   : > { %v863_v52 = vsel %vm560_vm2, %v2257_v9, %v2159_v28 }
 0x132   : > { %v869_v1 = vadd.f32 %v863_v52, %v540_v5  ;;  %1131 = vrot.lane.b32.xlu0 %v1123_v13, %s1692_s21  ;;  %1129 = vrot.lane.b32.xlu1 %v1122_v8, %s1692_s21  ;;  %s231_s21 = scalar_lea.vmem %s2480_s4, %s1842_s15 }
 0x134   : > { %v2268_v15 = vpop.permute.xlu1 %723  ;;  %v2270_v4 = vpop.permute.xlu0 %910 }
 0x135   : > { %v731_v5 = vadd.f32 %v2268_v15, %v691_v63 }
 0x136   : > { %1369 = vrot.lane.b32.xlu0 %v1366_v7, %s1694_s10  ;;  %1367 = vrot.lane.b32.xlu1 %v1362_v3, %s1694_s10 }
 0x138   : > { %v2272_v61 = vpop.permute.xlu1 %912  ;;  %v2274_v17 = vpop.permute.xlu0 %761 }
 0x139   : > { %v917_v28 = vsel %vm560_vm2, %v2272_v61, %v2171_v50 }
 0x13a   : > { %v923_v24 = vadd.f32 %v917_v28, %v869_v1  ;;  %v451_v1 = vmul.f32 %v2058_v22, %v2129_v27 }
 0x13c   : > { %v2279_v32 = vpop.permute.xlu1 %763  ;;  %v2281_v48 = vpop.permute.xlu0 %964  ;;  %v464_v44 = vadd.f32 %v461_v42, %v451_v1 }
 0x13d   : > { %v771_v7 = vadd.f32 %v2279_v32, %v731_v5  ;;  %v486_v5 = vmul.f32 %v2096_v41, %v2182_v2 }
 0x140   : > { %v2289_v43 = vpop.permute.xlu1 %966  ;;  %v2291_v21 = vpop.permute.xlu0 %801 }
 0x141   : > { %v971_v50 = vsel %vm560_vm2, %v2289_v43, %v2187_v10 }
 0x142   : > { %v977_v0 = vadd.f32 %v971_v50, %v923_v24  ;;  %v450_v24 = vmul.f32 %v2058_v22, %v2126_v11  ;;  %v460_v50 = vmul.f32 %v2074_v31, %v2137_v18  ;;  %v510_v22 = vmul.f32 %v2086_v29, %v2148_v26 }
 0x144   : > { %v2298_v51 = vpop.permute.xlu1 %803  ;;  %v2300_v55 = vpop.permute.xlu0 %1018 }
 0x145   : > { %v811_v20 = vadd.f32 %v2298_v51, %v771_v7  ;;  %v512_v7 = vadd.f32 %v509_v37, %v499_v39 }
 0x148   : > { %v2303_v8 = vpop.permute.xlu1 %1020  ;;  %v2305_v13 = vpop.permute.xlu0 %1156 }
 0x149   : > { %v1025_v10 = vsel %vm560_vm2, %v2303_v8, %v2200_v14  ;;  %v1161_v14 = vsel %vm1051_vm3, %v2305_v13, %v2206_v16  ;;  %v473_v16 = vmul.f32 %v2082_v36, %v2163_v45 }
 0x14a   : > { %v1031_v52 = vadd.f32 %v1025_v10, %v977_v0  ;;  %v500_v0 = vmul.f32 %v2068_v23, %v2129_v27  ;;  %v1167_v57 = vadd.f32 %v1161_v14, %v811_v20  ;;  %v463_v10 = vadd.f32 %v460_v50, %v450_v24 }
 0x14b   : > { %v487_v23 = vmul.f32 %v2096_v41, %v2191_v58  ;;  %v522_v24 = vmul.f32 %v2100_v49, %v2163_v45  ;;  %v477_v50 = vadd.f32 %v474_v38, %v464_v44  ;;  %v523_v41 = vmul.f32 %v2100_v49, %v2166_v35 }
 0x14c   : > { %v2314_v3 = vpop.permute.xlu1 %1154  ;;  %v2316_v28 = vpop.permute.xlu0 %1262  ;;  %v476_v42 = vadd.f32 %v473_v16, %v463_v10  ;;  %v513_v20 = vadd.f32 %v510_v22, %v500_v0  ;;  %v725_v22 = vsel %vm560_vm2, %v2259_v6, %v2268_v15  ;;  %v536_v16 = vmul.f32 %v2112_v60, %v2191_v58 }
 0x14d   : > { %v525_v39 = vadd.f32 %v522_v24, %v512_v7 }
 0x14e   : > { %v489_v62 = vadd.f32 %v486_v5, %v476_v42  ;;  %v526_v0 = vadd.f32 %v523_v41, %v513_v20 }
 0x150   : > { %v2340_v63 = vpop.permute.xlu1 %1264  ;;  %v1184_v31 = vpop.permute.xlu0 %1183  ;;  %v689_v37 = vadd.f32 %v2236_v47, %v489_v62 }
 0x151   : > { %v1269_v29 = vsel %vm1051_vm3, %v2340_v63, %v2208_v12  ;;  %v1188_v1 = vsel %vm1051_vm3, %v1184_v31, %v2214_v25  ;;  %v685_v12 = vsel %vm560_vm2, %v2236_v47, %v2246_v53  ;;  %v535_v25 = vmul.f32 %v2112_v60, %v2182_v2 }
 0x152   : > { %v1275_v36 = vadd.f32 %v1269_v29, %v1031_v52  ;;  %v1194_v14 = vadd.f32 %v1188_v1, %v1167_v57  ;;  %v490_v52 = vadd.f32 %v487_v23, %v477_v50  ;;  %v729_v49 = vadd.f32 %v2259_v6, %v689_v37 }
 0x153   : > { %v765_v57 = vsel %vm560_vm2, %v2274_v17, %v2279_v32  ;;  %v538_v15 = vadd.f32 %v535_v25, %v525_v39  ;;  %v862_v29 = vsel %vm560_vm2, %v2248_v59, %v2257_v9  ;;  %v805_v32 = vsel %vm560_vm2, %v2291_v21, %v2298_v51 }
 0x154   : > { %v1182_v40 = vpop.permute.xlu1 %1181  ;;  %v2353_v56 = vpop.permute.xlu0 %1289  ;;  %v690_v44 = vadd.f32 %v685_v12, %v490_v52  ;;  %v769_v6 = vadd.f32 %v2274_v17, %v729_v49  ;;  %v1160_v9 = vsel %vm1051_vm3, %v2314_v3, %v2305_v13  ;;  %v1024_v13 = vsel %vm560_vm2, %v2300_v55, %v2303_v8 }
 0x155   : > { %v867_v1 = vadd.f32 %v2248_v59, %v538_v15  ;;  %v970_v59 = vsel %vm560_vm2, %v2281_v48, %v2289_v43  ;;  %v1187_v24 = vsel %vm1051_vm3, %v1182_v40, %v1184_v31 }
 0x156   : > { %v730_v10 = vadd.f32 %v725_v22, %v690_v44 }
 0x157   : > { %v921_v42 = vadd.f32 %v2270_v4, %v867_v1 }
 0x158   : > { %v1292_v53 = vpop.permute.xlu1 %1291  ;;  %v1211_v38 = vpop.permute.xlu0 %1210  ;;  %v770_v23 = vadd.f32 %v765_v57, %v730_v10 }
 0x159   : > { %v1296_v62 = vsel %vm1051_vm3, %v1292_v53, %v2216_v34  ;;  %v1215_v47 = vsel %vm1051_vm3, %v1211_v38, %v2224_v33  ;;  %v539_v34 = vadd.f32 %v536_v16, %v526_v0  ;;  %v1295_v0 = vsel %vm1051_vm3, %v2353_v56, %v1292_v53 }
 0x15a   : > { %v1302_v5 = vadd.f32 %v1296_v62, %v1275_v36  ;;  %v1221_v60 = vadd.f32 %v1215_v47, %v1194_v14  ;;  %v916_v36 = vsel %vm560_vm2, %v2270_v4, %v2272_v61  ;;  %v809_v14 = vadd.f32 %v2291_v21, %v769_v6 }
 0x15b   : > { %v868_v17 = vadd.f32 %v862_v29, %v539_v34  ;;  %v810_v51 = vadd.f32 %v805_v32, %v770_v23  ;;  %v975_v61 = vadd.f32 %v2281_v48, %v921_v42  ;;  %v1268_v48 = vsel %vm1051_vm3, %v2316_v28, %v2340_v63 }
 0x15c   : > { %v1209_v7 = vpop.permute.xlu1 %1208  ;;  %v1317_v33 = vpop.permute.xlu0 %1316  ;;  %v1165_v20 = vadd.f32 %v2314_v3, %v809_v14 }
 0x15d   : > { %v922_v50 = vadd.f32 %v916_v36, %v868_v17  ;;  %v1166_v21 = vadd.f32 %v1160_v9, %v810_v51  ;;  %v1214_v25 = vsel %vm1051_vm3, %v1209_v7, %v1211_v38  ;;  %v1029_v31 = vadd.f32 %v2300_v55, %v975_v61 }
 0x15e   : > { %v1192_v4 = vadd.f32 %v1182_v40, %v1165_v20 }
 0x15f   : > { %v976_v52 = vadd.f32 %v970_v59, %v922_v50  ;;  %v1193_v3 = vadd.f32 %v1187_v24, %v1166_v21  ;;  %v1273_v40 = vadd.f32 %v2316_v28, %v1029_v31 }
 0x160   : > { %v1319_v12 = vpop.permute.xlu1 %1318  ;;  %v1238_v41 = vpop.permute.xlu0 %1237  ;;  %v1219_v37 = vadd.f32 %v1209_v7, %v1192_v4 }
 0x161   : > { %v1323_v43 = vsel %vm1051_vm3, %v1319_v12, %v2226_v54  ;;  %v1030_v22 = vadd.f32 %v1024_v13, %v976_v52  ;;  %v1220_v16 = vadd.f32 %v1214_v25, %v1193_v3  ;;  %v1242_v55 = vsel %vm1051_vm3, %v1238_v41, %v2234_v46 }
 0x162   : > { %v1329_v39 = vadd.f32 %v1323_v43, %v1302_v5  ;;  %v1300_v63 = vadd.f32 %v2353_v56, %v1273_v40  ;;  %v1322_v62 = vsel %vm1051_vm3, %v1317_v33, %v1319_v12  ;;  %v1248_v53 = vadd.f32 %v1242_v55, %v1221_v60  ;;  %v2488_v55 = vld [vmem:[#allocation4_spill] sm:$0xff] }
 0x163   : > { %v1274_v49 = vadd.f32 %v1268_v48, %v1030_v22 }
 0x164   : > { %v1236_v44 = vpop.permute.xlu1 %1235  ;;  %v1344_v8 = vpop.permute.xlu0 %1343  ;;  %v1327_v10 = vadd.f32 %v1317_v33, %v1300_v63 }
 0x165   : > { %v1241_v54 = vsel %vm1051_vm3, %v1236_v44, %v1238_v41  ;;  %v1246_v38 = vadd.f32 %v1236_v44, %v1219_v37  ;;  %v1301_v47 = vadd.f32 %v1295_v0, %v1274_v49 }
 0x166   : > { %v1247_v57 = vadd.f32 %v1241_v54, %v1220_v16  ;;  %v1354_v46 = vadd.f32 %v1344_v8, %v1327_v10 }
 0x167   : > { %1382 = vrot.lane.b32.xlu1 %v1246_v38, %s1695_s11  ;;  %v1328_v29 = vadd.f32 %v1322_v62, %v1301_v47 }
 0x168   : > { %v1346_v15 = vpop.permute.xlu1 %1345  ;;  %v1348_v28 = vpop.permute.xlu0 %1347  ;;  %1384 = vrot.lane.b32.xlu0 %v1247_v57, %s1695_s11 }
 0x169   : > { %v1349_v5 = vsel %vm1051_vm3, %v1344_v8, %v1346_v15  ;;  %v1350_v6 = vsel %vm1051_vm3, %v1346_v15, %v1348_v28 }
 0x16a   : > { %v1355_v32 = vadd.f32 %v1349_v5, %v1328_v29  ;;  %v1356_v34 = vadd.f32 %v1350_v6, %v1329_v39 }
 0x16b   : > { %1386 = vrot.lane.b32.xlu1 %v1248_v53, %s1695_s11 }
 0x16c   : > { %v1409_v56 = vpop.permute.xlu1 %1408  ;;  %v1411_v1 = vpop.permute.xlu0 %1410 }
 0x16d   : > { %v1417_v23 = vmul.f32 %v1409_v56, %v1354_v46  ;;  %v1413_v7 = vsel %vm1412_vm4, %v1409_v56, %v1411_v1  ;;  %v1419_v33 = vmul.f32 %v1411_v1, %v1356_v34 }
 0x16e   : > { %v1418_v36 = vmul.f32 %v1413_v7, %v1355_v32 }
 0x16f   : > { %1423 = vrot.lane.b32.xlu0 %v1417_v23, %s1696_s12 }
 0x170   : > { %1425 = vrot.lane.b32.xlu1 %v1418_v36, %s1696_s12 }
 0x173   : > { %1427 = vrot.lane.b32.xlu0 %v1419_v33, %s1696_s12 }
 0x17d   : > { %v289_v60 = vpop.permute.xlu1 %288  ;;  %v328_v14 = vpop.permute.xlu0 %327 }
 0x17e   : > { %v320_v31 = vmul.f32 %v2126_v11, %v289_v60  ;;  %v357_v48 = vmul.f32 %v2137_v18, %v328_v14  ;;  %v322_v8 = vmul.f32 %v2140_v19, %v289_v60  ;;  %v359_v40 = vmul.f32 %v2151_v30, %v328_v14 }
 0x17f   : > { %v321_v38 = vmul.f32 %v2129_v27, %v289_v60  ;;  %v358_v49 = vmul.f32 %v2148_v26, %v328_v14  ;;  %v2489_v27 = vld [vmem:[#allocation5_spill] sm:$0xff] }
 0x180   : > { %v360_v44 = vadd.f32 %v357_v48, %v320_v31 }
 0x181   : > { %v368_v9 = vpop.permute.xlu1 %367  ;;  %v408_v17 = vpop.permute.xlu0 %407  ;;  %v361_v47 = vadd.f32 %v358_v49, %v321_v38 }
 0x182   : > { %v397_v22 = vmul.f32 %v2163_v45, %v368_v9  ;;  %v399_v57 = vmul.f32 %v2488_v55, %v368_v9  ;;  %v437_v11 = vmul.f32 %v2182_v2, %v408_v17  ;;  %v398_v18 = vmul.f32 %v2166_v35, %v368_v9 }
 0x183   : > { %v362_v45 = vadd.f32 %v359_v40, %v322_v8  ;;  %v439_v53 = vmul.f32 %v2489_v27, %v408_v17  ;;  %v438_v5 = vmul.f32 %v2191_v58, %v408_v17 }
 0x184   : > { %v400_v0 = vadd.f32 %v397_v22, %v360_v44  ;;  %v401_v28 = vadd.f32 %v398_v18, %v361_v47 }
 0x185   : > { %v555_v42 = vpop.permute.xlu1 %554  ;;  %v557_v51 = vpop.permute.xlu0 %556  ;;  %v402_v15 = vadd.f32 %v399_v57, %v362_v45 }
 0x186   : > { %v440_v62 = vadd.f32 %v437_v11, %v400_v0  ;;  %v561_v19 = vsel %vm560_vm2, %v555_v42, %v557_v51  ;;  %v441_v32 = vadd.f32 %v438_v5, %v401_v28 }
 0x187   : > { %v442_v35 = vadd.f32 %v439_v53, %v402_v15 }
 0x188   : > { %v566_v26 = vadd.f32 %v561_v19, %v440_v62 }
 0x189   : > { %v559_v59 = vpop.permute.xlu1 %558  ;;  %v583_v20 = vpop.permute.xlu0 %582 }
 0x18a   : > { %v562_v6 = vsel %vm560_vm2, %v557_v51, %v559_v59  ;;  %v568_v1 = vadd.f32 %v559_v59, %v442_v35 }
 0x18b   : > { %v567_v36 = vadd.f32 %v562_v6, %v441_v32 }
 0x18d   : > { %v585_v24 = vpop.permute.xlu1 %584  ;;  %v587_v50 = vpop.permute.xlu0 %586 }
 0x18e   : > { %v588_v10 = vsel %vm560_vm2, %v583_v20, %v585_v24  ;;  %v589_v34 = vsel %vm560_vm2, %v585_v24, %v587_v50  ;;  %v595_v33 = vadd.f32 %v587_v50, %v568_v1  ;;  %v1698_v1 = vmov 1983009808  }
 0x18f   : > { %v593_v46 = vadd.f32 %v588_v10, %v566_v26  ;;  %v594_v14 = vadd.f32 %v589_v34, %v567_v36  ;;  %v1446_v34 = vunpack.c.l.s4 %v1698_v1 }
 0x191   : > { %v610_v61 = vpop.permute.xlu1 %609  ;;  %v612_v21 = vpop.permute.xlu0 %611 }
 0x192   : > { %v615_v2 = vsel %vm560_vm2, %v610_v61, %v612_v21 }
 0x193   : > { %v620_v23 = vadd.f32 %v615_v2, %v593_v46 }
 0x195   : > { %v614_v12 = vpop.permute.xlu1 %613  ;;  %v637_v41 = vpop.permute.xlu0 %636 }
 0x196   : > { %v616_v60 = vsel %vm560_vm2, %v612_v21, %v614_v12  ;;  %v622_v17 = vadd.f32 %v614_v12, %v595_v33 }
 0x197   : > { %v621_v51 = vadd.f32 %v616_v60, %v594_v14 }
 0x199   : > { %v639_v13 = vpop.permute.xlu1 %638  ;;  %v641_v4 = vpop.permute.xlu0 %640 }
 0x19a   : > { %v642_v56 = vsel %vm560_vm2, %v637_v41, %v639_v13  ;;  %v643_v42 = vsel %vm560_vm2, %v639_v13, %v641_v4  ;;  %v649_v61 = vadd.f32 %v641_v4, %v622_v17 }
 0x19b   : > { %v647_v58 = vadd.f32 %v642_v56, %v620_v23  ;;  %v648_v31 = vadd.f32 %v643_v42, %v621_v51  ;;  %v1447_v23 = vunpack.c.0.s8 %v1446_v34 }
 0x19d   : > { %v1046_v25 = vpop.permute.xlu1 %1045  ;;  %v1048_v43 = vpop.permute.xlu0 %1047 }
 0x19e   : > { %v1052_v59 = vsel %vm1051_vm3, %v1046_v25, %v1048_v43  ;;  %v1057_v41 = vadd.f32 %v1046_v25, %v647_v58 }
 0x19f   : > { %v1058_v8 = vadd.f32 %v1052_v59, %v648_v31 }
 0x1a1   : > { %v1050_v52 = vpop.permute.xlu1 %1049  ;;  %v1074_v3 = vpop.permute.xlu0 %1073 }
 0x1a2   : > { %v1053_v20 = vsel %vm1051_vm3, %v1048_v43, %v1050_v52  ;;  %v1084_v22 = vadd.f32 %v1074_v3, %v1057_v41 }
 0x1a3   : > { %v1059_v21 = vadd.f32 %v1053_v20, %v649_v61 }
 0x1a5   : > { %v1076_v39 = vpop.permute.xlu1 %1075  ;;  %v1078_v37 = vpop.permute.xlu0 %1077 }
 0x1a6   : > { %v1080_v48 = vsel %vm1051_vm3, %v1076_v39, %v1078_v37  ;;  %v1079_v44 = vsel %vm1051_vm3, %v1074_v3, %v1076_v39 }
 0x1a7   : > { %v1086_v13 = vadd.f32 %v1080_v48, %v1059_v21  ;;  %v1085_v43 = vadd.f32 %v1079_v44, %v1058_v8 }
 0x1a9   : > { %v1101_v16 = vpop.permute.xlu1 %1100  ;;  %v1103_v54 = vpop.permute.xlu0 %1102 }
 0x1aa   : > { %v1106_v40 = vsel %vm1051_vm3, %v1101_v16, %v1103_v54  ;;  %v1111_v52 = vadd.f32 %v1101_v16, %v1084_v22 }
 0x1ab   : > { %v1112_v55 = vadd.f32 %v1106_v40, %v1085_v43 }
 0x1ad   : > { %v1105_v63 = vpop.permute.xlu1 %1104  ;;  %v1128_v30 = vpop.permute.xlu0 %1127 }
 0x1ae   : > { %v1107_v12 = vsel %vm1051_vm3, %v1103_v54, %v1105_v63  ;;  %v1138_v37 = vadd.f32 %v1128_v30, %v1111_v52 }
 0x1af   : > { %v1113_v38 = vadd.f32 %v1107_v12, %v1086_v13 }
 0x1b1   : > { %v1130_v29 = vpop.permute.xlu1 %1129  ;;  %v1132_v7 = vpop.permute.xlu0 %1131 }
 0x1b2   : > { %v1134_v25 = vsel %vm1051_vm3, %v1130_v29, %v1132_v7  ;;  %v1133_v49 = vsel %vm1051_vm3, %v1128_v30, %v1130_v29  ;;  %v2490_v7 = vld [vmem:[#allocation3_spill] sm:$0xff] }
 0x1b3   : > { %v1140_v39 = vadd.f32 %v1134_v25, %v1113_v38  ;;  %v1139_v54 = vadd.f32 %v1133_v49, %v1112_v55  ;;  %v1450_v36 = vsub.s32 %v1447_v23, %v2490_v7 }
 0x1b5   : > { %v1368_v9 = vpop.permute.xlu1 %1367  ;;  %v1370_v24 = vpop.permute.xlu0 %1369 }
 0x1b6   : > { %v1372_v57 = vsel %vm1371_vm6, %v1368_v9, %v1370_v24  ;;  %v1376_v11 = vmul.f32 %v1368_v9, %v1138_v37  ;;  %v1378_v19 = vmul.f32 %v1370_v24, %v1140_v39 }
 0x1b7   : > { %v1377_v62 = vmul.f32 %v1372_v57, %v1139_v54 }
 0x1d9   : > { %v1383_v50 = vpop.permute.xlu1 %1382 }
 0x1da   : > { %v1385_v4 = vpop.permute.xlu0 %1384 }
 0x1db   : > { %v1389_v3 = vsel %vm1388_vm5, %v1383_v50, %v1385_v4 }
 0x1dc   : > { %v1394_v18 = vadd.f32 %v1389_v3, %v1376_v11 }
 0x1dd   : > { %v1387_v0 = vpop.permute.xlu1 %1386 }
 0x1de   : > { %v1390_v63 = vsel %vm1388_vm5, %v1385_v4, %v1387_v0  ;;  %v1396_v30 = vadd.f32 %v1387_v0, %v1378_v19 }
 0x1df   : > { %v1395_v28 = vadd.f32 %v1390_v63, %v1377_v62 }
 0x1e1   : > { %v1424_v16 = vpop.permute.xlu0 %1423 }
 0x1e2   : > { %v1426_v45 = vpop.permute.xlu1 %1425 }
 0x1e3   : > { %v1430_v47 = vsel %vm1429_vm7, %v1424_v16, %v1426_v45 }
 0x1e4   : > { %v1435_v15 = vadd.f32 %v1430_v47, %v1394_v18 }
 0x1e5   : > { %v1428_v10 = vpop.permute.xlu0 %1427 }
 0x1e6   : > { %v1431_v27 = vsel %vm1429_vm7, %v1426_v45, %v1428_v10  ;;  %1470 = vrot.lane.b32.xlu1 %v1435_v15, %s1697_s13  ;;  %v1437_v26 = vadd.f32 %v1428_v10, %v1396_v30 }
 0x1e7   : > { %v1436_v53 = vadd.f32 %v1431_v27, %v1395_v28 }
 0x1e8   : > { %v1440_v33 = vpack.c.bf16 %v1437_v26, %v1437_v26 }
 0x1e9   : > { %1472 = vrot.lane.b32.xlu0 %v1436_v53, %s1697_s13  ;;  %v1648_v60 = vpack.c.bf16 %v1436_v53, %v1435_v15 }
 0x1ea   : > { %1474 = vrot.lane.b32.xlu1 %v1437_v26, %s1697_s13  ;;  %v1458_v14 = vrot.slane %v1440_v33, %v1450_v36 }
 0x1eb   : > { %v1451_v58 = vrot.slane %v1648_v60, %v1450_v36 }
 0x1ed   : > { %v1459_v9 = vcombine.low %v1451_v58, %v1458_v14 }
 0x258   : > { %v1471_v5 = vpop.permute.xlu1 %1470 }
 0x25b   : > { %v1473_v2 = vpop.permute.xlu0 %1472 }
 0x25c   : > { %v1477_v29 = vsel %vm1463_vm8, %v1471_v5, %v1473_v2  ;;  %v1475_v35 = vpop.permute.xlu1 %1474 }
 0x25d   : > { %v1482_v6 = vsel %vm1481_vm9, %v1477_v29, 0.0  ;;  %v1478_v46 = vsel %vm1463_vm8, %v1473_v2, %v1475_v35 }
 0x25e   : > { %v1483_v32 = vsel %vm1481_vm9, %v1478_v46, 0.0 }
 0x25f   : > { %v1484_v56 = vadd.f32 %v1483_v32, %v1482_v6 }
 0x261   : > { %1485 = vadd.xlane.f32.xlu0 %v1484_v56 }
 0x277   : > { %1460 = vrot.lane.b32.xlu0 %v1459_v9, %s1697_s13 }
 0x2ee   : > { %v1486_v17 = vpop.xlane.xlu0 %1485 }
 0x2ef   : > { %v1487_v42 = vmul.f32 0.00390625, %v1486_v17 }
 0x2f1   : > { %v1488_v51 = vsub.f32 %v1435_v15, %v1487_v42  ;;  %1492 = vst.msk [vmem:[%s235_s17] sm:$0xf] %vm1491_vm10, %v1487_v42  ;;  %v1489_v41 = vsub.f32 %v1436_v53, %v1487_v42  ;;  %v1490_v48 = vsub.f32 %v1437_v26, %v1487_v42 }
 0x2f2   : > { %v1461_v20 = vpop.permute.xlu0 %1460 }
 0x2f3   : > { %v1462_v61 = vrot.slane %v1461_v20, 2  ;;  %v1493_v59 = vmul.f32 %v1488_v51, %v1488_v51  ;;  %v1494_v31 = vmul.f32 %v1489_v41, %v1489_v41  ;;  %v1495_v50 = vmul.f32 %v1490_v48, %v1490_v48 }
 0x2f5   : > { %v1464_v24 = vsel %vm1463_vm8, %v1461_v20, %v1462_v61  ;;  %1499 = vrot.lane.b32.xlu1 %v1493_v59, %s1697_s13 }
 0x2f6   : > { %1466 = vst [vmem:[%s231_s21] sm:$0xf] %v1464_v24 }
 0x2f9   : > { %1501 = vrot.lane.b32.xlu1 %v1494_v31, %s1697_s13 }
 0x2fd   : > { %1503 = vrot.lane.b32.xlu1 %v1495_v50, %s1697_s13 }
 0x367   : > { %v1500_v22 = vpop.permute.xlu1 %1499 }
 0x36b   : > { %v1502_v21 = vpop.permute.xlu1 %1501 }
 0x36c   : > { %v1505_v44 = vsel %vm1463_vm8, %v1500_v22, %v1502_v21 }
 0x36d   : > { %v1509_v13 = vsel %vm1481_vm9, %v1505_v44, 0.0 }
 0x36f   : > { %v1504_v8 = vpop.permute.xlu1 %1503 }
 0x370   : > { %v1506_v12 = vsel %vm1463_vm8, %v1502_v21, %v1504_v8 }
 0x371   : > { %v1510_v40 = vsel %vm1481_vm9, %v1506_v12, 0.0 }
 0x372   : > { %v1511_v52 = vadd.f32 %v1510_v40, %v1509_v13 }
 0x374   : > { %1512 = vadd.xlane.f32.xlu1 %v1511_v52 }
 0x401   : > { %v1513_v4 = vpop.xlane.xlu1 %1512 }
 0x402   : > { %1515 = vst.msk [vmem:[%s235_s17] sm:$0xf] %vm1514_vm11, %v1513_v4 }
 0x403 PF: > { %s16_s18 = sadd.s32 1, %s1684_s18  }
 0x404   : > { %p13_p4 = scmp.ge.s32.totalorder %s16_s18, 4  }
 0x406   :  { %15 = sbr.rel (!%p13_p4) target bundleno = 1 (0x1), region = 114 }

// kernel: residual_block.3
= control target key start
LH: loop header
LB: loop body
LE: loop exit
PB: predicated region body
PF: predicated region fallthrough
CT: control target
= control target key end

     0   :  { %s1647_s15 = smov 0   ;;  %s2295_s0 = inlined_call_operand.vmem [shape: f32[2,4,256], index: 0, kind: input, shape index: {}]   ;;  %s2296_s1 = inlined_call_operand.vmem [shape: f32[36,4,1], index: 1, kind: input, shape index: {}]   ;;  %s2297_s2 = inlined_call_operand.vmem [shape: f32[2,256], index: 2, kind: input, shape index: {}]   ;;  %s2298_s3 = inlined_call_operand.vmem [shape: bf16[2,4,256], index: 3, kind: output, shape index: {0}]   ;;  %s2299_s4 = inlined_call_operand.vmem [shape: f32[2,4,2], index: 4, kind: output, shape index: {1}]  }
   0x1 LB: > { %s1533_s16 = sadd.s32 4294967295, %s1610_s15   ;;  %p1537_p0 = scmp.ge.s32.totalorder %s1610_s15, 1  ;;  %s1610_s15 = sphi %s1647_s15, %s15_s15  }
   0x2   : > { %p165_p1 = scmp.lt.s32.totalorder %s1610_s15, 3 }
   0x4   : > { %p166_p2 = pnand %p1537_p0, %p165_p1 }
   0x6   : > { %169 = sbr.rel (%p166_p2) target bundleno = 1018 (0x3fa), region = 32 }
   0xd   : > { %v1559_v0 = vld [vmem:[%s2296_s1 + $0x44] sm:$0xf]  ;;  %v1558_v1 = vld [vmem:[%s2296_s1 + $0x40] sm:$0xf]  ;;  %v1612_v2 = vmov 0   ;;  %p195_p3 = scmp.lt.s32.totalorder %s1533_s16, 1  ;;  %v224_v19 = vlaneseq }
   0xe   : > { %1603 = vset.pattern.permute.xlu1 %v1612_v2  ;;  %1602 = vset.pattern.permute.xlu0 %v1612_v2  ;;  %v1563_v3 = vld [vmem:[%s2296_s1 + $0x54] sm:$0xf]  ;;  %v1562_v4 = vld [vmem:[%s2296_s1 + $0x50] sm:$0xf]  ;;  %v1564_v5 = vld [vmem:[%s2296_s1 + $0x58] sm:$0xf] }
   0xf   : > { %627 = vperm.xlu1 %1603, %v1559_v0   ;;  %586 = vperm.xlu0 %1602, %v1558_v1   ;;  %v1560_v6 = vld [vmem:[%s2296_s1 + $0x48] sm:$0xf]  ;;  %v1565_v7 = vld [vmem:[%s2296_s1 + $0x5c] sm:$0xf]  ;;  %v1561_v8 = vld [vmem:[%s2296_s1 + $0x4c] sm:$0xf] }
  0x10   : > { %s2304_s16 = smov (!%p195_p3, %s1533_s16), 1  ;;  %vm210_vm0 = vcmask 134144   ;;  %v1613_v9 = vmov 0.0   ;;  %v1574_v10 = vld [vmem:[%s2296_s1 + $0x80] sm:$0xf]  ;;  %v1718_v22 = vshrl.u32 %v224_v19, 7 }
  0x11   : > { %209 = vst [vmem:[#allocation2] sm:$0xf] %v1613_v9  ;;  %211 = vst.msk [vmem:[#allocation2 + $0xc] sm:$0xf] %vm210_vm0, %v1613_v9  ;;  %s1582_s7 = sshll.u32 %s2304_s16, 3  ;;  %s1614_s11 = smov 112  }
  0x12   : > { %s199_s10 = scalar_lea.vmem %s2295_s0, %s1582_s7  ;;  %v1570_v11 = vld [vmem:[%s2296_s1 + $0x70] sm:$0xf]  ;;  %v1575_v13 = vld [vmem:[%s2296_s1 + $0x84] sm:$0xf]  ;;  %v1571_v14 = vld [vmem:[%s2296_s1 + $0x74] sm:$0xf] }
  0x13   : > { %805 = vperm.xlu1 %1603, %v1563_v3   ;;  %749 = vperm.xlu0 %1602, %v1562_v4   ;;  %v1691_v12 = vld [vmem:[%s199_s10] sm:$0xff]  ;;  %v1576_v15 = vld [vmem:[%s2296_s1 + $0x88] sm:$0xf]  ;;  %v1572_v16 = vld [vmem:[%s2296_s1 + $0x78] sm:$0xf]  ;;  %2301 = vst [vmem:[#allocation3_spill] sm:$0xff] %v1718_v22 }
  0x14   : > { %213 = vst [vmem:[#allocation2 + $0x4] sm:$0xff] %v1691_v12  ;;  %v1577_v17 = vld [vmem:[%s2296_s1 + $0x8c] sm:$0xf]  ;;  %v1573_v18 = vld [vmem:[%s2296_s1 + $0x7c] sm:$0xf]  ;;  %v307_v25 = vsub.s32 6, %v1718_v22 }
  0x15   : > { %v1547_v20 = vld [vmem:[%s2296_s1 + $0x14] sm:$0xf]  ;;  %v1546_v21 = vld [vmem:[%s2296_s1 + $0x10] sm:$0xf]  ;;  %v1551_v23 = vld [vmem:[%s2296_s1 + $0x24] sm:$0xf] }
  0x16   : > { %v1550_v24 = vld [vmem:[%s2296_s1 + $0x20] sm:$0xf]  ;;  %v1552_v28 = vld [vmem:[%s2296_s1 + $0x28] sm:$0xf]  ;;  %v1548_v29 = vld [vmem:[%s2296_s1 + $0x18] sm:$0xf] }
  0x17   : > { %859 = vperm.xlu1 %1603, %v1564_v5   ;;  %667 = vperm.xlu0 %1602, %v1560_v6   ;;  %v1739_v30 = vsub.s32 2, %v1718_v22  ;;  %v347_v31 = vsub.s32 7, %v1718_v22  ;;  %v1553_v33 = vld [vmem:[%s2296_s1 + $0x2c] sm:$0xf]  ;;  %v1549_v34 = vld [vmem:[%s2296_s1 + $0x1c] sm:$0xf]  ;;  %v677_v5 = vrot.slane %v1691_v12, %v307_v25 }
  0x18   : > { %v1752_v35 = vsub.s32 3, %v1718_v22  ;;  %v1555_v38 = vld [vmem:[%s2296_s1 + $0x34] sm:$0xf]  ;;  %v1554_v39 = vld [vmem:[%s2296_s1 + $0x30] sm:$0xf]  ;;  %v1785_v46 = vsub.s32 0, %v1718_v22 }
  0x19   : > { %v1557_v40 = vld [vmem:[%s2296_s1 + $0x3c] sm:$0xf]  ;;  %v1556_v41 = vld [vmem:[%s2296_s1 + $0x38] sm:$0xf]  ;;  %v1566_v42 = vld [vmem:[%s2296_s1 + $0x60] sm:$0xf] }
  0x1a   : > { %v1567_v43 = vld [vmem:[%s2296_s1 + $0x64] sm:$0xf]  ;;  %v1568_v44 = vld [vmem:[%s2296_s1 + $0x68] sm:$0xf]  ;;  %v1569_v45 = vld [vmem:[%s2296_s1 + $0x6c] sm:$0xf]  ;;  %v593_v48 = vrot.slane %v1691_v12, %v1785_v46 }
  0x1b   : > { %913 = vperm.xlu1 %1603, %v1565_v7   ;;  %707 = vperm.xlu0 %1602, %v1561_v8   ;;  %v1727_v26 = vld [vmem:[#allocation2] sm:$0xff]  ;;  %v230_v47 = vsub.s32 4, %v1718_v22  ;;  %v267_v50 = vsub.s32 5, %v1718_v22  ;;  %v1800_v53 = vld [vmem:[#allocation2 + $0xc] sm:$0xf]  ;;  %v1803_v54 = vsub.s32 1, %v1718_v22 }
  0x1c   : > { %v308_v27 = vrot.slane %v1727_v26, %v307_v25  ;;  %v348_v36 = vrot.slane %v1727_v26, %v347_v31  ;;  %v1795_v51 = vrot.slane %v593_v48, %v1785_v46  ;;  %v765_v59 = vrot.slane %v1800_v53, %v1785_v46  ;;  %s1615_s12 = smov 96   ;;  %s1616_s17 = smov 113  }
  0x1d   : > { %v597_v49 = vrot.slane %v1691_v12, %v230_v47  ;;  %v637_v55 = vrot.slane %v1691_v12, %v267_v50  ;;  %v633_v60 = vrot.slane %v1691_v12, %v1803_v54  ;;  %vm491_vm1 = vcmask 916480   ;;  %s1617_s28 = smov 111   ;;  %s1618_s29 = smov 127  }
  0x1e   : > { %v1743_v32 = vrot.slane %v308_v27, %v1739_v30  ;;  %v1758_v37 = vrot.slane %v348_v36, %v1752_v35  ;;  %v1822_v2 = vrot.slane %v765_v59, %v1785_v46  ;;  %vm982_vm2 = vcmask 785408   ;;  %s1619_s30 = smov 126   ;;  %s1620_s5 = smov 17  }
  0x1f   : > { %1184 = vperm.xlu1 %1603, %v1574_v10   ;;  %1076 = vperm.xlu0 %1602, %v1570_v11   ;;  %v1798_v52 = vrot.slane %v597_v49, %v1785_v46  ;;  %v1815_v61 = vrot.slane %v637_v55, %v1803_v54  ;;  %v1825_v3 = vrot.slane %v633_v60, %v1803_v54  ;;  %vm1343_vm3 = vcmask 924672   ;;  %s1583_s6 = sshll.u32 %s2304_s16, 2 }
  0x20   : > { %v1839_v10 = vrot.slane %v677_v5, %v1739_v30  ;;  %v819_v11 = vrot.slane %v1800_v53, %v1803_v54  ;;  %vm1302_vm4 = vcmask 908288   ;;  %vm1319_vm5 = vcmask 1039360   ;;  %s208_s9 = scalar_lea.vmem %s2299_s4, %s1583_s6 }
  0x21   : > { %vm1360_vm6 = vcmask 1031168   ;;  %vm1394_vm7 = vcmask 138240   ;;  %vm1412_vm8 = vcmask 1043456   ;;  %vm1422_vm9 = vcmask 3072  }
  0x22   : > { %vm1445_vm10 = vcmask 11272  }
  0x23   : > { %1211 = vperm.xlu1 %1603, %v1575_v13   ;;  %1103 = vperm.xlu0 %1602, %v1571_v14   ;;  %v673_v14 = vrot.slane %v1691_v12, %v1739_v30 }
  0x27   : > { %1238 = vperm.xlu1 %1603, %v1576_v15   ;;  %1130 = vperm.xlu0 %1602, %v1572_v16   ;;  %v717_v16 = vrot.slane %v1691_v12, %v347_v31 }
  0x2b   : > { %1265 = vperm.xlu1 %1603, %v1577_v17   ;;  %1157 = vperm.xlu0 %1602, %v1573_v18   ;;  %v1853_v18 = vrot.slane %v819_v11, %v1803_v54 }
  0x2f   : > { %388 = vperm.xlu1 %1603, %v1547_v20   ;;  %378 = vperm.xlu0 %1602, %v1546_v21   ;;  %v1858_v20 = vrot.slane %v673_v14, %v1739_v30  ;;  %v1861_v21 = vrot.slane %v717_v16, %v1752_v35 }
  0x33   : > { %437 = vperm.xlu1 %1603, %v1551_v23   ;;  %427 = vperm.xlu0 %1602, %v1550_v24  }
  0x37   : > { %450 = vperm.xlu1 %1603, %v1552_v28   ;;  %401 = vperm.xlu0 %1602, %v1548_v29   ;;  %v873_v29 = vrot.slane %v1800_v53, %v1739_v30 }
  0x3b   : > { %463 = vperm.xlu1 %1603, %v1553_v33   ;;  %414 = vperm.xlu0 %1602, %v1549_v34   ;;  %v713_v33 = vrot.slane %v1691_v12, %v1752_v35 }
  0x3f   : > { %504 = vperm.xlu1 %1603, %v1555_v38   ;;  %476 = vperm.xlu0 %1602, %v1554_v39   ;;  %v1878_v38 = vrot.slane %v873_v29, %v1739_v30 }
  0x43   : > { %558 = vperm.xlu1 %1603, %v1557_v40   ;;  %531 = vperm.xlu0 %1602, %v1556_v41   ;;  %v1883_v40 = vrot.slane %v713_v33, %v1752_v35 }
  0x47   : > { %967 = vperm.xlu0 %1602, %v1566_v42  }
  0x4b   : > { %995 = vperm.xlu0 %1602, %v1567_v43  }
  0x4f   : > { %1022 = vperm.xlu0 %1602, %v1568_v44   ;;  %v927_v44 = vrot.slane %v1800_v53, %v1752_v35 }
  0x53   : > { %1049 = vperm.xlu0 %1602, %v1569_v45  }
  0x8e   : > { %v587_v56 = vpop.permute.xlu0 %586  ;;  %v628_v62 = vpop.permute.xlu1 %627 }
  0x8f   : > { %v608_v57 = vmul.f32 %v1795_v51, %v587_v56  ;;  %v609_v58 = vmul.f32 %v1798_v52, %v587_v56  ;;  %v649_v4 = vmul.f32 %v1815_v61, %v628_v62  ;;  %v648_v8 = vmul.f32 %v1825_v3, %v628_v62 }
  0x90   : > { %v1898_v56 = vrot.slane %v927_v44, %v1752_v35  ;;  %v215_v44 = vld [vmem:[#allocation2 + $0x8] sm:$0xf] }
  0x91   : > { %614 = vrot.lane.b32.xlu0 %v609_v58, %s1614_s11  ;;  %612 = vrot.lane.b32.xlu1 %v608_v57, %s1614_s11 }
  0x92   : > { %v750_v63 = vpop.permute.xlu0 %749  ;;  %v806_v7 = vpop.permute.xlu1 %805 }
  0x93   : > { %v782_v0 = vmul.f32 %v750_v63, %v1798_v52  ;;  %v781_v1 = vmul.f32 %v750_v63, %v1795_v51  ;;  %v783_v6 = vmul.f32 %v1822_v2, %v750_v63  ;;  %v836_v9 = vmul.f32 %v806_v7, %v1815_v61 }
  0x94   : > { %v835_v17 = vmul.f32 %v806_v7, %v1825_v3  ;;  %v837_v24 = vmul.f32 %v1853_v18, %v806_v7 }
  0x95   : > { %789 = vrot.lane.b32.xlu0 %v782_v0, %s1614_s11  ;;  %787 = vrot.lane.b32.xlu1 %v781_v1, %s1614_s11 }
  0x96   : > { %v668_v13 = vpop.permute.xlu0 %667  ;;  %v860_v19 = vpop.permute.xlu1 %859 }
  0x97   : > { %v689_v15 = vmul.f32 %v1839_v10, %v668_v13  ;;  %v890_v23 = vmul.f32 %v860_v19, %v1839_v10  ;;  %v688_v27 = vmul.f32 %v1858_v20, %v668_v13  ;;  %v889_v36 = vmul.f32 %v860_v19, %v1858_v20 }
  0x98   : > { %v891_v42 = vmul.f32 %v1878_v38, %v860_v19 }
  0x99   : > { %654 = vrot.lane.b32.xlu0 %v649_v4, %s1614_s11  ;;  %791 = vrot.lane.b32.xlu1 %v783_v6, %s1614_s11 }
  0x9a   : > { %v708_v25 = vpop.permute.xlu0 %707  ;;  %v914_v31 = vpop.permute.xlu1 %913 }
  0x9b   : > { %v729_v28 = vmul.f32 %v1861_v21, %v708_v25  ;;  %v944_v34 = vmul.f32 %v914_v31, %v1861_v21  ;;  %v728_v12 = vmul.f32 %v1883_v40, %v708_v25  ;;  %v943_v55 = vmul.f32 %v914_v31, %v1883_v40 }
  0x9c   : > { %v945_v53 = vmul.f32 %v1898_v56, %v914_v31 }
  0x9d   : > { %843 = vrot.lane.b32.xlu0 %v836_v9, %s1614_s11  ;;  %652 = vrot.lane.b32.xlu1 %v648_v8, %s1614_s11 }
  0x9e   : > { %v1077_v39 = vpop.permute.xlu0 %1076  ;;  %v1185_v45 = vpop.permute.xlu1 %1184 }
  0x9f   : > { %v1079_v41 = vmul.f32 %v1077_v39, %v1795_v51  ;;  %v1081_v43 = vmul.f32 %v1077_v39, %v1822_v2  ;;  %v1188_v49 = vmul.f32 %v1185_v45, %v1798_v52  ;;  %v1080_v60 = vmul.f32 %v1077_v39, %v1798_v52 }
  0xa0   : > { %v1187_v1 = vmul.f32 %v1185_v45, %v1795_v51  ;;  %v1189_v5 = vmul.f32 %v1185_v45, %v1822_v2  ;;  %v1544_v45 = vld [vmem:[%s2296_s1 + $0x8] sm:$0xf] }
  0xa1   : > { %694 = vrot.lane.b32.xlu0 %v689_v15, %s1614_s11  ;;  %841 = vrot.lane.b32.xlu1 %v835_v17, %s1614_s11 }
  0xa2   : > { %v1104_v48 = vpop.permute.xlu0 %1103  ;;  %v1212_v62 = vpop.permute.xlu1 %1211 }
  0xa3   : > { %v1106_v57 = vmul.f32 %v1104_v48, %v1825_v3  ;;  %v1108_v59 = vmul.f32 %v1104_v48, %v1853_v18  ;;  %v1215_v0 = vmul.f32 %v1212_v62, %v1815_v61  ;;  %v1107_v8 = vmul.f32 %v1104_v48, %v1815_v61 }
  0xa4   : > { %v1214_v14 = vmul.f32 %v1212_v62, %v1825_v3  ;;  %v1216_v17 = vmul.f32 %v1212_v62, %v1853_v18 }
  0xa5   : > { %897 = vrot.lane.b32.xlu0 %v890_v23, %s1614_s11  ;;  %845 = vrot.lane.b32.xlu1 %v837_v24, %s1614_s11 }
  0xa6   : > { %v1131_v58 = vpop.permute.xlu0 %1130  ;;  %v1239_v9 = vpop.permute.xlu1 %1238 }
  0xa7   : > { %v1133_v4 = vmul.f32 %v1131_v58, %v1858_v20  ;;  %v1135_v7 = vmul.f32 %v1131_v58, %v1878_v38  ;;  %v1242_v13 = vmul.f32 %v1239_v9, %v1839_v10  ;;  %v1134_v24 = vmul.f32 %v1131_v58, %v1839_v10 }
  0xa8   : > { %v1241_v31 = vmul.f32 %v1239_v9, %v1858_v20 }
  0xa9   : > { %734 = vrot.lane.b32.xlu0 %v729_v28, %s1614_s11  ;;  %692 = vrot.lane.b32.xlu1 %v688_v27, %s1614_s11  ;;  %v1578_v27 = vld [vmem:[%s2297_s2 + $0x1] ss:$2 sm:$0x3] }
  0xaa   : > { %v1158_v63 = vpop.permute.xlu0 %1157  ;;  %v1266_v15 = vpop.permute.xlu1 %1265  ;;  %v1334_v33 = vrot.slane %v1578_v27, %v1785_v46 }
  0xab   : > { %v1160_v16 = vmul.f32 %v1158_v63, %v1883_v40  ;;  %v1162_v23 = vmul.f32 %v1158_v63, %v1898_v56  ;;  %v1269_v29 = vmul.f32 %v1266_v15, %v1861_v21  ;;  %v1270_v58 = vmul.f32 %v1266_v15, %v1898_v56 }
  0xad   : > { %951 = vrot.lane.b32.xlu0 %v944_v34, %s1614_s11  ;;  %895 = vrot.lane.b32.xlu1 %v889_v36, %s1614_s11  ;;  %v1243_v36 = vmul.f32 %v1239_v9, %v1878_v38 }
  0xae   : > { %v1916_v6 = vpop.permute.xlu0 %378  ;;  %v1938_v25 = vpop.permute.xlu1 %388 }
  0xb1   : > { %1085 = vrot.lane.b32.xlu0 %v1079_v41, %s1615_s12  ;;  %899 = vrot.lane.b32.xlu1 %v891_v42, %s1614_s11  ;;  %v216_v41 = vld [vmem:[%s2296_s1] sm:$0xf]  ;;  %v1161_v42 = vmul.f32 %v1158_v63, %v1861_v21 }
  0xb2   : > { %v1924_v11 = vpop.permute.xlu0 %427  ;;  %v1952_v34 = vpop.permute.xlu1 %437 }
  0xb5   : > { %1089 = vrot.lane.b32.xlu0 %v1081_v43, %s1615_s12  ;;  %732 = vrot.lane.b32.xlu1 %v728_v12, %s1614_s11  ;;  %v227_v43 = vrot.slane %v1727_v26, %v1785_v46 }
  0xb6   : > { %v1932_v19 = vpop.permute.xlu0 %401  ;;  %v1960_v12 = vpop.permute.xlu1 %450 }
  0xb9   : > { %1195 = vrot.lane.b32.xlu0 %v1188_v49, %s1615_s12  ;;  %949 = vrot.lane.b32.xlu1 %v943_v55, %s1614_s11  ;;  %v1268_v49 = vmul.f32 %v1266_v15, %v1883_v40  ;;  %v235_v55 = vrot.slane %v215_v44, %v1785_v46 }
  0xba   : > { %v1945_v28 = vpop.permute.xlu0 %414 }
  0xbb   : > { %v1984_v62 = vrot.slane %v235_v55, %v1785_v46 }
  0xbd   : > { %1112 = vrot.lane.b32.xlu0 %v1106_v57, %s1615_s12  ;;  %953 = vrot.lane.b32.xlu1 %v945_v53, %s1614_s11  ;;  %v1973_v57 = vrot.slane %v227_v43, %v1785_v46  ;;  %v1976_v53 = vpop.permute.xlu1 %463 }
  0xbe   : > { %v477_v39 = vpop.permute.xlu0 %476 }
  0xc1   : > { %1116 = vrot.lane.b32.xlu0 %v1108_v59, %s1615_s12  ;;  %1087 = vrot.lane.b32.xlu1 %v1080_v60, %s1615_s12  ;;  %v479_v59 = vmul.f32 %v477_v39, %v1973_v57  ;;  %v268_v60 = vrot.slane %v1727_v26, %v267_v50  ;;  %v304_v50 = vrot.slane %v1727_v26, %v1739_v30 }
  0xc2   : > { %v1968_v48 = vpop.permute.xlu0 %531 }
  0xc3   : > { %v2009_v15 = vrot.slane %v304_v50, %v1739_v30 }
  0xc5   : > { %1222 = vrot.lane.b32.xlu0 %v1215_v0, %s1615_s12  ;;  %1193 = vrot.lane.b32.xlu1 %v1187_v1, %s1615_s12  ;;  %v1338_v0 = vrot.slane %v1578_v27, %v1803_v54  ;;  %v481_v1 = vmul.f32 %v477_v39, %v1984_v62  ;;  %v453_v50 = vmul.f32 %v1960_v12, %v2009_v15 }
  0xc6   : > { %v1986_v63 = vpop.permute.xlu0 %967 }
  0xc9   : > { %1139 = vrot.lane.b32.xlu0 %v1133_v4, %s1615_s12  ;;  %1197 = vrot.lane.b32.xlu1 %v1189_v5, %s1615_s12  ;;  %v505_v4 = vpop.permute.xlu1 %504  ;;  %v1993_v5 = vrot.slane %v268_v60, %v1803_v54 }
  0xca   : > { %v2002_v9 = vpop.permute.xlu0 %995 }
  0xcd   : > { %1143 = vrot.lane.b32.xlu0 %v1135_v7, %s1615_s12  ;;  %1114 = vrot.lane.b32.xlu1 %v1107_v8, %s1615_s12  ;;  %v1543_v7 = vld [vmem:[%s2296_s1 + $0x4] sm:$0xf]  ;;  %v508_v8 = vmul.f32 %v505_v4, %v1993_v5  ;;  %v2041_v43 = vpop.permute.xlu1 %558 }
  0xd1   : > { %1249 = vrot.lane.b32.xlu0 %v1242_v13, %s1615_s12  ;;  %1220 = vrot.lane.b32.xlu1 %v1214_v14, %s1615_s12  ;;  %v231_v13 = vrot.slane %v1727_v26, %v230_v47  ;;  %v312_v14 = vrot.slane %v215_v44, %v1739_v30  ;;  %v272_v47 = vrot.slane %v215_v44, %v1803_v54 }
  0xd3   : > { %v2024_v27 = vrot.slane %v312_v14, %v1739_v30  ;;  %v2039_v30 = vrot.slane %v272_v47, %v1803_v54  ;;  %v432_v14 = vmul.f32 %v1924_v11, %v1984_v62 }
  0xd5   : > { %1166 = vrot.lane.b32.xlu0 %v1160_v16, %s1615_s12  ;;  %1224 = vrot.lane.b32.xlu1 %v1216_v17, %s1615_s12  ;;  %v1545_v16 = vld [vmem:[%s2296_s1 + $0xc] sm:$0xf]  ;;  %v534_v17 = vmul.f32 %v1968_v48, %v2009_v15 }
  0xd9   : > { %1170 = vrot.lane.b32.xlu0 %v1162_v23, %s1615_s12  ;;  %1141 = vrot.lane.b32.xlu1 %v1134_v24, %s1615_s12  ;;  %v264_v23 = vrot.slane %v1727_v26, %v1803_v54  ;;  %v2021_v24 = vrot.slane %v231_v13, %v1785_v46  ;;  %v454_v13 = vmul.f32 %v1960_v12, %v1743_v32 }
  0xdb   : > { %v431_v55 = vmul.f32 %v1924_v11, %v2021_v24 }
  0xdd   : > { %1276 = vrot.lane.b32.xlu0 %v1269_v29, %s1615_s12  ;;  %1247 = vrot.lane.b32.xlu1 %v1241_v31, %s1615_s12  ;;  %v2026_v29 = vpop.permute.xlu0 %1022  ;;  %v344_v31 = vrot.slane %v1727_v26, %v1752_v35 }
  0xe1   : > { %1339 = vrot.lane.b32.xlu0 %v1334_v33, %s1616_s17  ;;  %1251 = vrot.lane.b32.xlu1 %v1243_v36, %s1615_s12  ;;  %v352_v33 = vrot.slane %v215_v44, %v1752_v35  ;;  %v480_v36 = vmul.f32 %v477_v39, %v2021_v24  ;;  %v430_v39 = vmul.f32 %v1924_v11, %v1973_v57  ;;  %v2062_v60 = vpop.permute.xlu0 %1049 }
  0xe2   : > { %v2050_v44 = vrot.slane %v344_v31, %v1752_v35  ;;  %v509_v31 = vmul.f32 %v505_v4, %v2039_v30 }
  0xe5   : > { %219 = vperm.xlu0 %1602, %v216_v41   ;;  %1168 = vrot.lane.b32.xlu1 %v1161_v42, %s1615_s12  ;;  %v536_v41 = vmul.f32 %v1968_v48, %v2024_v27  ;;  %v2036_v42 = vrot.slane %v264_v23, %v1803_v54 }
  0xe7   : > { %v440_v26 = vmul.f32 %v1952_v34, %v2036_v42 }
  0xe9   : > { %298 = vperm.xlu0 %1602, %v1544_v45   ;;  %1274 = vrot.lane.b32.xlu1 %v1268_v49, %s1615_s12  ;;  %v2053_v45 = vrot.slane %v352_v33, %v1752_v35  ;;  %v441_v49 = vmul.f32 %v1952_v34, %v1993_v5  ;;  %v393_v35 = vmul.f32 %v1938_v25, %v2039_v30 }
  0xea   : > { %v443_v23 = vadd.f32 %v440_v26, %v430_v39  ;;  %v970_v33 = vmul.f32 %v1986_v63, %v1795_v51  ;;  %v455_v39 = vmul.f32 %v1960_v12, %v2024_v27 }
  0xeb   : > { %v444_v47 = vadd.f32 %v441_v49, %v431_v55  ;;  %v405_v49 = vmul.f32 %v1932_v19, %v1743_v32 }
  0xec   : > { %v456_v26 = vadd.f32 %v453_v50, %v443_v23  ;;  %v972_v50 = vmul.f32 %v1986_v63, %v1822_v2 }
  0xed   : > { %1278 = vrot.lane.b32.xlu1 %v1270_v58, %s1615_s12  ;;  %485 = vrot.lane.b32.xlu0 %v479_v59, %s1614_s11  ;;  %v507_v58 = vmul.f32 %v505_v4, %v2036_v42  ;;  %v562_v59 = vmul.f32 %v2041_v43, %v1758_v37  ;;  %v457_v4 = vadd.f32 %v454_v13, %v444_v47 }
  0xee   : > { %v561_v47 = vmul.f32 %v2041_v43, %v2050_v44 }
  0xf1   : > { %1341 = vrot.lane.b32.xlu1 %v1338_v0, %s1616_s17  ;;  %489 = vrot.lane.b32.xlu0 %v481_v1, %s1614_s11  ;;  %v392_v0 = vmul.f32 %v1938_v25, %v1993_v5  ;;  %v383_v1 = vmul.f32 %v1916_v6, %v1984_v62 }
  0xf3   : > { %v396_v11 = vadd.f32 %v393_v35, %v383_v1  ;;  %v468_v1 = vmul.f32 %v1976_v53, %v2053_v45 }
  0xf5   : > { %258 = vperm.xlu1 %1603, %v1543_v7   ;;  %515 = vrot.lane.b32.xlu0 %v508_v8, %s1614_s11  ;;  %v382_v7 = vmul.f32 %v1916_v6, %v2021_v24  ;;  %v442_v8 = vmul.f32 %v1952_v34, %v2039_v30  ;;  %v467_v34 = vmul.f32 %v1976_v53, %v1758_v37 }
  0xf7   : > { %v445_v51 = vadd.f32 %v442_v8, %v432_v14  ;;  %v470_v12 = vadd.f32 %v467_v34, %v457_v4 }
  0xf9   : > { %338 = vperm.xlu1 %1603, %v1545_v16   ;;  %540 = vrot.lane.b32.xlu0 %v534_v17, %s1614_s11  ;;  %v406_v16 = vmul.f32 %v1932_v19, %v2024_v27  ;;  %v466_v17 = vmul.f32 %v1976_v53, %v2050_v44  ;;  %v458_v2 = vadd.f32 %v455_v39, %v445_v51 }
  0xfb   : > { %v409_v55 = vadd.f32 %v406_v16, %v396_v11  ;;  %v469_v35 = vadd.f32 %v466_v17, %v456_v26  ;;  %v418_v16 = vmul.f32 %v1945_v28, %v1758_v37  ;;  %v471_v34 = vadd.f32 %v468_v1, %v458_v2 }
  0xfc   : > { %v971_v1 = vmul.f32 %v1986_v63, %v1798_v52  ;;  %v998_v52 = vmul.f32 %v2002_v9, %v1825_v3 }
  0xfd   : > { %487 = vrot.lane.b32.xlu1 %v480_v36, %s1614_s11  ;;  %544 = vrot.lane.b32.xlu0 %v536_v41, %s1614_s11 }
 0x101   : > { %513 = vrot.lane.b32.xlu1 %v507_v58, %s1614_s11  ;;  %569 = vrot.lane.b32.xlu0 %v562_v59, %s1614_s11  ;;  %v419_v58 = vmul.f32 %v1945_v28, %v2053_v45 }
 0x103   : > { %v615_v36 = vpop.permute.xlu0 %614  ;;  %v2091_v41 = vpop.permute.xlu1 %612  ;;  %v422_v13 = vadd.f32 %v419_v58, %v409_v55 }
 0x104   : > { %v616_v59 = vsel %vm491_vm1, %v2091_v41, %v615_v36 }
 0x105   : > { %517 = vrot.lane.b32.xlu1 %v509_v31, %s1614_s11  ;;  %976 = vrot.lane.b32.xlu0 %v970_v33, %s1615_s12  ;;  %v535_v31 = vmul.f32 %v1968_v48, %v1743_v32  ;;  %v395_v33 = vadd.f32 %v392_v0, %v382_v7  ;;  %v622_v53 = vadd.f32 %v615_v36, %v422_v13 }
 0x106   : > { %v999_v48 = vmul.f32 %v2002_v9, %v1815_v61  ;;  %v563_v36 = vmul.f32 %v2041_v43, %v2053_v45  ;;  %v1025_v61 = vmul.f32 %v2026_v29, %v1858_v20  ;;  %v1027_v43 = vmul.f32 %v2026_v29, %v1878_v38 }
 0x107   : > { %v790_v23 = vpop.permute.xlu0 %789  ;;  %v788_v22 = vpop.permute.xlu1 %787  ;;  %v408_v0 = vadd.f32 %v405_v49, %v395_v33  ;;  %v1053_v38 = vmul.f32 %v2062_v60, %v1861_v21  ;;  %v1026_v21 = vmul.f32 %v2026_v29, %v1839_v10  ;;  %v1054_v10 = vmul.f32 %v2062_v60, %v1898_v56 }
 0x108   : > { %v793_v8 = vsel %vm491_vm1, %v788_v22, %v790_v23  ;;  %v2110_v14 = vadd.f32 %v788_v22, %v469_v35  ;;  %v404_v56 = vmul.f32 %v1932_v19, %v2009_v15 }
 0x109   : > { %v799_v17 = vadd.f32 %v793_v8, %v470_v12  ;;  %542 = vrot.lane.b32.xlu1 %v535_v31, %s1614_s11  ;;  %980 = vrot.lane.b32.xlu0 %v972_v50, %s1615_s12  ;;  %v421_v26 = vadd.f32 %v418_v16, %v408_v0  ;;  %v1288_v12 = vld [vmem:[%s2297_s2] ss:$2 sm:$0x3]  ;;  %v1000_v16 = vmul.f32 %v2002_v9, %v1853_v18 }
 0x10a   : > { %v1293_v8 = vrot.slane %v1288_v12, %v1785_v46  ;;  %v1052_v18 = vmul.f32 %v2062_v60, %v1883_v40  ;;  %v391_v40 = vmul.f32 %v1938_v25, %v2036_v42 }
 0x10b   : > { %v655_v7 = vpop.permute.xlu0 %654  ;;  %v792_v22 = vpop.permute.xlu1 %791  ;;  %v621_v39 = vadd.f32 %v616_v59, %v421_v26 }
 0x10c   : > { %v2120_v11 = vadd.f32 %v655_v7, %v622_v53  ;;  %v794_v58 = vsel %vm491_vm1, %v790_v23, %v792_v22 }
 0x10d   : > { %v800_v4 = vadd.f32 %v794_v58, %v471_v34  ;;  %567 = vrot.lane.b32.xlu1 %v561_v47, %s1614_s11  ;;  %1006 = vrot.lane.b32.xlu0 %v999_v48, %s1615_s12  ;;  %v381_v58 = vmul.f32 %v1916_v6, %v1973_v57 }
 0x10f   : > { %v844_v51 = vpop.permute.xlu0 %843  ;;  %v653_v49 = vpop.permute.xlu1 %652  ;;  %v394_v60 = vadd.f32 %v391_v40, %v381_v58 }
 0x110   : > { %v656_v55 = vsel %vm491_vm1, %v653_v49, %v655_v7  ;;  %v1297_v7 = vrot.slane %v1288_v12, %v1803_v54 }
 0x111   : > { %v2130_v35 = vadd.f32 %v656_v55, %v621_v39  ;;  %571 = vrot.lane.b32.xlu1 %v563_v36, %s1614_s11  ;;  %1031 = vrot.lane.b32.xlu0 %v1025_v61, %s1615_s12  ;;  %v417_v36 = vmul.f32 %v1945_v28, %v2050_v44  ;;  %v407_v39 = vadd.f32 %v404_v56, %v394_v60 }
 0x113   : > { %v2138_v50 = vpop.permute.xlu0 %694  ;;  %v2140_v20 = vpop.permute.xlu1 %841 }
 0x114   : > { %v847_v59 = vsel %vm491_vm1, %v2140_v20, %v844_v51  ;;  %v852_v58 = vadd.f32 %v2140_v20, %v2110_v14 }
 0x115   : > { %v853_v23 = vadd.f32 %v847_v59, %v799_v17  ;;  %978 = vrot.lane.b32.xlu1 %v971_v1, %s1615_s12  ;;  %1035 = vrot.lane.b32.xlu0 %v1027_v43, %s1615_s12 }
 0x117   : > { %v2153_v63 = vpop.permute.xlu0 %897  ;;  %v846_v31 = vpop.permute.xlu1 %845 }
 0x118   : > { %v848_v33 = vsel %vm491_vm1, %v844_v51, %v846_v31  ;;  %v420_v51 = vadd.f32 %v417_v36, %v407_v39 }
 0x119   : > { %v2156_v13 = vadd.f32 %v848_v33, %v800_v4  ;;  %1004 = vrot.lane.b32.xlu1 %v998_v52, %s1615_s12  ;;  %1060 = vrot.lane.b32.xlu0 %v1053_v38, %s1615_s12 }
 0x11a   : > { %v620_v25 = vadd.f32 %v2091_v41, %v420_v51 }
 0x11b   : > { %v2163_v3 = vpop.permute.xlu0 %734  ;;  %v693_v17 = vpop.permute.xlu1 %692 }
 0x11c   : > { %v660_v43 = vadd.f32 %v653_v49, %v620_v25  ;;  %v696_v49 = vsel %vm491_vm1, %v693_v17, %v2138_v50 }
 0x11d   : > { %1008 = vrot.lane.b32.xlu1 %v1000_v16, %s1615_s12  ;;  %1298 = vrot.lane.b32.xlu0 %v1293_v8, %s1617_s28 }
 0x11f   : > { %v2168_v2 = vpop.permute.xlu0 %951  ;;  %v896_v53 = vpop.permute.xlu1 %895 }
 0x120   : > { %v901_v47 = vsel %vm491_vm1, %v896_v53, %v2153_v63  ;;  %v906_v51 = vadd.f32 %v896_v53, %v852_v58 }
 0x121   : > { %v2172_v46 = vadd.f32 %v901_v47, %v853_v23  ;;  %1033 = vrot.lane.b32.xlu1 %v1026_v21, %s1615_s12  ;;  %v700_v23 = vadd.f32 %v693_v17, %v660_v43 }
 0x123   : > { %v1086_v9 = vpop.permute.xlu0 %1085  ;;  %v900_v48 = vpop.permute.xlu1 %899 }
 0x124   : > { %v902_v43 = vsel %vm491_vm1, %v2153_v63, %v900_v48 }
 0x125   : > { %1058 = vrot.lane.b32.xlu1 %v1052_v18, %s1615_s12 }
 0x127   : > { %v1090_v29 = vpop.permute.xlu0 %1089  ;;  %v733_v0 = vpop.permute.xlu1 %732 }
 0x128   : > { %v740_v12 = vadd.f32 %v733_v0, %v700_v23  ;;  %v736_v18 = vsel %vm491_vm1, %v733_v0, %v2163_v3 }
 0x129   : > { %1062 = vrot.lane.b32.xlu1 %v1054_v10, %s1615_s12  ;;  %v702_v10 = vadd.f32 %v2138_v50, %v2120_v11  ;;  %s204_s12 = scalar_lea.vmem %s2298_s3, %s1583_s6 }
 0x12a   : > { %v1096_v38 = vadd.f32 %v1086_v9, %v740_v12 }
 0x12b   : > { %v2182_v22 = vpop.permute.xlu0 %1195  ;;  %v950_v34 = vpop.permute.xlu1 %949  ;;  %v742_v36 = vadd.f32 %v2163_v3, %v702_v10 }
 0x12c   : > { %v960_v14 = vadd.f32 %v950_v34, %v906_v51 }
 0x12d   : > { %1300 = vrot.lane.b32.xlu1 %v1297_v7, %s1617_s28  ;;  %v701_v7 = vadd.f32 %v696_v49, %v2130_v35 }
 0x12f   : > { %v1113_v26 = vpop.permute.xlu0 %1112  ;;  %v954_v4 = vpop.permute.xlu1 %953  ;;  %v741_v17 = vadd.f32 %v736_v18, %v701_v7 }
 0x130   : > { %v1123_v33 = vadd.f32 %v1113_v26, %v1096_v38  ;;  %v956_v53 = vsel %vm491_vm1, %v2168_v2, %v954_v4 }
 0x133   : > { %v1117_v54 = vpop.permute.xlu0 %1116  ;;  %v1088_v61 = vpop.permute.xlu1 %1087 }
 0x134   : > { %v1091_v56 = vsel %vm982_vm2, %v1086_v9, %v1088_v61  ;;  %v1092_v60 = vsel %vm982_vm2, %v1088_v61, %v1090_v29 }
 0x135   : > { %v1097_v11 = vadd.f32 %v1091_v56, %v741_v17  ;;  %v1098_v50 = vadd.f32 %v1092_v60, %v742_v36 }
 0x137   : > { %v2192_v55 = vpop.permute.xlu0 %1222  ;;  %v1194_v1 = vpop.permute.xlu1 %1193 }
 0x138   : > { %v1204_v61 = vadd.f32 %v1194_v1, %v960_v14 }
 0x13b   : > { %v1140_v6 = vpop.permute.xlu0 %1139  ;;  %v1198_v59 = vpop.permute.xlu1 %1197 }
 0x13c   : > { %v1150_v8 = vadd.f32 %v1140_v6, %v1123_v33  ;;  %v1200_v48 = vsel %vm982_vm2, %v2182_v22, %v1198_v59 }
 0x13f   : > { %v1144_v52 = vpop.permute.xlu0 %1143  ;;  %v1115_v19 = vpop.permute.xlu1 %1114 }
 0x140   : > { %v1118_v0 = vsel %vm982_vm2, %v1113_v26, %v1115_v19  ;;  %v1119_v25 = vsel %vm982_vm2, %v1115_v19, %v1117_v54  ;;  %v908_v26 = vadd.f32 %v902_v43, %v2156_v13  ;;  %v955_v54 = vsel %vm491_vm1, %v950_v34, %v2168_v2 }
 0x141   : > { %v1124_v29 = vadd.f32 %v1118_v0, %v1097_v11  ;;  %v1125_v3 = vadd.f32 %v1119_v25, %v1098_v50  ;;  %v1199_v13 = vsel %vm982_vm2, %v1194_v1, %v2182_v22 }
 0x142   : > { %v962_v33 = vadd.f32 %v956_v53, %v908_v26 }
 0x143   : > { %v2195_v31 = vpop.permute.xlu0 %1249  ;;  %v1221_v28 = vpop.permute.xlu1 %1220 }
 0x147   : > { %v1167_v16 = vpop.permute.xlu0 %1166  ;;  %v1225_v21 = vpop.permute.xlu1 %1224 }
 0x148   : > { %v1177_v47 = vadd.f32 %v1167_v16, %v1150_v8  ;;  %v1227_v2 = vsel %vm982_vm2, %v2192_v55, %v1225_v21 }
 0x14a   : > { %1313 = vrot.lane.b32.xlu0 %v1177_v47, %s1618_s29  ;;  %v961_v47 = vadd.f32 %v955_v54, %v2172_v46 }
 0x14b   : > { %v1142_v41 = vpop.permute.xlu1 %1141  ;;  %v1171_v39 = vpop.permute.xlu0 %1170 }
 0x14c   : > { %v1145_v20 = vsel %vm982_vm2, %v1140_v6, %v1142_v41  ;;  %v1146_v9 = vsel %vm982_vm2, %v1142_v41, %v1144_v52  ;;  %v1231_v6 = vadd.f32 %v1221_v28, %v1204_v61  ;;  %v1206_v41 = vadd.f32 %v1200_v48, %v962_v33 }
 0x14d   : > { %v1151_v23 = vadd.f32 %v1145_v20, %v1124_v29  ;;  %v1152_v12 = vadd.f32 %v1146_v9, %v1125_v3  ;;  %v1205_v1 = vadd.f32 %v1199_v13, %v961_v47 }
 0x14e   : > { %v1233_v10 = vadd.f32 %v1227_v2, %v1206_v41 }
 0x14f   : > { %v1248_v40 = vpop.permute.xlu1 %1247  ;;  %v1277_v19 = vpop.permute.xlu0 %1276 }
 0x150   : > { %v1258_v34 = vadd.f32 %v1248_v40, %v1231_v6  ;;  %v1253_v21 = vsel %vm982_vm2, %v1248_v40, %v2195_v31 }
 0x153   : > { %v1252_v35 = vpop.permute.xlu1 %1251  ;;  %v1340_v59 = vpop.permute.xlu0 %1339 }
 0x154   : > { %v1254_v18 = vsel %vm982_vm2, %v2195_v31, %v1252_v35 }
 0x155   : > { %v1260_v58 = vadd.f32 %v1254_v18, %v1233_v10 }
 0x157   : > { %v1169_v63 = vpop.permute.xlu1 %1168 }
 0x158   : > { %v1172_v52 = vsel %vm982_vm2, %v1167_v16, %v1169_v63  ;;  %v1173_v38 = vsel %vm982_vm2, %v1169_v63, %v1171_v39  ;;  %v1226_v16 = vsel %vm982_vm2, %v1221_v28, %v2192_v55 }
 0x159   : > { %v1178_v4 = vadd.f32 %v1172_v52, %v1151_v23  ;;  %v1179_v8 = vadd.f32 %v1173_v38, %v1152_v12  ;;  %v1232_v7 = vadd.f32 %v1226_v16, %v1205_v1 }
 0x15b   : > { %v1275_v49 = vpop.permute.xlu1 %1274  ;;  %1315 = vrot.lane.b32.xlu1 %v1178_v4, %s1618_s29  ;;  %1317 = vrot.lane.b32.xlu0 %v1179_v8, %s1618_s29  ;;  %v1259_v55 = vadd.f32 %v1253_v21, %v1232_v7 }
 0x15c   : > { %v1285_v22 = vadd.f32 %v1275_v49, %v1258_v34  ;;  %v1280_v60 = vsel %vm982_vm2, %v1275_v49, %v1277_v19 }
 0x15d   : > { %v1286_v17 = vadd.f32 %v1280_v60, %v1259_v55 }
 0x15e   : > { %v1348_v46 = vmul.f32 %v1340_v59, %v1285_v22 }
 0x15f   : > { %v1279_v56 = vpop.permute.xlu1 %1278 }
 0x160   : > { %v1281_v36 = vsel %vm982_vm2, %v1277_v19, %v1279_v56  ;;  %1354 = vrot.lane.b32.xlu1 %v1348_v46, %s1619_s30 }
 0x161   : > { %v1287_v28 = vadd.f32 %v1281_v36, %v1260_v58 }
 0x163   : > { %v1342_v39 = vpop.permute.xlu1 %1341 }
 0x164   : > { %v1344_v51 = vsel %vm1343_vm3, %v1340_v59, %v1342_v39  ;;  %v1350_v0 = vmul.f32 %v1342_v39, %v1287_v28  ;;  %v220_v40 = vpop.permute.xlu0 %219 }
 0x165   : > { %v1349_v25 = vmul.f32 %v1344_v51, %v1286_v17  ;;  %v251_v38 = vmul.f32 %v1973_v57, %v220_v40  ;;  %v252_v47 = vmul.f32 %v2021_v24, %v220_v40  ;;  %v253_v41 = vmul.f32 %v1984_v62, %v220_v40 }
 0x166   : > { %1358 = vrot.lane.b32.xlu1 %v1350_v0, %s1619_s30 }
 0x167   : > { %1356 = vrot.lane.b32.xlu0 %v1349_v25, %s1619_s30 }
 0x168   : > { %v299_v50 = vpop.permute.xlu0 %298 }
 0x169   : > { %v328_v8 = vmul.f32 %v2009_v15, %v299_v50  ;;  %v329_v57 = vmul.f32 %v1743_v32, %v299_v50  ;;  %v330_v22 = vmul.f32 %v2024_v27, %v299_v50 }
 0x16c   : > { %v486_v43 = vpop.permute.xlu0 %485 }
 0x170   : > { %v490_v20 = vpop.permute.xlu0 %489 }
 0x174   : > { %v259_v31 = vpop.permute.xlu1 %258  ;;  %v516_v29 = vpop.permute.xlu0 %515 }
 0x175   : > { %v288_v6 = vmul.f32 %v2036_v42, %v259_v31  ;;  %v289_v13 = vmul.f32 %v1993_v5, %v259_v31  ;;  %v290_v2 = vmul.f32 %v2039_v30, %v259_v31 }
 0x177   : > { %v291_v33 = vadd.f32 %v288_v6, %v251_v38  ;;  %v292_v42 = vadd.f32 %v289_v13, %v252_v47  ;;  %v293_v16 = vadd.f32 %v290_v2, %v253_v41 }
 0x178   : > { %v339_v11 = vpop.permute.xlu1 %338  ;;  %v541_v53 = vpop.permute.xlu0 %540 }
 0x179   : > { %v368_v49 = vmul.f32 %v2050_v44, %v339_v11  ;;  %v331_v59 = vadd.f32 %v328_v8, %v291_v33  ;;  %v333_v30 = vadd.f32 %v330_v22, %v293_v16  ;;  %v369_v10 = vmul.f32 %v1758_v37, %v339_v11 }
 0x17a   : > { %v370_v24 = vmul.f32 %v2053_v45, %v339_v11  ;;  %v332_v62 = vadd.f32 %v329_v57, %v292_v42 }
 0x17b   : > { %v371_v15 = vadd.f32 %v368_v49, %v331_v59 }
 0x17c   : > { %v488_v35 = vpop.permute.xlu1 %487  ;;  %v545_v26 = vpop.permute.xlu0 %544  ;;  %v373_v58 = vadd.f32 %v370_v24, %v333_v30  ;;  %v372_v32 = vadd.f32 %v369_v10, %v332_v62 }
 0x17d   : > { %v492_v5 = vsel %vm491_vm1, %v486_v43, %v488_v35  ;;  %v493_v27 = vsel %vm491_vm1, %v488_v35, %v490_v20 }
 0x17e   : > { %v497_v21 = vadd.f32 %v492_v5, %v371_v15  ;;  %v498_v28 = vadd.f32 %v493_v27, %v372_v32  ;;  %v499_v45 = vadd.f32 %v490_v20, %v373_v58 }
 0x180   : > { %v514_v14 = vpop.permute.xlu1 %513  ;;  %v570_v23 = vpop.permute.xlu0 %569 }
 0x181   : > { %v519_v44 = vsel %vm491_vm1, %v514_v14, %v516_v29 }
 0x182   : > { %v524_v56 = vadd.f32 %v519_v44, %v497_v21 }
 0x184   : > { %v518_v9 = vpop.permute.xlu1 %517  ;;  %v977_v19 = vpop.permute.xlu0 %976 }
 0x185   : > { %v520_v37 = vsel %vm491_vm1, %v516_v29, %v518_v9  ;;  %v526_v25 = vadd.f32 %v518_v9, %v499_v45 }
 0x186   : > { %v525_v0 = vadd.f32 %v520_v37, %v498_v28 }
 0x187   : > { %v553_v14 = vadd.f32 %v545_v26, %v526_v25 }
 0x188   : > { %v543_v3 = vpop.permute.xlu1 %542  ;;  %v981_v48 = vpop.permute.xlu0 %980 }
 0x189   : > { %v546_v7 = vsel %vm491_vm1, %v541_v53, %v543_v3  ;;  %v547_v51 = vsel %vm491_vm1, %v543_v3, %v545_v26 }
 0x18a   : > { %v551_v55 = vadd.f32 %v546_v7, %v524_v56  ;;  %v552_v11 = vadd.f32 %v547_v51, %v525_v0 }
 0x18c   : > { %v568_v61 = vpop.permute.xlu1 %567  ;;  %v1007_v4 = vpop.permute.xlu0 %1006 }
 0x18d   : > { %v573_v60 = vsel %vm491_vm1, %v568_v61, %v570_v23 }
 0x18e   : > { %v578_v17 = vadd.f32 %v573_v60, %v551_v55  ;;  %v1621_v55 = vmov 1983009808  }
 0x18f   : > { %v1377_v37 = vunpack.c.l.s4 %v1621_v55 }
 0x190   : > { %v572_v54 = vpop.permute.xlu1 %571  ;;  %v1032_v18 = vpop.permute.xlu0 %1031  ;;  %v988_v50 = vadd.f32 %v977_v19, %v578_v17  ;;  %v2302_v17 = vld [vmem:[#allocation3_spill] sm:$0xff] }
 0x191   : > { %v574_v31 = vsel %vm491_vm1, %v570_v23, %v572_v54  ;;  %v580_v38 = vadd.f32 %v572_v54, %v553_v14  ;;  %v1378_v28 = vunpack.c.0.s8 %v1377_v37 }
 0x192   : > { %v579_v53 = vadd.f32 %v574_v31, %v552_v11 }
 0x194   : > { %v979_v12 = vpop.permute.xlu1 %978  ;;  %v1036_v46 = vpop.permute.xlu0 %1035 }
 0x195   : > { %v983_v43 = vsel %vm982_vm2, %v977_v19, %v979_v12  ;;  %v984_v29 = vsel %vm982_vm2, %v979_v12, %v981_v48 }
 0x196   : > { %v989_v3 = vadd.f32 %v983_v43, %v579_v53  ;;  %v990_v8 = vadd.f32 %v984_v29, %v580_v38 }
 0x198   : > { %v1005_v63 = vpop.permute.xlu1 %1004  ;;  %v1061_v39 = vpop.permute.xlu0 %1060 }
 0x199   : > { %v1015_v61 = vadd.f32 %v1005_v63, %v988_v50  ;;  %v1010_v20 = vsel %vm982_vm2, %v1005_v63, %v1007_v4 }
 0x19a   : > { %v1016_v13 = vadd.f32 %v1010_v20, %v989_v3 }
 0x19b   : > { %v1042_v2 = vadd.f32 %v1032_v18, %v1015_v61 }
 0x19c   : > { %v1009_v52 = vpop.permute.xlu1 %1008  ;;  %v1299_v35 = vpop.permute.xlu0 %1298 }
 0x19d   : > { %v1011_v9 = vsel %vm982_vm2, %v1007_v4, %v1009_v52 }
 0x19e   : > { %v1017_v47 = vadd.f32 %v1011_v9, %v990_v8 }
 0x1a0   : > { %v1034_v34 = vpop.permute.xlu1 %1033 }
 0x1a1   : > { %v1037_v23 = vsel %vm982_vm2, %v1032_v18, %v1034_v34  ;;  %v1038_v26 = vsel %vm982_vm2, %v1034_v34, %v1036_v46 }
 0x1a2   : > { %v1043_v12 = vadd.f32 %v1037_v23, %v1016_v13  ;;  %v1044_v52 = vadd.f32 %v1038_v26, %v1017_v47 }
 0x1a4   : > { %v1059_v1 = vpop.permute.xlu1 %1058 }
 0x1a5   : > { %v1064_v19 = vsel %vm982_vm2, %v1059_v1, %v1061_v39  ;;  %v1069_v48 = vadd.f32 %v1059_v1, %v1042_v2 }
 0x1a6   : > { %v1070_v4 = vadd.f32 %v1064_v19, %v1043_v12 }
 0x1a7   : > { %v1307_v16 = vmul.f32 %v1299_v35, %v1069_v48 }
 0x1a8   : > { %v1063_v36 = vpop.permute.xlu1 %1062 }
 0x1a9   : > { %v1065_v54 = vsel %vm982_vm2, %v1061_v39, %v1063_v36  ;;  %v1381_v39 = vsub.s32 %v1378_v28, %v2302_v17 }
 0x1aa   : > { %v1071_v18 = vadd.f32 %v1065_v54, %v1044_v52 }
 0x1ac   : > { %v1301_v40 = vpop.permute.xlu1 %1300 }
 0x1ad   : > { %v1303_v41 = vsel %vm1302_vm4, %v1299_v35, %v1301_v40  ;;  %v1309_v10 = vmul.f32 %v1301_v40, %v1071_v18 }
 0x1ae   : > { %v1308_v57 = vmul.f32 %v1303_v41, %v1070_v4 }
 0x1bc   : > { %v1314_v33 = vpop.permute.xlu0 %1313 }
 0x1cd   : > { %v1316_v6 = vpop.permute.xlu1 %1315  ;;  %v1318_v63 = vpop.permute.xlu0 %1317 }
 0x1ce   : > { %v1320_v59 = vsel %vm1319_vm5, %v1314_v33, %v1316_v6  ;;  %v1321_v42 = vsel %vm1319_vm5, %v1316_v6, %v1318_v63  ;;  %v1327_v44 = vadd.f32 %v1318_v63, %v1309_v10 }
 0x1cf   : > { %v1325_v22 = vadd.f32 %v1320_v59, %v1307_v16  ;;  %v1326_v15 = vadd.f32 %v1321_v42, %v1308_v57 }
 0x1d2   : > { %v1355_v49 = vpop.permute.xlu1 %1354 }
 0x1d8   : > { %v1359_v34 = vpop.permute.xlu1 %1358 }
 0x1d9   : > { %v1357_v5 = vpop.permute.xlu0 %1356  ;;  %v1368_v21 = vadd.f32 %v1359_v34, %v1327_v44 }
 0x1da   : > { %v1361_v30 = vsel %vm1360_vm6, %v1355_v49, %v1357_v5  ;;  %v1362_v1 = vsel %vm1360_vm6, %v1357_v5, %v1359_v34 }
 0x1db   : > { %v1366_v24 = vadd.f32 %v1361_v30, %v1325_v22  ;;  %v1367_v62 = vadd.f32 %v1362_v1, %v1326_v15  ;;  %v1371_v51 = vpack.c.bf16 %v1368_v21, %v1368_v21 }
 0x1dd   : > { %1403 = vrot.lane.b32.xlu1 %v1367_v62, %s1620_s5  ;;  %1401 = vrot.lane.b32.xlu0 %v1366_v24, %s1620_s5  ;;  %v1579_v45 = vpack.c.bf16 %v1367_v62, %v1366_v24  ;;  %v1389_v25 = vrot.slane %v1371_v51, %v1381_v39 }
 0x1df   : > { %v1382_v0 = vrot.slane %v1579_v45, %v1381_v39 }
 0x1e1   : > { %1405 = vrot.lane.b32.xlu0 %v1368_v21, %s1620_s5  ;;  %v1390_v31 = vcombine.low %v1382_v0, %v1389_v25 }
 0x24f   : > { %v1404_v46 = vpop.permute.xlu1 %1403  ;;  %v1402_v7 = vpop.permute.xlu0 %1401 }
 0x250   : > { %v1408_v58 = vsel %vm1394_vm7, %v1402_v7, %v1404_v46 }
 0x251   : > { %v1413_v27 = vsel %vm1412_vm8, %v1408_v58, 0.0 }
 0x253   : > { %v1406_v32 = vpop.permute.xlu0 %1405 }
 0x254   : > { %v1409_v56 = vsel %vm1394_vm7, %v1404_v46, %v1406_v32 }
 0x255   : > { %v1414_v60 = vsel %vm1412_vm8, %v1409_v56, 0.0 }
 0x256   : > { %v1415_v36 = vadd.f32 %v1414_v60, %v1413_v27 }
 0x258   : > { %1416 = vadd.xlane.f32.xlu1 %v1415_v36 }
 0x269   : > { %1391 = vrot.lane.b32.xlu1 %v1390_v31, %s1620_s5 }
 0x2e5   : > { %v1417_v40 = vpop.xlane.xlu1 %1416 }
 0x2e6   : > { %v1418_v11 = vmul.f32 0.00390625, %v1417_v40 }
 0x2e8   : > { %v1419_v50 = vsub.f32 %v1366_v24, %v1418_v11  ;;  %1423 = vst.msk [vmem:[%s208_s9] sm:$0xf] %vm1422_vm9, %v1418_v11  ;;  %v1420_v53 = vsub.f32 %v1367_v62, %v1418_v11  ;;  %v1421_v20 = vsub.f32 %v1368_v21, %v1418_v11 }
 0x2e9   : > { %v1392_v35 = vpop.permute.xlu1 %1391 }
 0x2ea   : > { %v1393_v43 = vrot.slane %v1392_v35, 2  ;;  %v1424_v14 = vmul.f32 %v1419_v50, %v1419_v50  ;;  %v1425_v29 = vmul.f32 %v1420_v53, %v1420_v53  ;;  %v1426_v6 = vmul.f32 %v1421_v20, %v1421_v20 }
 0x2ec   : > { %v1395_v61 = vsel %vm1394_vm7, %v1392_v35, %v1393_v43  ;;  %1430 = vrot.lane.b32.xlu0 %v1424_v14, %s1620_s5 }
 0x2ed   : > { %1397 = vst [vmem:[%s204_s12] sm:$0xf] %v1395_v61 }
 0x2f0   : > { %1432 = vrot.lane.b32.xlu0 %v1425_v29, %s1620_s5 }
 0x2f4   : > { %1434 = vrot.lane.b32.xlu0 %v1426_v6, %s1620_s5 }
 0x35e   : > { %v1431_v38 = vpop.permute.xlu0 %1430 }
 0x362   : > { %v1433_v3 = vpop.permute.xlu0 %1432 }
 0x363   : > { %v1436_v33 = vsel %vm1394_vm7, %v1431_v38, %v1433_v3 }
 0x364   : > { %v1440_v8 = vsel %vm1412_vm8, %v1436_v33, 0.0 }
 0x366   : > { %v1435_v9 = vpop.permute.xlu0 %1434 }
 0x367   : > { %v1437_v23 = vsel %vm1394_vm7, %v1433_v3, %v1435_v9 }
 0x368   : > { %v1441_v13 = vsel %vm1412_vm8, %v1437_v23, 0.0 }
 0x369   : > { %v1442_v2 = vadd.f32 %v1441_v13, %v1440_v8 }
 0x36b   : > { %1443 = vadd.xlane.f32.xlu0 %v1442_v2 }
 0x3f8   : > { %v1444_v26 = vpop.xlane.xlu0 %1443 }
 0x3f9   : > { %1446 = vst.msk [vmem:[%s208_s9] sm:$0xf] %vm1445_vm10, %v1444_v26 }
 0x3fa PF: > { %s15_s15 = sadd.s32 1, %s1610_s15  }
 0x3fb   : > { %p12_p4 = scmp.ge.s32.totalorder %s15_s15, 4  }
 0x3fd   :  { %14 = sbr.rel (!%p12_p4) target bundleno = 1 (0x1), region = 110 }

</bundles_post_ra>
